<compile_context>
chip_gen: v6e
topology: v6e:2x2x1
jax: 0.10.0
libtpu: 0.0.40
codegen_flags: <defaults>
</compile_context>

<pallas_src>
import functools

import jax
import jax.numpy as jnp
from jax.experimental import pallas as pl
from jax.experimental.pallas import tpu as pltpu

NEG_SLOPE = 0.2
BN_EPS = 1e-5
MATMUL_DTYPE = jnp.bfloat16     # MXU-native; accumulation stays float32
VMEM_LIMIT = 32 * 1024 * 1024   # safe on v5e/v6e/v7x


def _round_up(x, m):
    return (x + m - 1) // m * m


def _m_tile(M):
    """Row tile: as large as possible (<=1024) but >=2 grid steps when M allows,
    so on v7x both TensorCores get work ('parallel' M axis)."""
    M8 = _round_up(max(M, 8), 8)
    TM = min(1024, _round_up((M8 + 1) // 2, 8))
    M_pad = _round_up(M8, TM)
    return TM, M_pad


# ----------------------------- Pallas kernels -----------------------------

def _conv_stats_kernel(p_ref, w_ref, b_ref, y_ref, sum_ref, sq_ref, *, tm, m_valid):
    """conv-as-matmul on the MXU (+bias), fused per-channel BN statistics.

    Outputs are lane-dense (Cp is a multiple of 128).  sum/sq are per-grid-step
    partial sums broadcast over 8 sublanes (keeps the block (8,128)-aligned and
    the grid axis 'parallel'); the wrapper combines them.
    """
    y = jnp.dot(p_ref[...], w_ref[...], preferred_element_type=jnp.float32) + b_ref[...]
    y_ref[...] = y

    if m_valid is not None:
        # Static path: mask rows past the true M out of the statistics (padded
        # patch rows would otherwise contribute the bias).
        row = pl.program_id(0) * tm + jax.lax.broadcasted_iota(jnp.int32, y.shape, 0)
        y = jnp.where(row < m_valid, y, 0.0)

    cp = y.shape[1]
    sum_ref[...] = jnp.broadcast_to(jnp.sum(y, axis=0, keepdims=True), (8, cp))
    sq_ref[...] = jnp.broadcast_to(jnp.sum(y * y, axis=0, keepdims=True), (8, cp))


def _bn_lrelu_kernel(y_ref, scale_ref, shift_ref, o_ref):
    """Folded BatchNorm affine (z = y*scale + shift) + LeakyReLU(0.2)."""
    z = y_ref[...] * scale_ref[...] + shift_ref[...]
    o_ref[...] = jnp.where(z >= 0, z, NEG_SLOPE * z)


# --------------------------- pallas_call wrappers --------------------------

def _conv_bn_stats(patches, wmat, bvec, m_true):
    """patches:(M,K) wmat:(K,Cp) bvec:(1,Cp) -> y:(M_pad,Cp) f32, sum/sq:(Cp,), TM."""
    M, K = patches.shape
    Cp = wmat.shape[1]
    TM, M_pad = _m_tile(M)
    if M_pad != M:
        patches = jnp.pad(patches, ((0, M_pad - M), (0, 0)))
    G = M_pad // TM

    kernel = functools.partial(
        _conv_stats_kernel, tm=TM, m_valid=(m_true if M_pad != M else None))

    flops = 2 * M_pad * K * Cp
    bytes_accessed = (M_pad * K * patches.dtype.itemsize
                      + K * Cp * wmat.dtype.itemsize
                      + M_pad * Cp * 4 + 2 * 8 * G * Cp * 4)

    y, s, sq = pl.pallas_call(
        kernel,
        out_shape=(jax.ShapeDtypeStruct((M_pad, Cp), jnp.float32),
                   jax.ShapeDtypeStruct((8 * G, Cp), jnp.float32),
                   jax.ShapeDtypeStruct((8 * G, Cp), jnp.float32)),
        grid=(G,),
        in_specs=[
            pl.BlockSpec((TM, K), lambda i: (i, 0)),
            pl.BlockSpec((K, Cp), lambda i: (0, 0)),
            pl.BlockSpec((1, Cp), lambda i: (0, 0)),
        ],
        out_specs=(pl.BlockSpec((TM, Cp), lambda i: (i, 0)),
                   pl.BlockSpec((8, Cp), lambda i: (i, 0)),
                   pl.BlockSpec((8, Cp), lambda i: (i, 0))),
        compiler_params=pltpu.CompilerParams(
            dimension_semantics=("parallel",),
            vmem_limit_bytes=VMEM_LIMIT),
        cost_estimate=pl.CostEstimate(flops=flops, transcendentals=0,
                                      bytes_accessed=bytes_accessed),
    )(patches, wmat, bvec)

    ssum = s.reshape(G, 8, Cp)[:, 0, :].sum(axis=0)
    ssq = sq.reshape(G, 8, Cp)[:, 0, :].sum(axis=0)
    return y, ssum, ssq, TM


def _bn_lrelu(y, scale, shift, TM):
    M_pad, Cp = y.shape
    G = M_pad // TM
    return pl.pallas_call(
        _bn_lrelu_kernel,
        out_shape=jax.ShapeDtypeStruct((M_pad, Cp), jnp.float32),
        grid=(G,),
        in_specs=[pl.BlockSpec((TM, Cp), lambda i: (i, 0)),
                  pl.BlockSpec((1, Cp), lambda i: (0, 0)),
                  pl.BlockSpec((1, Cp), lambda i: (0, 0))],
        out_specs=pl.BlockSpec((TM, Cp), lambda i: (i, 0)),
        compiler_params=pltpu.CompilerParams(
            dimension_semantics=("parallel",),
            vmem_limit_bytes=VMEM_LIMIT),
    )(y, scale.reshape(1, Cp), shift.reshape(1, Cp))


# ------------------------------- glue (JAX) --------------------------------

def _im2col(x_nhwc, cin_p, stride, pad, dtype):
    """4x4 conv patches. Rows ordered (n, ho, wo); cols (kh, kw, cin_p).

    The channel slice/pad, spatial pad, tap gather and bf16 cast form one XLA
    producer fusion feeding the matmul.
    # TODO(synk): gather the taps in-kernel (manual DMA over the NHWC input) to
    # avoid materializing the 16x-expanded im2col matrix in HBM at all.
    """
    N, H, W, C = x_nhwc.shape
    if C < cin_p:
        x = jnp.pad(x_nhwc, ((0, 0), (0, 0), (0, 0), (0, cin_p - C)))
    elif C > cin_p:
        x = x_nhwc[..., :cin_p]
    else:
        x = x_nhwc
    x = x.astype(dtype)
    x = jnp.pad(x, ((0, 0), (pad, pad), (pad, pad), (0, 0)))
    Ho = (H + 2 * pad - 4) // stride + 1
    Wo = (W + 2 * pad - 4) // stride + 1
    taps = []
    for i in range(4):
        for j in range(4):
            taps.append(x[:, i:i + Ho * stride:stride, j:j + Wo * stride:stride, :])
    p = jnp.stack(taps, axis=3)                       # (N, Ho, Wo, 16, cin_p)
    return p.reshape(N * Ho * Wo, 16 * cin_p), (N, Ho, Wo)


def init_params(key, hidden_dim=64, image_channel=3):
    """Deterministic synthetic init in logical layout.

    Conv weights stored as (kh, kw, cin, cout); a PyTorch Conv2d weight
    (cout, cin, kh, kw) maps via w.transpose(2, 3, 1, 0).
    """
    specs = [
        (image_channel, hidden_dim, True),
        (hidden_dim, hidden_dim * 2, True),
        (hidden_dim * 2, hidden_dim * 4, True),
        (hidden_dim * 4, hidden_dim * 8, True),
        (hidden_dim * 8, 1, False),
    ]
    params = []
    for cin, cout, has_bn in specs:
        key, k1, k2 = jax.random.split(key, 3)
        fan_in = float(cin * 16)
        w = jax.random.normal(k1, (4, 4, cin, cout), jnp.float32) / jnp.sqrt(fan_in)
        b = 0.01 * jax.random.normal(k2, (cout,), jnp.float32)
        gamma = jnp.ones((cout,), jnp.float32) if has_bn else None   # PyTorch BN init
        beta = jnp.zeros((cout,), jnp.float32) if has_bn else None
        params.append(dict(w=w, b=b, gamma=gamma, beta=beta))
    return params


def critic_forward(x_nchw, params, compute_dtype=MATMUL_DTYPE):
    """Forward pass of Critic. Input NCHW (PyTorch); internally NHWC.

    Activations are carried channel-padded to a multiple of 128 (padded channels
    are exactly zero); each layer's im2col slices back to the real channel count
    and the padded gamma/beta give scale = shift = 0 on padded channels, so the
    padding never leaks into the result.
    """
    x = jnp.transpose(x_nchw, (0, 2, 3, 1)).astype(jnp.float32)   # NHWC
    strides = [2, 2, 2, 2, 1]
    pads = [1, 1, 1, 1, 0]
    batch = x.shape[0]

    for p, stride, pad in zip(params, strides, pads):
        cin, cout = p["w"].shape[2], p["w"].shape[3]
        cin_p = _round_up(cin, 8)        # K = 16*cin_p is a multiple of 128
        Cp = _round_up(cout, 128)        # lane-dense output channels

        # Padded matmul operands: (4,4,cin_p,Cp) -> (16*cin_p, Cp)
        w4 = jnp.pad(p["w"], ((0, 0), (0, 0), (0, cin_p - cin), (0, Cp - cout)))
        wmat = w4.reshape(16 * cin_p, Cp).astype(compute_dtype)
        bvec = jnp.pad(p["b"], (0, Cp - cout)).reshape(1, Cp).astype(jnp.float32)

        patches, (N, Ho, Wo) = _im2col(x, cin_p, stride, pad, compute_dtype)
        M = N * Ho * Wo

        # Pallas 1: conv matmul + fused BN statistics
        y, ssum, ssq, TM = _conv_bn_stats(patches, wmat, bvec, M)

        if p["gamma"] is not None:
            # Train-mode BatchNorm2d: biased batch variance, eps=1e-5, LeakyReLU(0.2)
            mean = ssum / M
            var = jnp.maximum(ssq / M - mean * mean, 0.0)
            invstd = jax.lax.rsqrt(var + BN_EPS)
            gamma = jnp.pad(p["gamma"], (0, Cp - cout))
            beta = jnp.pad(p["beta"], (0, Cp - cout))
            scale = gamma * invstd                  # padded channels: scale = 0
            shift = beta - mean * scale             # padded channels: shift = 0
            # Pallas 2: folded BN affine + LeakyReLU (lane-dense elementwise pass)
            y = _bn_lrelu(y, scale, shift, TM)

        if y.shape[0] != M:
            y = y[:M]
        x = y.reshape(N, Ho, Wo, Cp)

    # Final layer has cout = 1: take the real channel, then torch.flatten(NCHW, 1)
    cout_last = params[-1]["w"].shape[3]
    out_nhwc = x[..., :cout_last]
    out = jnp.transpose(out_nhwc, (0, 3, 1, 2)).reshape(batch, -1)
    return out


if __name__ == "__main__":
    key = jax.random.PRNGKey(0)
    k_x, k_p = jax.random.split(key)
    # Architecture-consistent small shapes: 64x64 input so the final 4x4 valid
    # conv reduces to 1x1 (as in DCGAN); hidden_dim kept small.
    x = jax.random.normal(k_x, (2, 3, 64, 64), jnp.float32)
    params = init_params(k_p, hidden_dim=8, image_channel=3)
    fwd = jax.jit(critic_forward)
    out = jax.block_until_ready(fwd(x, params))
    assert out.shape == (2, 1) and out.dtype == jnp.float32
    print("KERNEL_OK")
</pallas_src>

<mosaic_0001>
module attributes {stable_mosaic.version = 11 : i64} {
  func.func @_conv_stats_kernel(%arg0: i32, %arg1: memref<1024x128xbf16, #tpu.memory_space<vmem>>, %arg2: memref<128x128xbf16, #tpu.memory_space<vmem>>, %arg3: memref<1x128xf32, #tpu.memory_space<vmem>>, %arg4: memref<1024x128xf32, #tpu.memory_space<vmem>>, %arg5: memref<8x128xf32, #tpu.memory_space<vmem>>, %arg6: memref<8x128xf32, #tpu.memory_space<vmem>>) attributes {dimension_semantics = [#tpu.dimension_semantics<parallel>], iteration_bounds = array<i64: 2>, scalar_prefetch = 0 : i64, scratch_operands = 0 : i64, tpu.core_type = #tpu.core_type<tc>, window_params = [{transform_indices = @transform_0, window_bounds = array<i64: 1024, 128>}, {pipeline_mode = #tpu.pipeline_mode<synchronous>, transform_indices = @transform_1, window_bounds = array<i64: 128, 128>}, {pipeline_mode = #tpu.pipeline_mode<synchronous>, transform_indices = @transform_2, window_bounds = array<i64: 1, 128>}, {transform_indices = @transform_3, window_bounds = array<i64: 1024, 128>}, {transform_indices = @transform_4, window_bounds = array<i64: 8, 128>}, {transform_indices = @transform_5, window_bounds = array<i64: 8, 128>}]} {
    %c0 = arith.constant 0 : index
    %c0_0 = arith.constant 0 : index
    %0 = vector.load %arg1[%c0, %c0_0] : memref<1024x128xbf16, #tpu.memory_space<vmem>>, vector<1024x128xbf16>
    %c0_1 = arith.constant 0 : index
    %c0_2 = arith.constant 0 : index
    %1 = vector.load %arg2[%c0_1, %c0_2] : memref<128x128xbf16, #tpu.memory_space<vmem>>, vector<128x128xbf16>
    %cst = arith.constant dense<0.000000e+00> : vector<1024x128xf32>
    %2 = tpu.matmul %0, %1, %cst {dimension_numbers = #tpu.dot_dimension_numbers<[1], [0], [0], [1], [0, 0, 1, 1], [], []>} : vector<1024x128xbf16>, vector<128x128xbf16>, vector<1024x128xf32> -> vector<1024x128xf32>
    %c0_3 = arith.constant 0 : index
    %c0_4 = arith.constant 0 : index
    %3 = vector.load %arg3[%c0_3, %c0_4] : memref<1x128xf32, #tpu.memory_space<vmem>>, vector<1x128xf32>
    %4 = vector.broadcast %3 : vector<1x128xf32> to vector<1024x128xf32>
    %5 = arith.addf %2, %4 : vector<1024x128xf32>
    %c0_5 = arith.constant 0 : index
    %c0_6 = arith.constant 0 : index
    %6 = vector.load %arg4[%c0_5, %c0_6] : memref<1024x128xf32, #tpu.memory_space<vmem>>, vector<1024x128xf32>
    tpu.vector_store %arg4[%c0_5, %c0_6], %5 {strides = array<i32>} : memref<1024x128xf32, #tpu.memory_space<vmem>>, vector<1024x128xf32>,
    %cst_7 = arith.constant dense<0.000000e+00> : vector<128xf32>
    %7 = vector.multi_reduction <add>, %5, %cst_7 [0] : vector<1024x128xf32> to vector<128xf32>
    %8 = vector.shape_cast %7 : vector<128xf32> to vector<1x128xf32>
    %9 = vector.shape_cast %8 : vector<1x128xf32> to vector<1x128xf32>
    %10 = vector.broadcast %9 : vector<1x128xf32> to vector<8x128xf32>
    %c0_8 = arith.constant 0 : index
    %c0_9 = arith.constant 0 : index
    %11 = vector.load %arg5[%c0_8, %c0_9] : memref<8x128xf32, #tpu.memory_space<vmem>>, vector<8x128xf32>
    tpu.vector_store %arg5[%c0_8, %c0_9], %10 {strides = array<i32>} : memref<8x128xf32, #tpu.memory_space<vmem>>, vector<8x128xf32>,
    %12 = arith.mulf %5, %5 : vector<1024x128xf32>
    %cst_10 = arith.constant dense<0.000000e+00> : vector<128xf32>
    %13 = vector.multi_reduction <add>, %12, %cst_10 [0] : vector<1024x128xf32> to vector<128xf32>
    %14 = vector.shape_cast %13 : vector<128xf32> to vector<1x128xf32>
    %15 = vector.shape_cast %14 : vector<1x128xf32> to vector<1x128xf32>
    %16 = vector.broadcast %15 : vector<1x128xf32> to vector<8x128xf32>
    %c0_11 = arith.constant 0 : index
    %c0_12 = arith.constant 0 : index
    %17 = vector.load %arg6[%c0_11, %c0_12] : memref<8x128xf32, #tpu.memory_space<vmem>>, vector<8x128xf32>
    tpu.vector_store %arg6[%c0_11, %c0_12], %16 {strides = array<i32>} : memref<8x128xf32, #tpu.memory_space<vmem>>, vector<8x128xf32>,
    return
  }
  func.func @transform_0(%arg0: i32) -> (i32, i32) {
    %c0_i32 = arith.constant 0 : i32
    %c0_i32_0 = arith.constant 0 : i32
    return %arg0, %c0_i32 : i32, i32
  }
  func.func @transform_1(%arg0: i32) -> (i32, i32) {
    %c0_i32 = arith.constant 0 : i32
    %c0_i32_0 = arith.constant 0 : i32
    %c0_i32_1 = arith.constant 0 : i32
    return %c0_i32, %c0_i32_0 : i32, i32
  }
  func.func @transform_2(%arg0: i32) -> (i32, i32) {
    %c0_i32 = arith.constant 0 : i32
    %c0_i32_0 = arith.constant 0 : i32
    %c0_i32_1 = arith.constant 0 : i32
    return %c0_i32, %c0_i32_0 : i32, i32
  }
  func.func @transform_3(%arg0: i32) -> (i32, i32) {
    %c0_i32 = arith.constant 0 : i32
    %c0_i32_0 = arith.constant 0 : i32
    return %arg0, %c0_i32 : i32, i32
  }
  func.func @transform_4(%arg0: i32) -> (i32, i32) {
    %c0_i32 = arith.constant 0 : i32
    %c0_i32_0 = arith.constant 0 : i32
    return %arg0, %c0_i32 : i32, i32
  }
  func.func @transform_5(%arg0: i32) -> (i32, i32) {
    %c0_i32 = arith.constant 0 : i32
    %c0_i32_0 = arith.constant 0 : i32
    return %arg0, %c0_i32 : i32, i32
  }
}

module attributes {stable_mosaic.version = 11 : i64} {
  func.func @_bn_lrelu_kernel(%arg0: i32, %arg1: memref<1024x128xf32, #tpu.memory_space<vmem>>, %arg2: memref<1x128xf32, #tpu.memory_space<vmem>>, %arg3: memref<1x128xf32, #tpu.memory_space<vmem>>, %arg4: memref<1024x128xf32, #tpu.memory_space<vmem>>) attributes {dimension_semantics = [#tpu.dimension_semantics<parallel>], iteration_bounds = array<i64: 2>, scalar_prefetch = 0 : i64, scratch_operands = 0 : i64, tpu.core_type = #tpu.core_type<tc>, window_params = [{transform_indices = @transform_0, window_bounds = array<i64: 1024, 128>}, {pipeline_mode = #tpu.pipeline_mode<synchronous>, transform_indices = @transform_1, window_bounds = array<i64: 1, 128>}, {pipeline_mode = #tpu.pipeline_mode<synchronous>, transform_indices = @transform_2, window_bounds = array<i64: 1, 128>}, {transform_indices = @transform_3, window_bounds = array<i64: 1024, 128>}]} {
    %c0 = arith.constant 0 : index
    %c0_0 = arith.constant 0 : index
    %0 = vector.load %arg1[%c0, %c0_0] : memref<1024x128xf32, #tpu.memory_space<vmem>>, vector<1024x128xf32>
    %c0_1 = arith.constant 0 : index
    %c0_2 = arith.constant 0 : index
    %1 = vector.load %arg2[%c0_1, %c0_2] : memref<1x128xf32, #tpu.memory_space<vmem>>, vector<1x128xf32>
    %2 = vector.broadcast %1 : vector<1x128xf32> to vector<1024x128xf32>
    %3 = arith.mulf %0, %2 : vector<1024x128xf32>
    %c0_3 = arith.constant 0 : index
    %c0_4 = arith.constant 0 : index
    %4 = vector.load %arg3[%c0_3, %c0_4] : memref<1x128xf32, #tpu.memory_space<vmem>>, vector<1x128xf32>
    %5 = vector.broadcast %4 : vector<1x128xf32> to vector<1024x128xf32>
    %6 = arith.addf %3, %5 : vector<1024x128xf32>
    %cst = arith.constant 0.000000e+00 : f32
    %7 = vector.broadcast %cst : f32 to vector<1024x128xf32>
    %8 = arith.cmpf oge, %6, %7 : vector<1024x128xf32>
    %cst_5 = arith.constant 2.000000e-01 : f32
    %9 = vector.broadcast %cst_5 : f32 to vector<1024x128xf32>
    %10 = arith.mulf %9, %6 : vector<1024x128xf32>
    %11 = arith.select %8, %6, %10 : vector<1024x128xi1>, vector<1024x128xf32>
    %c0_6 = arith.constant 0 : index
    %c0_7 = arith.constant 0 : index
    %12 = vector.load %arg4[%c0_6, %c0_7] : memref<1024x128xf32, #tpu.memory_space<vmem>>, vector<1024x128xf32>
    tpu.vector_store %arg4[%c0_6, %c0_7], %11 {strides = array<i32>} : memref<1024x128xf32, #tpu.memory_space<vmem>>, vector<1024x128xf32>,
    return
  }
  func.func @transform_0(%arg0: i32) -> (i32, i32) {
    %c0_i32 = arith.constant 0 : i32
    %c0_i32_0 = arith.constant 0 : i32
    return %arg0, %c0_i32 : i32, i32
  }
  func.func @transform_1(%arg0: i32) -> (i32, i32) {
    %c0_i32 = arith.constant 0 : i32
    %c0_i32_0 = arith.constant 0 : i32
    %c0_i32_1 = arith.constant 0 : i32
    return %c0_i32, %c0_i32_0 : i32, i32
  }
  func.func @transform_2(%arg0: i32) -> (i32, i32) {
    %c0_i32 = arith.constant 0 : i32
    %c0_i32_0 = arith.constant 0 : i32
    %c0_i32_1 = arith.constant 0 : i32
    return %c0_i32, %c0_i32_0 : i32, i32
  }
  func.func @transform_3(%arg0: i32) -> (i32, i32) {
    %c0_i32 = arith.constant 0 : i32
    %c0_i32_0 = arith.constant 0 : i32
    return %arg0, %c0_i32 : i32, i32
  }
}

module attributes {stable_mosaic.version = 11 : i64} {
  func.func @_conv_stats_kernel(%arg0: i32, %arg1: memref<256x128xbf16, #tpu.memory_space<vmem>>, %arg2: memref<128x128xbf16, #tpu.memory_space<vmem>>, %arg3: memref<1x128xf32, #tpu.memory_space<vmem>>, %arg4: memref<256x128xf32, #tpu.memory_space<vmem>>, %arg5: memref<8x128xf32, #tpu.memory_space<vmem>>, %arg6: memref<8x128xf32, #tpu.memory_space<vmem>>) attributes {dimension_semantics = [#tpu.dimension_semantics<parallel>], iteration_bounds = array<i64: 2>, scalar_prefetch = 0 : i64, scratch_operands = 0 : i64, tpu.core_type = #tpu.core_type<tc>, window_params = [{transform_indices = @transform_0, window_bounds = array<i64: 256, 128>}, {pipeline_mode = #tpu.pipeline_mode<synchronous>, transform_indices = @transform_1, window_bounds = array<i64: 128, 128>}, {pipeline_mode = #tpu.pipeline_mode<synchronous>, transform_indices = @transform_2, window_bounds = array<i64: 1, 128>}, {transform_indices = @transform_3, window_bounds = array<i64: 256, 128>}, {transform_indices = @transform_4, window_bounds = array<i64: 8, 128>}, {transform_indices = @transform_5, window_bounds = array<i64: 8, 128>}]} {
    %c0 = arith.constant 0 : index
    %c0_0 = arith.constant 0 : index
    %0 = vector.load %arg1[%c0, %c0_0] : memref<256x128xbf16, #tpu.memory_space<vmem>>, vector<256x128xbf16>
    %c0_1 = arith.constant 0 : index
    %c0_2 = arith.constant 0 : index
    %1 = vector.load %arg2[%c0_1, %c0_2] : memref<128x128xbf16, #tpu.memory_space<vmem>>, vector<128x128xbf16>
    %cst = arith.constant dense<0.000000e+00> : vector<256x128xf32>
    %2 = tpu.matmul %0, %1, %cst {dimension_numbers = #tpu.dot_dimension_numbers<[1], [0], [0], [1], [0, 0, 1, 1], [], []>} : vector<256x128xbf16>, vector<128x128xbf16>, vector<256x128xf32> -> vector<256x128xf32>
    %c0_3 = arith.constant 0 : index
    %c0_4 = arith.constant 0 : index
    %3 = vector.load %arg3[%c0_3, %c0_4] : memref<1x128xf32, #tpu.memory_space<vmem>>, vector<1x128xf32>
    %4 = vector.broadcast %3 : vector<1x128xf32> to vector<256x128xf32>
    %5 = arith.addf %2, %4 : vector<256x128xf32>
    %c0_5 = arith.constant 0 : index
    %c0_6 = arith.constant 0 : index
    %6 = vector.load %arg4[%c0_5, %c0_6] : memref<256x128xf32, #tpu.memory_space<vmem>>, vector<256x128xf32>
    tpu.vector_store %arg4[%c0_5, %c0_6], %5 {strides = array<i32>} : memref<256x128xf32, #tpu.memory_space<vmem>>, vector<256x128xf32>,
    %cst_7 = arith.constant dense<0.000000e+00> : vector<128xf32>
    %7 = vector.multi_reduction <add>, %5, %cst_7 [0] : vector<256x128xf32> to vector<128xf32>
    %8 = vector.shape_cast %7 : vector<128xf32> to vector<1x128xf32>
    %9 = vector.shape_cast %8 : vector<1x128xf32> to vector<1x128xf32>
    %10 = vector.broadcast %9 : vector<1x128xf32> to vector<8x128xf32>
    %c0_8 = arith.constant 0 : index
    %c0_9 = arith.constant 0 : index
    %11 = vector.load %arg5[%c0_8, %c0_9] : memref<8x128xf32, #tpu.memory_space<vmem>>, vector<8x128xf32>
    tpu.vector_store %arg5[%c0_8, %c0_9], %10 {strides = array<i32>} : memref<8x128xf32, #tpu.memory_space<vmem>>, vector<8x128xf32>,
    %12 = arith.mulf %5, %5 : vector<256x128xf32>
    %cst_10 = arith.constant dense<0.000000e+00> : vector<128xf32>
    %13 = vector.multi_reduction <add>, %12, %cst_10 [0] : vector<256x128xf32> to vector<128xf32>
    %14 = vector.shape_cast %13 : vector<128xf32> to vector<1x128xf32>
    %15 = vector.shape_cast %14 : vector<1x128xf32> to vector<1x128xf32>
    %16 = vector.broadcast %15 : vector<1x128xf32> to vector<8x128xf32>
    %c0_11 = arith.constant 0 : index
    %c0_12 = arith.constant 0 : index
    %17 = vector.load %arg6[%c0_11, %c0_12] : memref<8x128xf32, #tpu.memory_space<vmem>>, vector<8x128xf32>
    tpu.vector_store %arg6[%c0_11, %c0_12], %16 {strides = array<i32>} : memref<8x128xf32, #tpu.memory_space<vmem>>, vector<8x128xf32>,
    return
  }
  func.func @transform_0(%arg0: i32) -> (i32, i32) {
    %c0_i32 = arith.constant 0 : i32
    %c0_i32_0 = arith.constant 0 : i32
    return %arg0, %c0_i32 : i32, i32
  }
  func.func @transform_1(%arg0: i32) -> (i32, i32) {
    %c0_i32 = arith.constant 0 : i32
    %c0_i32_0 = arith.constant 0 : i32
    %c0_i32_1 = arith.constant 0 : i32
    return %c0_i32, %c0_i32_0 : i32, i32
  }
  func.func @transform_2(%arg0: i32) -> (i32, i32) {
    %c0_i32 = arith.constant 0 : i32
    %c0_i32_0 = arith.constant 0 : i32
    %c0_i32_1 = arith.constant 0 : i32
    return %c0_i32, %c0_i32_0 : i32, i32
  }
  func.func @transform_3(%arg0: i32) -> (i32, i32) {
    %c0_i32 = arith.constant 0 : i32
    %c0_i32_0 = arith.constant 0 : i32
    return %arg0, %c0_i32 : i32, i32
  }
  func.func @transform_4(%arg0: i32) -> (i32, i32) {
    %c0_i32 = arith.constant 0 : i32
    %c0_i32_0 = arith.constant 0 : i32
    return %arg0, %c0_i32 : i32, i32
  }
  func.func @transform_5(%arg0: i32) -> (i32, i32) {
    %c0_i32 = arith.constant 0 : i32
    %c0_i32_0 = arith.constant 0 : i32
    return %arg0, %c0_i32 : i32, i32
  }
}

module attributes {stable_mosaic.version = 11 : i64} {
  func.func @_bn_lrelu_kernel(%arg0: i32, %arg1: memref<256x128xf32, #tpu.memory_space<vmem>>, %arg2: memref<1x128xf32, #tpu.memory_space<vmem>>, %arg3: memref<1x128xf32, #tpu.memory_space<vmem>>, %arg4: memref<256x128xf32, #tpu.memory_space<vmem>>) attributes {dimension_semantics = [#tpu.dimension_semantics<parallel>], iteration_bounds = array<i64: 2>, scalar_prefetch = 0 : i64, scratch_operands = 0 : i64, tpu.core_type = #tpu.core_type<tc>, window_params = [{transform_indices = @transform_0, window_bounds = array<i64: 256, 128>}, {pipeline_mode = #tpu.pipeline_mode<synchronous>, transform_indices = @transform_1, window_bounds = array<i64: 1, 128>}, {pipeline_mode = #tpu.pipeline_mode<synchronous>, transform_indices = @transform_2, window_bounds = array<i64: 1, 128>}, {transform_indices = @transform_3, window_bounds = array<i64: 256, 128>}]} {
    %c0 = arith.constant 0 : index
    %c0_0 = arith.constant 0 : index
    %0 = vector.load %arg1[%c0, %c0_0] : memref<256x128xf32, #tpu.memory_space<vmem>>, vector<256x128xf32>
    %c0_1 = arith.constant 0 : index
    %c0_2 = arith.constant 0 : index
    %1 = vector.load %arg2[%c0_1, %c0_2] : memref<1x128xf32, #tpu.memory_space<vmem>>, vector<1x128xf32>
    %2 = vector.broadcast %1 : vector<1x128xf32> to vector<256x128xf32>
    %3 = arith.mulf %0, %2 : vector<256x128xf32>
    %c0_3 = arith.constant 0 : index
    %c0_4 = arith.constant 0 : index
    %4 = vector.load %arg3[%c0_3, %c0_4] : memref<1x128xf32, #tpu.memory_space<vmem>>, vector<1x128xf32>
    %5 = vector.broadcast %4 : vector<1x128xf32> to vector<256x128xf32>
    %6 = arith.addf %3, %5 : vector<256x128xf32>
    %cst = arith.constant 0.000000e+00 : f32
    %7 = vector.broadcast %cst : f32 to vector<256x128xf32>
    %8 = arith.cmpf oge, %6, %7 : vector<256x128xf32>
    %cst_5 = arith.constant 2.000000e-01 : f32
    %9 = vector.broadcast %cst_5 : f32 to vector<256x128xf32>
    %10 = arith.mulf %9, %6 : vector<256x128xf32>
    %11 = arith.select %8, %6, %10 : vector<256x128xi1>, vector<256x128xf32>
    %c0_6 = arith.constant 0 : index
    %c0_7 = arith.constant 0 : index
    %12 = vector.load %arg4[%c0_6, %c0_7] : memref<256x128xf32, #tpu.memory_space<vmem>>, vector<256x128xf32>
    tpu.vector_store %arg4[%c0_6, %c0_7], %11 {strides = array<i32>} : memref<256x128xf32, #tpu.memory_space<vmem>>, vector<256x128xf32>,
    return
  }
  func.func @transform_0(%arg0: i32) -> (i32, i32) {
    %c0_i32 = arith.constant 0 : i32
    %c0_i32_0 = arith.constant 0 : i32
    return %arg0, %c0_i32 : i32, i32
  }
  func.func @transform_1(%arg0: i32) -> (i32, i32) {
    %c0_i32 = arith.constant 0 : i32
    %c0_i32_0 = arith.constant 0 : i32
    %c0_i32_1 = arith.constant 0 : i32
    return %c0_i32, %c0_i32_0 : i32, i32
  }
  func.func @transform_2(%arg0: i32) -> (i32, i32) {
    %c0_i32 = arith.constant 0 : i32
    %c0_i32_0 = arith.constant 0 : i32
    %c0_i32_1 = arith.constant 0 : i32
    return %c0_i32, %c0_i32_0 : i32, i32
  }
  func.func @transform_3(%arg0: i32) -> (i32, i32) {
    %c0_i32 = arith.constant 0 : i32
    %c0_i32_0 = arith.constant 0 : i32
    return %arg0, %c0_i32 : i32, i32
  }
}

module attributes {stable_mosaic.version = 11 : i64} {
  func.func @_conv_stats_kernel(%arg0: i32, %arg1: memref<64x256xbf16, #tpu.memory_space<vmem>>, %arg2: memref<256x128xbf16, #tpu.memory_space<vmem>>, %arg3: memref<1x128xf32, #tpu.memory_space<vmem>>, %arg4: memref<64x128xf32, #tpu.memory_space<vmem>>, %arg5: memref<8x128xf32, #tpu.memory_space<vmem>>, %arg6: memref<8x128xf32, #tpu.memory_space<vmem>>) attributes {dimension_semantics = [#tpu.dimension_semantics<parallel>], iteration_bounds = array<i64: 2>, scalar_prefetch = 0 : i64, scratch_operands = 0 : i64, tpu.core_type = #tpu.core_type<tc>, window_params = [{transform_indices = @transform_0, window_bounds = array<i64: 64, 256>}, {pipeline_mode = #tpu.pipeline_mode<synchronous>, transform_indices = @transform_1, window_bounds = array<i64: 256, 128>}, {pipeline_mode = #tpu.pipeline_mode<synchronous>, transform_indices = @transform_2, window_bounds = array<i64: 1, 128>}, {transform_indices = @transform_3, window_bounds = array<i64: 64, 128>}, {transform_indices = @transform_4, window_bounds = array<i64: 8, 128>}, {transform_indices = @transform_5, window_bounds = array<i64: 8, 128>}]} {
    %c0 = arith.constant 0 : index
    %c0_0 = arith.constant 0 : index
    %0 = vector.load %arg1[%c0, %c0_0] : memref<64x256xbf16, #tpu.memory_space<vmem>>, vector<64x256xbf16>
    %c0_1 = arith.constant 0 : index
    %c0_2 = arith.constant 0 : index
    %1 = vector.load %arg2[%c0_1, %c0_2] : memref<256x128xbf16, #tpu.memory_space<vmem>>, vector<256x128xbf16>
    %cst = arith.constant dense<0.000000e+00> : vector<64x128xf32>
    %2 = tpu.matmul %0, %1, %cst {dimension_numbers = #tpu.dot_dimension_numbers<[1], [0], [0], [1], [0, 0, 1, 1], [], []>} : vector<64x256xbf16>, vector<256x128xbf16>, vector<64x128xf32> -> vector<64x128xf32>
    %c0_3 = arith.constant 0 : index
    %c0_4 = arith.constant 0 : index
    %3 = vector.load %arg3[%c0_3, %c0_4] : memref<1x128xf32, #tpu.memory_space<vmem>>, vector<1x128xf32>
    %4 = vector.broadcast %3 : vector<1x128xf32> to vector<64x128xf32>
    %5 = arith.addf %2, %4 : vector<64x128xf32>
    %c0_5 = arith.constant 0 : index
    %c0_6 = arith.constant 0 : index
    %6 = vector.load %arg4[%c0_5, %c0_6] : memref<64x128xf32, #tpu.memory_space<vmem>>, vector<64x128xf32>
    tpu.vector_store %arg4[%c0_5, %c0_6], %5 {strides = array<i32>} : memref<64x128xf32, #tpu.memory_space<vmem>>, vector<64x128xf32>,
    %cst_7 = arith.constant dense<0.000000e+00> : vector<128xf32>
    %7 = vector.multi_reduction <add>, %5, %cst_7 [0] : vector<64x128xf32> to vector<128xf32>
    %8 = vector.shape_cast %7 : vector<128xf32> to vector<1x128xf32>
    %9 = vector.shape_cast %8 : vector<1x128xf32> to vector<1x128xf32>
    %10 = vector.broadcast %9 : vector<1x128xf32> to vector<8x128xf32>
    %c0_8 = arith.constant 0 : index
    %c0_9 = arith.constant 0 : index
    %11 = vector.load %arg5[%c0_8, %c0_9] : memref<8x128xf32, #tpu.memory_space<vmem>>, vector<8x128xf32>
    tpu.vector_store %arg5[%c0_8, %c0_9], %10 {strides = array<i32>} : memref<8x128xf32, #tpu.memory_space<vmem>>, vector<8x128xf32>,
    %12 = arith.mulf %5, %5 : vector<64x128xf32>
    %cst_10 = arith.constant dense<0.000000e+00> : vector<128xf32>
    %13 = vector.multi_reduction <add>, %12, %cst_10 [0] : vector<64x128xf32> to vector<128xf32>
    %14 = vector.shape_cast %13 : vector<128xf32> to vector<1x128xf32>
    %15 = vector.shape_cast %14 : vector<1x128xf32> to vector<1x128xf32>
    %16 = vector.broadcast %15 : vector<1x128xf32> to vector<8x128xf32>
    %c0_11 = arith.constant 0 : index
    %c0_12 = arith.constant 0 : index
    %17 = vector.load %arg6[%c0_11, %c0_12] : memref<8x128xf32, #tpu.memory_space<vmem>>, vector<8x128xf32>
    tpu.vector_store %arg6[%c0_11, %c0_12], %16 {strides = array<i32>} : memref<8x128xf32, #tpu.memory_space<vmem>>, vector<8x128xf32>,
    return
  }
  func.func @transform_0(%arg0: i32) -> (i32, i32) {
    %c0_i32 = arith.constant 0 : i32
    %c0_i32_0 = arith.constant 0 : i32
    return %arg0, %c0_i32 : i32, i32
  }
  func.func @transform_1(%arg0: i32) -> (i32, i32) {
    %c0_i32 = arith.constant 0 : i32
    %c0_i32_0 = arith.constant 0 : i32
    %c0_i32_1 = arith.constant 0 : i32
    return %c0_i32, %c0_i32_0 : i32, i32
  }
  func.func @transform_2(%arg0: i32) -> (i32, i32) {
    %c0_i32 = arith.constant 0 : i32
    %c0_i32_0 = arith.constant 0 : i32
    %c0_i32_1 = arith.constant 0 : i32
    return %c0_i32, %c0_i32_0 : i32, i32
  }
  func.func @transform_3(%arg0: i32) -> (i32, i32) {
    %c0_i32 = arith.constant 0 : i32
    %c0_i32_0 = arith.constant 0 : i32
    return %arg0, %c0_i32 : i32, i32
  }
  func.func @transform_4(%arg0: i32) -> (i32, i32) {
    %c0_i32 = arith.constant 0 : i32
    %c0_i32_0 = arith.constant 0 : i32
    return %arg0, %c0_i32 : i32, i32
  }
  func.func @transform_5(%arg0: i32) -> (i32, i32) {
    %c0_i32 = arith.constant 0 : i32
    %c0_i32_0 = arith.constant 0 : i32
    return %arg0, %c0_i32 : i32, i32
  }
}

module attributes {stable_mosaic.version = 11 : i64} {
  func.func @_bn_lrelu_kernel(%arg0: i32, %arg1: memref<64x128xf32, #tpu.memory_space<vmem>>, %arg2: memref<1x128xf32, #tpu.memory_space<vmem>>, %arg3: memref<1x128xf32, #tpu.memory_space<vmem>>, %arg4: memref<64x128xf32, #tpu.memory_space<vmem>>) attributes {dimension_semantics = [#tpu.dimension_semantics<parallel>], iteration_bounds = array<i64: 2>, scalar_prefetch = 0 : i64, scratch_operands = 0 : i64, tpu.core_type = #tpu.core_type<tc>, window_params = [{transform_indices = @transform_0, window_bounds = array<i64: 64, 128>}, {pipeline_mode = #tpu.pipeline_mode<synchronous>, transform_indices = @transform_1, window_bounds = array<i64: 1, 128>}, {pipeline_mode = #tpu.pipeline_mode<synchronous>, transform_indices = @transform_2, window_bounds = array<i64: 1, 128>}, {transform_indices = @transform_3, window_bounds = array<i64: 64, 128>}]} {
    %c0 = arith.constant 0 : index
    %c0_0 = arith.constant 0 : index
    %0 = vector.load %arg1[%c0, %c0_0] : memref<64x128xf32, #tpu.memory_space<vmem>>, vector<64x128xf32>
    %c0_1 = arith.constant 0 : index
    %c0_2 = arith.constant 0 : index
    %1 = vector.load %arg2[%c0_1, %c0_2] : memref<1x128xf32, #tpu.memory_space<vmem>>, vector<1x128xf32>
    %2 = vector.broadcast %1 : vector<1x128xf32> to vector<64x128xf32>
    %3 = arith.mulf %0, %2 : vector<64x128xf32>
    %c0_3 = arith.constant 0 : index
    %c0_4 = arith.constant 0 : index
    %4 = vector.load %arg3[%c0_3, %c0_4] : memref<1x128xf32, #tpu.memory_space<vmem>>, vector<1x128xf32>
    %5 = vector.broadcast %4 : vector<1x128xf32> to vector<64x128xf32>
    %6 = arith.addf %3, %5 : vector<64x128xf32>
    %cst = arith.constant 0.000000e+00 : f32
    %7 = vector.broadcast %cst : f32 to vector<64x128xf32>
    %8 = arith.cmpf oge, %6, %7 : vector<64x128xf32>
    %cst_5 = arith.constant 2.000000e-01 : f32
    %9 = vector.broadcast %cst_5 : f32 to vector<64x128xf32>
    %10 = arith.mulf %9, %6 : vector<64x128xf32>
    %11 = arith.select %8, %6, %10 : vector<64x128xi1>, vector<64x128xf32>
    %c0_6 = arith.constant 0 : index
    %c0_7 = arith.constant 0 : index
    %12 = vector.load %arg4[%c0_6, %c0_7] : memref<64x128xf32, #tpu.memory_space<vmem>>, vector<64x128xf32>
    tpu.vector_store %arg4[%c0_6, %c0_7], %11 {strides = array<i32>} : memref<64x128xf32, #tpu.memory_space<vmem>>, vector<64x128xf32>,
    return
  }
  func.func @transform_0(%arg0: i32) -> (i32, i32) {
    %c0_i32 = arith.constant 0 : i32
    %c0_i32_0 = arith.constant 0 : i32
    return %arg0, %c0_i32 : i32, i32
  }
  func.func @transform_1(%arg0: i32) -> (i32, i32) {
    %c0_i32 = arith.constant 0 : i32
    %c0_i32_0 = arith.constant 0 : i32
    %c0_i32_1 = arith.constant 0 : i32
    return %c0_i32, %c0_i32_0 : i32, i32
  }
  func.func @transform_2(%arg0: i32) -> (i32, i32) {
    %c0_i32 = arith.constant 0 : i32
    %c0_i32_0 = arith.constant 0 : i32
    %c0_i32_1 = arith.constant 0 : i32
    return %c0_i32, %c0_i32_0 : i32, i32
  }
  func.func @transform_3(%arg0: i32) -> (i32, i32) {
    %c0_i32 = arith.constant 0 : i32
    %c0_i32_0 = arith.constant 0 : i32
    return %arg0, %c0_i32 : i32, i32
  }
}

module attributes {stable_mosaic.version = 11 : i64} {
  func.func @_conv_stats_kernel(%arg0: i32, %arg1: memref<16x512xbf16, #tpu.memory_space<vmem>>, %arg2: memref<512x128xbf16, #tpu.memory_space<vmem>>, %arg3: memref<1x128xf32, #tpu.memory_space<vmem>>, %arg4: memref<16x128xf32, #tpu.memory_space<vmem>>, %arg5: memref<8x128xf32, #tpu.memory_space<vmem>>, %arg6: memref<8x128xf32, #tpu.memory_space<vmem>>) attributes {dimension_semantics = [#tpu.dimension_semantics<parallel>], iteration_bounds = array<i64: 2>, scalar_prefetch = 0 : i64, scratch_operands = 0 : i64, tpu.core_type = #tpu.core_type<tc>, window_params = [{transform_indices = @transform_0, window_bounds = array<i64: 16, 512>}, {pipeline_mode = #tpu.pipeline_mode<synchronous>, transform_indices = @transform_1, window_bounds = array<i64: 512, 128>}, {pipeline_mode = #tpu.pipeline_mode<synchronous>, transform_indices = @transform_2, window_bounds = array<i64: 1, 128>}, {transform_indices = @transform_3, window_bounds = array<i64: 16, 128>}, {transform_indices = @transform_4, window_bounds = array<i64: 8, 128>}, {transform_indices = @transform_5, window_bounds = array<i64: 8, 128>}]} {
    %c0 = arith.constant 0 : index
    %c0_0 = arith.constant 0 : index
    %0 = vector.load %arg1[%c0, %c0_0] : memref<16x512xbf16, #tpu.memory_space<vmem>>, vector<16x512xbf16>
    %c0_1 = arith.constant 0 : index
    %c0_2 = arith.constant 0 : index
    %1 = vector.load %arg2[%c0_1, %c0_2] : memref<512x128xbf16, #tpu.memory_space<vmem>>, vector<512x128xbf16>
    %cst = arith.constant dense<0.000000e+00> : vector<16x128xf32>
    %2 = tpu.matmul %0, %1, %cst {dimension_numbers = #tpu.dot_dimension_numbers<[1], [0], [0], [1], [0, 0, 1, 1], [], []>} : vector<16x512xbf16>, vector<512x128xbf16>, vector<16x128xf32> -> vector<16x128xf32>
    %c0_3 = arith.constant 0 : index
    %c0_4 = arith.constant 0 : index
    %3 = vector.load %arg3[%c0_3, %c0_4] : memref<1x128xf32, #tpu.memory_space<vmem>>, vector<1x128xf32>
    %4 = vector.broadcast %3 : vector<1x128xf32> to vector<16x128xf32>
    %5 = arith.addf %2, %4 : vector<16x128xf32>
    %c0_5 = arith.constant 0 : index
    %c0_6 = arith.constant 0 : index
    %6 = vector.load %arg4[%c0_5, %c0_6] : memref<16x128xf32, #tpu.memory_space<vmem>>, vector<16x128xf32>
    tpu.vector_store %arg4[%c0_5, %c0_6], %5 {strides = array<i32>} : memref<16x128xf32, #tpu.memory_space<vmem>>, vector<16x128xf32>,
    %cst_7 = arith.constant dense<0.000000e+00> : vector<128xf32>
    %7 = vector.multi_reduction <add>, %5, %cst_7 [0] : vector<16x128xf32> to vector<128xf32>
    %8 = vector.shape_cast %7 : vector<128xf32> to vector<1x128xf32>
    %9 = vector.shape_cast %8 : vector<1x128xf32> to vector<1x128xf32>
    %10 = vector.broadcast %9 : vector<1x128xf32> to vector<8x128xf32>
    %c0_8 = arith.constant 0 : index
    %c0_9 = arith.constant 0 : index
    %11 = vector.load %arg5[%c0_8, %c0_9] : memref<8x128xf32, #tpu.memory_space<vmem>>, vector<8x128xf32>
    tpu.vector_store %arg5[%c0_8, %c0_9], %10 {strides = array<i32>} : memref<8x128xf32, #tpu.memory_space<vmem>>, vector<8x128xf32>,
    %12 = arith.mulf %5, %5 : vector<16x128xf32>
    %cst_10 = arith.constant dense<0.000000e+00> : vector<128xf32>
    %13 = vector.multi_reduction <add>, %12, %cst_10 [0] : vector<16x128xf32> to vector<128xf32>
    %14 = vector.shape_cast %13 : vector<128xf32> to vector<1x128xf32>
    %15 = vector.shape_cast %14 : vector<1x128xf32> to vector<1x128xf32>
    %16 = vector.broadcast %15 : vector<1x128xf32> to vector<8x128xf32>
    %c0_11 = arith.constant 0 : index
    %c0_12 = arith.constant 0 : index
    %17 = vector.load %arg6[%c0_11, %c0_12] : memref<8x128xf32, #tpu.memory_space<vmem>>, vector<8x128xf32>
    tpu.vector_store %arg6[%c0_11, %c0_12], %16 {strides = array<i32>} : memref<8x128xf32, #tpu.memory_space<vmem>>, vector<8x128xf32>,
    return
  }
  func.func @transform_0(%arg0: i32) -> (i32, i32) {
    %c0_i32 = arith.constant 0 : i32
    %c0_i32_0 = arith.constant 0 : i32
    return %arg0, %c0_i32 : i32, i32
  }
  func.func @transform_1(%arg0: i32) -> (i32, i32) {
    %c0_i32 = arith.constant 0 : i32
    %c0_i32_0 = arith.constant 0 : i32
    %c0_i32_1 = arith.constant 0 : i32
    return %c0_i32, %c0_i32_0 : i32, i32
  }
  func.func @transform_2(%arg0: i32) -> (i32, i32) {
    %c0_i32 = arith.constant 0 : i32
    %c0_i32_0 = arith.constant 0 : i32
    %c0_i32_1 = arith.constant 0 : i32
    return %c0_i32, %c0_i32_0 : i32, i32
  }
  func.func @transform_3(%arg0: i32) -> (i32, i32) {
    %c0_i32 = arith.constant 0 : i32
    %c0_i32_0 = arith.constant 0 : i32
    return %arg0, %c0_i32 : i32, i32
  }
  func.func @transform_4(%arg0: i32) -> (i32, i32) {
    %c0_i32 = arith.constant 0 : i32
    %c0_i32_0 = arith.constant 0 : i32
    return %arg0, %c0_i32 : i32, i32
  }
  func.func @transform_5(%arg0: i32) -> (i32, i32) {
    %c0_i32 = arith.constant 0 : i32
    %c0_i32_0 = arith.constant 0 : i32
    return %arg0, %c0_i32 : i32, i32
  }
}

module attributes {stable_mosaic.version = 11 : i64} {
  func.func @_bn_lrelu_kernel(%arg0: i32, %arg1: memref<16x128xf32, #tpu.memory_space<vmem>>, %arg2: memref<1x128xf32, #tpu.memory_space<vmem>>, %arg3: memref<1x128xf32, #tpu.memory_space<vmem>>, %arg4: memref<16x128xf32, #tpu.memory_space<vmem>>) attributes {dimension_semantics = [#tpu.dimension_semantics<parallel>], iteration_bounds = array<i64: 2>, scalar_prefetch = 0 : i64, scratch_operands = 0 : i64, tpu.core_type = #tpu.core_type<tc>, window_params = [{transform_indices = @transform_0, window_bounds = array<i64: 16, 128>}, {pipeline_mode = #tpu.pipeline_mode<synchronous>, transform_indices = @transform_1, window_bounds = array<i64: 1, 128>}, {pipeline_mode = #tpu.pipeline_mode<synchronous>, transform_indices = @transform_2, window_bounds = array<i64: 1, 128>}, {transform_indices = @transform_3, window_bounds = array<i64: 16, 128>}]} {
    %c0 = arith.constant 0 : index
    %c0_0 = arith.constant 0 : index
    %0 = vector.load %arg1[%c0, %c0_0] : memref<16x128xf32, #tpu.memory_space<vmem>>, vector<16x128xf32>
    %c0_1 = arith.constant 0 : index
    %c0_2 = arith.constant 0 : index
    %1 = vector.load %arg2[%c0_1, %c0_2] : memref<1x128xf32, #tpu.memory_space<vmem>>, vector<1x128xf32>
    %2 = vector.broadcast %1 : vector<1x128xf32> to vector<16x128xf32>
    %3 = arith.mulf %0, %2 : vector<16x128xf32>
    %c0_3 = arith.constant 0 : index
    %c0_4 = arith.constant 0 : index
    %4 = vector.load %arg3[%c0_3, %c0_4] : memref<1x128xf32, #tpu.memory_space<vmem>>, vector<1x128xf32>
    %5 = vector.broadcast %4 : vector<1x128xf32> to vector<16x128xf32>
    %6 = arith.addf %3, %5 : vector<16x128xf32>
    %cst = arith.constant 0.000000e+00 : f32
    %7 = vector.broadcast %cst : f32 to vector<16x128xf32>
    %8 = arith.cmpf oge, %6, %7 : vector<16x128xf32>
    %cst_5 = arith.constant 2.000000e-01 : f32
    %9 = vector.broadcast %cst_5 : f32 to vector<16x128xf32>
    %10 = arith.mulf %9, %6 : vector<16x128xf32>
    %11 = arith.select %8, %6, %10 : vector<16x128xi1>, vector<16x128xf32>
    %c0_6 = arith.constant 0 : index
    %c0_7 = arith.constant 0 : index
    %12 = vector.load %arg4[%c0_6, %c0_7] : memref<16x128xf32, #tpu.memory_space<vmem>>, vector<16x128xf32>
    tpu.vector_store %arg4[%c0_6, %c0_7], %11 {strides = array<i32>} : memref<16x128xf32, #tpu.memory_space<vmem>>, vector<16x128xf32>,
    return
  }
  func.func @transform_0(%arg0: i32) -> (i32, i32) {
    %c0_i32 = arith.constant 0 : i32
    %c0_i32_0 = arith.constant 0 : i32
    return %arg0, %c0_i32 : i32, i32
  }
  func.func @transform_1(%arg0: i32) -> (i32, i32) {
    %c0_i32 = arith.constant 0 : i32
    %c0_i32_0 = arith.constant 0 : i32
    %c0_i32_1 = arith.constant 0 : i32
    return %c0_i32, %c0_i32_0 : i32, i32
  }
  func.func @transform_2(%arg0: i32) -> (i32, i32) {
    %c0_i32 = arith.constant 0 : i32
    %c0_i32_0 = arith.constant 0 : i32
    %c0_i32_1 = arith.constant 0 : i32
    return %c0_i32, %c0_i32_0 : i32, i32
  }
  func.func @transform_3(%arg0: i32) -> (i32, i32) {
    %c0_i32 = arith.constant 0 : i32
    %c0_i32_0 = arith.constant 0 : i32
    return %arg0, %c0_i32 : i32, i32
  }
}

module attributes {stable_mosaic.version = 11 : i64} {
  func.func @_conv_stats_kernel(%arg0: i32, %arg1: memref<8x1024xbf16, #tpu.memory_space<vmem>>, %arg2: memref<1024x128xbf16, #tpu.memory_space<vmem>>, %arg3: memref<1x128xf32, #tpu.memory_space<vmem>>, %arg4: memref<8x128xf32, #tpu.memory_space<vmem>>, %arg5: memref<8x128xf32, #tpu.memory_space<vmem>>, %arg6: memref<8x128xf32, #tpu.memory_space<vmem>>) attributes {dimension_semantics = [#tpu.dimension_semantics<parallel>], iteration_bounds = array<i64: 1>, scalar_prefetch = 0 : i64, scratch_operands = 0 : i64, tpu.core_type = #tpu.core_type<tc>, window_params = [{transform_indices = @transform_0, window_bounds = array<i64: 8, 1024>}, {pipeline_mode = #tpu.pipeline_mode<synchronous>, transform_indices = @transform_1, window_bounds = array<i64: 1024, 128>}, {pipeline_mode = #tpu.pipeline_mode<synchronous>, transform_indices = @transform_2, window_bounds = array<i64: 1, 128>}, {transform_indices = @transform_3, window_bounds = array<i64: 8, 128>}, {transform_indices = @transform_4, window_bounds = array<i64: 8, 128>}, {transform_indices = @transform_5, window_bounds = array<i64: 8, 128>}]} {
    %c0 = arith.constant 0 : index
    %c0_0 = arith.constant 0 : index
    %0 = vector.load %arg1[%c0, %c0_0] : memref<8x1024xbf16, #tpu.memory_space<vmem>>, vector<8x1024xbf16>
    %c0_1 = arith.constant 0 : index
    %c0_2 = arith.constant 0 : index
    %1 = vector.load %arg2[%c0_1, %c0_2] : memref<1024x128xbf16, #tpu.memory_space<vmem>>, vector<1024x128xbf16>
    %cst = arith.constant dense<0.000000e+00> : vector<8x128xf32>
    %2 = tpu.matmul %0, %1, %cst {dimension_numbers = #tpu.dot_dimension_numbers<[1], [0], [0], [1], [0, 0, 1, 1], [], []>} : vector<8x1024xbf16>, vector<1024x128xbf16>, vector<8x128xf32> -> vector<8x128xf32>
    %c0_3 = arith.constant 0 : index
    %c0_4 = arith.constant 0 : index
    %3 = vector.load %arg3[%c0_3, %c0_4] : memref<1x128xf32, #tpu.memory_space<vmem>>, vector<1x128xf32>
    %4 = vector.broadcast %3 : vector<1x128xf32> to vector<8x128xf32>
    %5 = arith.addf %2, %4 : vector<8x128xf32>
    %c0_5 = arith.constant 0 : index
    %c0_6 = arith.constant 0 : index
    %6 = vector.load %arg4[%c0_5, %c0_6] : memref<8x128xf32, #tpu.memory_space<vmem>>, vector<8x128xf32>
    tpu.vector_store %arg4[%c0_5, %c0_6], %5 {strides = array<i32>} : memref<8x128xf32, #tpu.memory_space<vmem>>, vector<8x128xf32>,
    %c8_i32 = arith.constant 8 : i32
    %7 = arith.muli %arg0, %c8_i32 : i32
    %8 = tpu.iota {dimensions = array<i32: 0>} : vector<8x128xi32>
    %9 = vector.broadcast %7 : i32 to vector<8x128xi32>
    %10 = arith.addi %9, %8 : vector<8x128xi32>
    %c2_i32 = arith.constant 2 : i32
    %11 = vector.broadcast %c2_i32 : i32 to vector<8x128xi32>
    %12 = arith.cmpi slt, %10, %11 : vector<8x128xi32>
    %cst_7 = arith.constant 0.000000e+00 : f32
    %13 = vector.broadcast %cst_7 : f32 to vector<8x128xf32>
    %14 = arith.select %12, %5, %13 : vector<8x128xi1>, vector<8x128xf32>
    %cst_8 = arith.constant dense<0.000000e+00> : vector<128xf32>
    %15 = vector.multi_reduction <add>, %14, %cst_8 [0] : vector<8x128xf32> to vector<128xf32>
    %16 = vector.shape_cast %15 : vector<128xf32> to vector<1x128xf32>
    %17 = vector.shape_cast %16 : vector<1x128xf32> to vector<1x128xf32>
    %18 = vector.broadcast %17 : vector<1x128xf32> to vector<8x128xf32>
    %c0_9 = arith.constant 0 : index
    %c0_10 = arith.constant 0 : index
    %19 = vector.load %arg5[%c0_9, %c0_10] : memref<8x128xf32, #tpu.memory_space<vmem>>, vector<8x128xf32>
    tpu.vector_store %arg5[%c0_9, %c0_10], %18 {strides = array<i32>} : memref<8x128xf32, #tpu.memory_space<vmem>>, vector<8x128xf32>,
    %20 = arith.mulf %14, %14 : vector<8x128xf32>
    %cst_11 = arith.constant dense<0.000000e+00> : vector<128xf32>
    %21 = vector.multi_reduction <add>, %20, %cst_11 [0] : vector<8x128xf32> to vector<128xf32>
    %22 = vector.shape_cast %21 : vector<128xf32> to vector<1x128xf32>
    %23 = vector.shape_cast %22 : vector<1x128xf32> to vector<1x128xf32>
    %24 = vector.broadcast %23 : vector<1x128xf32> to vector<8x128xf32>
    %c0_12 = arith.constant 0 : index
    %c0_13 = arith.constant 0 : index
    %25 = vector.load %arg6[%c0_12, %c0_13] : memref<8x128xf32, #tpu.memory_space<vmem>>, vector<8x128xf32>
    tpu.vector_store %arg6[%c0_12, %c0_13], %24 {strides = array<i32>} : memref<8x128xf32, #tpu.memory_space<vmem>>, vector<8x128xf32>,
    return
  }
  func.func @transform_0(%arg0: i32) -> (i32, i32) {
    %c0_i32 = arith.constant 0 : i32
    %c0_i32_0 = arith.constant 0 : i32
    return %arg0, %c0_i32 : i32, i32
  }
  func.func @transform_1(%arg0: i32) -> (i32, i32) {
    %c0_i32 = arith.constant 0 : i32
    %c0_i32_0 = arith.constant 0 : i32
    %c0_i32_1 = arith.constant 0 : i32
    return %c0_i32, %c0_i32_0 : i32, i32
  }
  func.func @transform_2(%arg0: i32) -> (i32, i32) {
    %c0_i32 = arith.constant 0 : i32
    %c0_i32_0 = arith.constant 0 : i32
    %c0_i32_1 = arith.constant 0 : i32
    return %c0_i32, %c0_i32_0 : i32, i32
  }
  func.func @transform_3(%arg0: i32) -> (i32, i32) {
    %c0_i32 = arith.constant 0 : i32
    %c0_i32_0 = arith.constant 0 : i32
    return %arg0, %c0_i32 : i32, i32
  }
  func.func @transform_4(%arg0: i32) -> (i32, i32) {
    %c0_i32 = arith.constant 0 : i32
    %c0_i32_0 = arith.constant 0 : i32
    return %arg0, %c0_i32 : i32, i32
  }
  func.func @transform_5(%arg0: i32) -> (i32, i32) {
    %c0_i32 = arith.constant 0 : i32
    %c0_i32_0 = arith.constant 0 : i32
    return %arg0, %c0_i32 : i32, i32
  }
}

</mosaic_0001>

<bundles_post_ra>
// kernel: critic_forward.9
= control target key start
LH: loop header
LB: loop body
LE: loop exit
PB: predicated region body
PF: predicated region fallthrough
CT: control target
= control target key end

     0   :  { %s2464_s18 = smov 0   ;;  %s3203_s0 = inlined_call_operand.vmem [shape: bf16[2048,128], index: 0, kind: input, shape index: {}]   ;;  %s3204_s1 = inlined_call_operand.vmem [shape: bf16[128,128], index: 1, kind: input, shape index: {}]   ;;  %s3205_s2 = inlined_call_operand.vmem [shape: f32[1,128], index: 2, kind: input, shape index: {}]   ;;  %s3206_s3 = inlined_call_operand.vmem [shape: f32[2048,128], index: 3, kind: output, shape index: {0}]   ;;  %s3207_s4 = inlined_call_operand.vmem [shape: f32[16,128], index: 4, kind: output, shape index: {1}]   ;;  %s3208_s5 = inlined_call_operand.vmem [shape: f32[16,128], index: 5, kind: output, shape index: {2}]  }
   0x1 LB: > { %s2470_s19 = sadd.s32 4294967295, %s2432_s18   ;;  %p2024_p0 = scmp.ge.s32.totalorder %s2432_s18, 1  ;;  %s2432_s18 = sphi %s2464_s18, %s16_s18  }
   0x2   : > { %p193_p1 = scmp.lt.s32.totalorder %s2432_s18, 3 }
   0x4   : > { %p194_p2 = pnand %p2024_p0, %p193_p1 }
   0x6   : > { %197 = sbr.rel (%p194_p2) target bundleno = 514 (0x202), region = 32 }
   0xb   : > { %v2346_v0 = vld [vmem:[%s3204_s1 + $0x38] sm:$0xff]   ;;  %s2025_s22 = sshll.u32 %s2470_s19, 7  ;;  %v2347_v1 = vld [vmem:[%s3204_s1 + $0x30] sm:$0xff]   ;;  %v2348_v2 = vld [vmem:[%s3204_s1 + $0x28] sm:$0xff]   ;;  %p241_p4 = scmp.lt.s32.totalorder %s2470_s19, 1 }
   0xc   : > { %p230_p3 = scmp.lt.s32.totalorder %s2025_s22, 255  ;;  %2178 = vmatprep.subr.bf16.mxu0 %v2346_v0  ;;  %2322 = vmatprep.subr.bf16.mxu1 %v2346_v0  ;;  %v2349_v3 = vld [vmem:[%s3204_s1 + $0x20] sm:$0xff]   ;;  %v2350_v5 = vld [vmem:[%s3204_s1 + $0x18] sm:$0xff]   ;;  %v2351_v6 = vld [vmem:[%s3204_s1 + $0x10] sm:$0xff]  }
   0xd   : > { %2179 = vmatpush3.bf16.msra.mxu0 %v2346_v0  ;;  %2330 = vmatpush3.bf16.msra.mxu1 %v2346_v0  ;;  %v2352_v7 = vld [vmem:[%s3204_s1 + $0x8] sm:$0xff]   ;;  %v2353_v8 = vld [vmem:[%s3204_s1] sm:$0xff]   ;;  %s3272_s19 = smov (!%p241_p4, %s2470_s19), 1 }
   0xe   : > { %s3270_s22 = smov (!%p230_p3, %s2025_s22), 255  ;;  %2180 = vmatprep.subr.bf16.mxu0 %v2347_v1  ;;  %2323 = vmatprep.subr.bf16.mxu1 %v2347_v1  ;;  %s2029_s26 = sshll.u32 %s3272_s19, 3 }
   0xf   : > { %s2026_s27 = sshll.u32 %s3270_s22, 2  ;;  %s2028_s16 = sshll.u32 %s3270_s22, 3 }
  0x10   : > { %s2490_s30 = scalar_lea.vmem %s3203_s0, %s2026_s27  ;;  %s2580_s24 = scalar_lea.vmem %s3206_s3, %s2028_s16 }
  0x11   : > { %2181 = vmatpush3.bf16.msra.mxu0 %v2347_v1  ;;  %2331 = vmatpush3.bf16.msra.mxu1 %v2347_v1  ;;  %v2354_v4 = vld [vmem:[%s2490_s30] sm:$0xff]   ;;  %v2355_v9 = vld [vmem:[%s2490_s30 + $0x8] sm:$0xff]   ;;  %v2356_v10 = vld [vmem:[%s2490_s30 + $0x10] sm:$0xff]   ;;  %s244_s29 = scalar_lea.vmem %s3207_s4, %s2029_s26  ;;  %s248_s7 = scalar_lea.vmem %s3208_s5, %s2029_s26 }
  0x12   : > { %2182 = vmatprep.subr.bf16.mxu0 %v2348_v2  ;;  %2324 = vmatprep.subr.bf16.mxu1 %v2348_v2  ;;  %v2357_v11 = vld [vmem:[%s2490_s30 + $0x18] sm:$0xff]   ;;  %v2358_v12 = vld [vmem:[%s2490_s30 + $0x20] sm:$0xff]   ;;  %v2387_v14 = vld [vmem:[%s2490_s30 + $0x108] sm:$0xff]  }
  0x13   : > { %2194 = vmatprep.mubr.bf16.mxu0 %v2354_v4  ;;  %v2386_v13 = vld [vmem:[%s2490_s30 + $0x100] sm:$0xff]   ;;  %v2388_v15 = vld [vmem:[%s2490_s30 + $0x110] sm:$0xff]   ;;  %v2359_v16 = vld [vmem:[%s2490_s30 + $0x28] sm:$0xff]  }
  0x14   : > { %2258 = vmatprep.mubr.bf16.mxu1 %v2386_v13  ;;  %v2360_v17 = vld [vmem:[%s2490_s30 + $0x30] sm:$0xff]   ;;  %v2389_v18 = vld [vmem:[%s2490_s30 + $0x118] sm:$0xff]   ;;  %v2390_v19 = vld [vmem:[%s2490_s30 + $0x120] sm:$0xff]  }
  0x15   : > { %2183 = vmatpush3.bf16.msra.mxu0 %v2348_v2  ;;  %2332 = vmatpush3.bf16.msra.mxu1 %v2348_v2  ;;  %v2361_v20 = vld [vmem:[%s2490_s30 + $0x38] sm:$0xff]   ;;  %v2362_v21 = vld [vmem:[%s2490_s30 + $0x40] sm:$0xff]   ;;  %v2391_v22 = vld [vmem:[%s2490_s30 + $0x128] sm:$0xff]  }
  0x16   : > { %2184 = vmatprep.subr.bf16.mxu0 %v2349_v3  ;;  %2325 = vmatprep.subr.bf16.mxu1 %v2349_v3  ;;  %v2392_v23 = vld [vmem:[%s2490_s30 + $0x130] sm:$0xff]   ;;  %v2363_v24 = vld [vmem:[%s2490_s30 + $0x48] sm:$0xff]   ;;  %v2393_v26 = vld [vmem:[%s2490_s30 + $0x138] sm:$0xff]  }
  0x17   : > { %v2364_v25 = vld [vmem:[%s2490_s30 + $0x50] sm:$0xff]   ;;  %v2394_v27 = vld [vmem:[%s2490_s30 + $0x140] sm:$0xff]   ;;  %v2365_v28 = vld [vmem:[%s2490_s30 + $0x58] sm:$0xff]  }
  0x18   : > { %v2366_v29 = vld [vmem:[%s2490_s30 + $0x60] sm:$0xff]   ;;  %v2395_v30 = vld [vmem:[%s2490_s30 + $0x148] sm:$0xff]   ;;  %v2396_v31 = vld [vmem:[%s2490_s30 + $0x150] sm:$0xff]  }
  0x19   : > { %2185 = vmatpush3.bf16.msra.mxu0 %v2349_v3  ;;  %2333 = vmatpush3.bf16.msra.mxu1 %v2349_v3  ;;  %v2367_v32 = vld [vmem:[%s2490_s30 + $0x68] sm:$0xff]   ;;  %v2368_v33 = vld [vmem:[%s2490_s30 + $0x70] sm:$0xff]   ;;  %v2397_v34 = vld [vmem:[%s2490_s30 + $0x158] sm:$0xff]  }
  0x1a   : > { %2186 = vmatprep.subr.bf16.mxu0 %v2350_v5  ;;  %2326 = vmatprep.subr.bf16.mxu1 %v2350_v5  ;;  %v2398_v35 = vld [vmem:[%s2490_s30 + $0x160] sm:$0xff]   ;;  %v2369_v36 = vld [vmem:[%s2490_s30 + $0x78] sm:$0xff]   ;;  %v2399_v38 = vld [vmem:[%s2490_s30 + $0x168] sm:$0xff]  }
  0x1b   : > { %v2370_v37 = vld [vmem:[%s2490_s30 + $0x80] sm:$0xff]   ;;  %v2400_v39 = vld [vmem:[%s2490_s30 + $0x170] sm:$0xff]   ;;  %v2371_v40 = vld [vmem:[%s2490_s30 + $0x88] sm:$0xff]  }
  0x1c   : > { %v2372_v41 = vld [vmem:[%s2490_s30 + $0x90] sm:$0xff]   ;;  %v2401_v42 = vld [vmem:[%s2490_s30 + $0x178] sm:$0xff]   ;;  %v2402_v43 = vld [vmem:[%s2490_s30 + $0x180] sm:$0xff]  }
  0x1d   : > { %2187 = vmatpush3.bf16.msra.mxu0 %v2350_v5  ;;  %2334 = vmatpush3.bf16.msra.mxu1 %v2350_v5  ;;  %v2373_v44 = vld [vmem:[%s2490_s30 + $0x98] sm:$0xff]   ;;  %v2374_v45 = vld [vmem:[%s2490_s30 + $0xa0] sm:$0xff]   ;;  %v2403_v46 = vld [vmem:[%s2490_s30 + $0x188] sm:$0xff]  }
  0x1e   : > { %2188 = vmatprep.subr.bf16.mxu0 %v2351_v6  ;;  %2327 = vmatprep.subr.bf16.mxu1 %v2351_v6  ;;  %v2404_v47 = vld [vmem:[%s2490_s30 + $0x190] sm:$0xff]   ;;  %v2375_v48 = vld [vmem:[%s2490_s30 + $0xa8] sm:$0xff]   ;;  %v2405_v50 = vld [vmem:[%s2490_s30 + $0x198] sm:$0xff]  }
  0x1f   : > { %v2376_v49 = vld [vmem:[%s2490_s30 + $0xb0] sm:$0xff]   ;;  %v2406_v51 = vld [vmem:[%s2490_s30 + $0x1a0] sm:$0xff]   ;;  %v2377_v52 = vld [vmem:[%s2490_s30 + $0xb8] sm:$0xff]  }
  0x20   : > { %v2378_v53 = vld [vmem:[%s2490_s30 + $0xc0] sm:$0xff]   ;;  %v2407_v54 = vld [vmem:[%s2490_s30 + $0x1a8] sm:$0xff]   ;;  %v2408_v55 = vld [vmem:[%s2490_s30 + $0x1b0] sm:$0xff]  }
  0x21   : > { %2189 = vmatpush3.bf16.msra.mxu0 %v2351_v6  ;;  %2335 = vmatpush3.bf16.msra.mxu1 %v2351_v6  ;;  %v2379_v56 = vld [vmem:[%s2490_s30 + $0xc8] sm:$0xff]   ;;  %v2380_v57 = vld [vmem:[%s2490_s30 + $0xd0] sm:$0xff]   ;;  %v2409_v58 = vld [vmem:[%s2490_s30 + $0x1b8] sm:$0xff]  }
  0x22   : > { %2190 = vmatprep.subr.bf16.mxu0 %v2352_v7  ;;  %2328 = vmatprep.subr.bf16.mxu1 %v2352_v7  ;;  %v2410_v59 = vld [vmem:[%s2490_s30 + $0x1c0] sm:$0xff]   ;;  %v2381_v60 = vld [vmem:[%s2490_s30 + $0xd8] sm:$0xff]   ;;  %v2411_v62 = vld [vmem:[%s2490_s30 + $0x1c8] sm:$0xff]  }
  0x23   : > { %v2382_v61 = vld [vmem:[%s2490_s30 + $0xe0] sm:$0xff]   ;;  %v2412_v63 = vld [vmem:[%s2490_s30 + $0x1d0] sm:$0xff]   ;;  %v2383_v0 = vld [vmem:[%s2490_s30 + $0xe8] sm:$0xff]  }
  0x24   : > { %v2384_v1 = vld [vmem:[%s2490_s30 + $0xf0] sm:$0xff]   ;;  %v2413_v2 = vld [vmem:[%s2490_s30 + $0x1d8] sm:$0xff]   ;;  %v2414_v3 = vld [vmem:[%s2490_s30 + $0x1e0] sm:$0xff]  }
  0x25   : > { %2191 = vmatpush3.bf16.msra.mxu0 %v2352_v7  ;;  %2336 = vmatpush3.bf16.msra.mxu1 %v2352_v7  ;;  %v2385_v4 = vld [vmem:[%s2490_s30 + $0xf8] sm:$0xff]   ;;  %v2415_v5 = vld [vmem:[%s2490_s30 + $0x1e8] sm:$0xff]   ;;  %v2416_v6 = vld [vmem:[%s2490_s30 + $0x1f0] sm:$0xff]  }
  0x26   : > { %2192 = vmatprep.subr.bf16.mxu0 %v2353_v8  ;;  %2329 = vmatprep.subr.bf16.mxu1 %v2353_v8  ;;  %v2417_v7 = vld [vmem:[%s2490_s30 + $0x1f8] sm:$0xff]  }
  0x29   : > { %2193 = vmatpush3.bf16.msra.mxu0 %v2353_v8  ;;  %2337 = vmatpush3.bf16.msra.mxu1 %v2353_v8  ;;  %v2575_v8 = vld [vmem:[%s3205_s2] ss:$0 sm:$0xff] }
  0x2c   : > { %2195 = vmatmul.mubr.bf16.vlgmr.msra.gmra.mxu0 %v2355_v9  ;;  %2259 = vmatmul.mubr.bf16.vlgmr.msra.gmra.mxu1 %v2387_v14 }
  0x2d   : > { %2198 = vmatprep.mubr.bf16.mxu0 %v2356_v10  ;;  %2262 = vmatprep.mubr.bf16.mxu1 %v2388_v15 }
  0x34   : > { %2199 = vmatmul.mubr.bf16.gmra.mxu0 %v2357_v11  ;;  %2263 = vmatmul.mubr.bf16.gmra.mxu1 %v2389_v18 }
  0x35   : > { %2202 = vmatprep.mubr.bf16.mxu0 %v2358_v12  ;;  %2266 = vmatprep.mubr.bf16.mxu1 %v2390_v19 }
  0x3c   : > { %2203 = vmatmul.mubr.bf16.gmra.mxu0 %v2359_v16  ;;  %2267 = vmatmul.mubr.bf16.gmra.mxu1 %v2391_v22 }
  0x3d   : > { %2206 = vmatprep.mubr.bf16.mxu0 %v2360_v17  ;;  %2270 = vmatprep.mubr.bf16.mxu1 %v2392_v23 }
  0x44   : > { %2207 = vmatmul.mubr.bf16.gmra.mxu0 %v2361_v20  ;;  %2271 = vmatmul.mubr.bf16.gmra.mxu1 %v2393_v26 }
  0x45   : > { %2210 = vmatprep.mubr.bf16.mxu0 %v2362_v21  ;;  %2274 = vmatprep.mubr.bf16.mxu1 %v2394_v27 }
  0x4c   : > { %2211 = vmatmul.mubr.bf16.gmra.mxu0 %v2363_v24  ;;  %2275 = vmatmul.mubr.bf16.gmra.mxu1 %v2395_v30 }
  0x4d   : > { %2214 = vmatprep.mubr.bf16.mxu0 %v2364_v25  ;;  %2278 = vmatprep.mubr.bf16.mxu1 %v2396_v31 }
  0x54   : > { %2215 = vmatmul.mubr.bf16.gmra.mxu0 %v2365_v28  ;;  %2279 = vmatmul.mubr.bf16.gmra.mxu1 %v2397_v34 }
  0x55   : > { %2218 = vmatprep.mubr.bf16.mxu0 %v2366_v29  ;;  %2282 = vmatprep.mubr.bf16.mxu1 %v2398_v35 }
  0x5c   : > { %2219 = vmatmul.mubr.bf16.gmra.mxu0 %v2367_v32  ;;  %2283 = vmatmul.mubr.bf16.gmra.mxu1 %v2399_v38 }
  0x5d   : > { %2222 = vmatprep.mubr.bf16.mxu0 %v2368_v33  ;;  %2286 = vmatprep.mubr.bf16.mxu1 %v2400_v39 }
  0x64   : > { %2223 = vmatmul.mubr.bf16.gmra.mxu0 %v2369_v36  ;;  %2287 = vmatmul.mubr.bf16.gmra.mxu1 %v2401_v42 }
  0x65   : > { %2226 = vmatprep.mubr.bf16.mxu0 %v2370_v37  ;;  %2290 = vmatprep.mubr.bf16.mxu1 %v2402_v43 }
  0x6c   : > { %2227 = vmatmul.mubr.bf16.gmra.mxu0 %v2371_v40  ;;  %2291 = vmatmul.mubr.bf16.gmra.mxu1 %v2403_v46 }
  0x6d   : > { %2230 = vmatprep.mubr.bf16.mxu0 %v2372_v41  ;;  %2294 = vmatprep.mubr.bf16.mxu1 %v2404_v47 }
  0x74   : > { %2231 = vmatmul.mubr.bf16.gmra.mxu0 %v2373_v44  ;;  %2295 = vmatmul.mubr.bf16.gmra.mxu1 %v2405_v50 }
  0x75   : > { %2234 = vmatprep.mubr.bf16.mxu0 %v2374_v45  ;;  %2298 = vmatprep.mubr.bf16.mxu1 %v2406_v51 }
  0x7c   : > { %2235 = vmatmul.mubr.bf16.gmra.mxu0 %v2375_v48  ;;  %2299 = vmatmul.mubr.bf16.gmra.mxu1 %v2407_v54 }
  0x7d   : > { %2238 = vmatprep.mubr.bf16.mxu0 %v2376_v49  ;;  %2302 = vmatprep.mubr.bf16.mxu1 %v2408_v55 }
  0x84   : > { %2239 = vmatmul.mubr.bf16.gmra.mxu0 %v2377_v52  ;;  %2303 = vmatmul.mubr.bf16.gmra.mxu1 %v2409_v58 }
  0x85   : > { %2242 = vmatprep.mubr.bf16.mxu0 %v2378_v53  ;;  %2306 = vmatprep.mubr.bf16.mxu1 %v2410_v59 }
  0x8c   : > { %2243 = vmatmul.mubr.bf16.gmra.mxu0 %v2379_v56  ;;  %2307 = vmatmul.mubr.bf16.gmra.mxu1 %v2411_v62 }
  0x8d   : > { %2246 = vmatprep.mubr.bf16.mxu0 %v2380_v57  ;;  %2310 = vmatprep.mubr.bf16.mxu1 %v2412_v63 }
  0x94   : > { %2247 = vmatmul.mubr.bf16.gmra.mxu0 %v2381_v60  ;;  %2311 = vmatmul.mubr.bf16.gmra.mxu1 %v2413_v2 }
  0x95   : > { %2250 = vmatprep.mubr.bf16.mxu0 %v2382_v61  ;;  %2314 = vmatprep.mubr.bf16.mxu1 %v2414_v3 }
  0x9c   : > { %2251 = vmatmul.mubr.bf16.gmra.mxu0 %v2383_v0  ;;  %2315 = vmatmul.mubr.bf16.gmra.mxu1 %v2415_v5 }
  0x9d   : > { %2254 = vmatprep.mubr.bf16.mxu0 %v2384_v1  ;;  %2318 = vmatprep.mubr.bf16.mxu1 %v2416_v6 }
  0xa4   : > { %2255 = vmatmul.mubr.bf16.gmra.mxu0 %v2385_v4  ;;  %2319 = vmatmul.mubr.bf16.gmra.mxu1 %v2417_v7 }
  0xec   : > { %v2196_v9 = vpop.f32.mrf.mxu0  ;;  %v2260_v22 = vpop.f32.mrf.mxu1 }
  0xed   : > { %v876_v10 = vadd.f32 %v2196_v9, %v2575_v8  ;;  %v1132_v24 = vadd.f32 %v2260_v22, %v2575_v8 }
  0xee   : > { %v867_v11 = vpop.f32.mrf.mxu0  ;;  %v1123_v29 = vpop.f32.mrf.mxu1 }
  0xef   : > { %1380 = vst [vmem:[%s2580_s24 + $0x10] sm:$0xff] %v876_v10  ;;  %v868_v12 = vadd.f32 %v2575_v8, %v867_v11  ;;  %v1642_v25 = vmul.f32 %v876_v10, %v876_v10  ;;  %1444 = vst [vmem:[%s2580_s24 + $0x210] sm:$0xff] %v1132_v24  ;;  %v1124_v31 = vadd.f32 %v2575_v8, %v1123_v29 }
  0xf0   : > { %v2197_v13 = vpop.f32.mrf.mxu0  ;;  %v2261_v36 = vpop.f32.mrf.mxu1 }
  0xf1   : > { %1378 = vst [vmem:[%s2580_s24] sm:$0xff] %v868_v12  ;;  %v879_v14 = vadd.f32 %v2197_v13, %v2575_v8  ;;  %v1640_v18 = vmul.f32 %v868_v12, %v868_v12  ;;  %1442 = vst [vmem:[%s2580_s24 + $0x200] sm:$0xff] %v1124_v31  ;;  %v1135_v38 = vadd.f32 %v2261_v36, %v2575_v8 }
  0xf2   : > { %v870_v15 = vpop.f32.mrf.mxu0  ;;  %v1126_v43 = vpop.f32.mrf.mxu1 }
  0xf3   : > { %1381 = vst [vmem:[%s2580_s24 + $0x18] sm:$0xff] %v879_v14  ;;  %v871_v16 = vadd.f32 %v2575_v8, %v870_v15  ;;  %v1643_v32 = vmul.f32 %v879_v14, %v879_v14  ;;  %1445 = vst [vmem:[%s2580_s24 + $0x218] sm:$0xff] %v1135_v38  ;;  %v1127_v45 = vadd.f32 %v2575_v8, %v1126_v43 }
  0xf4   : > { %v2200_v17 = vpop.f32.mrf.mxu0  ;;  %v2264_v50 = vpop.f32.mrf.mxu1 }
  0xf5   : > { %1379 = vst [vmem:[%s2580_s24 + $0x8] sm:$0xff] %v871_v16  ;;  %v1506_v19 = vadd.f32 %v871_v16, %v868_v12  ;;  %v1641_v20 = vmul.f32 %v871_v16, %v871_v16  ;;  %v892_v21 = vadd.f32 %v2200_v17, %v2575_v8  ;;  %1443 = vst [vmem:[%s2580_s24 + $0x208] sm:$0xff] %v1127_v45 }
  0xf6   : > { %v883_v23 = vpop.f32.mrf.mxu0  ;;  %v1148_v52 = vadd.f32 %v2264_v50, %v2575_v8  ;;  %v1139_v57 = vpop.f32.mrf.mxu1 }
  0xf7   : > { %v1507_v26 = vadd.f32 %v1506_v19, %v876_v10  ;;  %v1768_v27 = vadd.f32 %v1641_v20, %v1640_v18  ;;  %1384 = vst [vmem:[%s2580_s24 + $0x30] sm:$0xff] %v892_v21  ;;  %v884_v28 = vadd.f32 %v2575_v8, %v883_v23  ;;  %v1646_v53 = vmul.f32 %v892_v21, %v892_v21 }
  0xf8   : > { %v2201_v30 = vpop.f32.mrf.mxu0  ;;  %1448 = vst [vmem:[%s2580_s24 + $0x230] sm:$0xff] %v1148_v52  ;;  %v1140_v59 = vadd.f32 %v2575_v8, %v1139_v57  ;;  %v2265_v0 = vpop.f32.mrf.mxu1 }
  0xf9   : > { %v1508_v33 = vadd.f32 %v1507_v26, %v879_v14  ;;  %v1769_v34 = vadd.f32 %v1768_v27, %v1642_v25  ;;  %1382 = vst [vmem:[%s2580_s24 + $0x20] sm:$0xff] %v884_v28  ;;  %v895_v35 = vadd.f32 %v2201_v30, %v2575_v8  ;;  %v1644_v41 = vmul.f32 %v884_v28, %v884_v28 }
  0xfa   : > { %v886_v37 = vpop.f32.mrf.mxu0  ;;  %1446 = vst [vmem:[%s2580_s24 + $0x220] sm:$0xff] %v1140_v59  ;;  %v1151_v2 = vadd.f32 %v2265_v0, %v2575_v8  ;;  %v1142_v7 = vpop.f32.mrf.mxu1 }
  0xfb   : > { %v1770_v39 = vadd.f32 %v1769_v34, %v1643_v32  ;;  %v1509_v40 = vadd.f32 %v1508_v33, %v884_v28  ;;  %1385 = vst [vmem:[%s2580_s24 + $0x38] sm:$0xff] %v895_v35  ;;  %v887_v42 = vadd.f32 %v2575_v8, %v886_v37  ;;  %v1647_v60 = vmul.f32 %v895_v35, %v895_v35 }
  0xfc   : > { %v2204_v44 = vpop.f32.mrf.mxu0  ;;  %1449 = vst [vmem:[%s2580_s24 + $0x238] sm:$0xff] %v1151_v2  ;;  %v2620_v10 = vadd.f32 %v2575_v8, %v1142_v7  ;;  %v2268_v15 = vpop.f32.mrf.mxu1 }
  0xfd   : > { %v1771_v46 = vadd.f32 %v1770_v39, %v1644_v41  ;;  %1383 = vst [vmem:[%s2580_s24 + $0x28] sm:$0xff] %v887_v42  ;;  %v1510_v47 = vadd.f32 %v1509_v40, %v887_v42  ;;  %v1645_v48 = vmul.f32 %v887_v42, %v887_v42  ;;  %v908_v49 = vadd.f32 %v2204_v44, %v2575_v8 }
  0xfe   : > { %v899_v51 = vpop.f32.mrf.mxu0  ;;  %1447 = vst [vmem:[%s2580_s24 + $0x228] sm:$0xff] %v2620_v10  ;;  %v2627_v17 = vadd.f32 %v2268_v15, %v2575_v8  ;;  %v1155_v22 = vpop.f32.mrf.mxu1 }
  0xff   : > { %v1511_v54 = vadd.f32 %v1510_v47, %v892_v21  ;;  %v1772_v55 = vadd.f32 %v1771_v46, %v1645_v48  ;;  %1388 = vst [vmem:[%s2580_s24 + $0x50] sm:$0xff] %v908_v49  ;;  %v900_v56 = vadd.f32 %v2575_v8, %v899_v51  ;;  %v1650_v18 = vmul.f32 %v908_v49, %v908_v49 }
 0x100   : > { %v2205_v58 = vpop.f32.mrf.mxu0  ;;  %1452 = vst [vmem:[%s2580_s24 + $0x250] sm:$0xff] %v2627_v17  ;;  %v2634_v24 = vadd.f32 %v2575_v8, %v1155_v22  ;;  %v2269_v29 = vpop.f32.mrf.mxu1 }
 0x101   : > { %v1512_v61 = vadd.f32 %v1511_v54, %v895_v35  ;;  %v1773_v62 = vadd.f32 %v1772_v55, %v1646_v53  ;;  %1386 = vst [vmem:[%s2580_s24 + $0x40] sm:$0xff] %v900_v56  ;;  %v911_v63 = vadd.f32 %v2205_v58, %v2575_v8  ;;  %v1648_v5 = vmul.f32 %v900_v56, %v900_v56 }
 0x102   : > { %v902_v1 = vpop.f32.mrf.mxu0  ;;  %1450 = vst [vmem:[%s2580_s24 + $0x240] sm:$0xff] %v2634_v24  ;;  %v2641_v31 = vadd.f32 %v2269_v29, %v2575_v8  ;;  %v1158_v36 = vpop.f32.mrf.mxu1 }
 0x103   : > { %v1774_v3 = vadd.f32 %v1773_v62, %v1647_v60  ;;  %v1513_v4 = vadd.f32 %v1512_v61, %v900_v56  ;;  %1389 = vst [vmem:[%s2580_s24 + $0x58] sm:$0xff] %v911_v63  ;;  %v903_v6 = vadd.f32 %v2575_v8, %v902_v1  ;;  %v1651_v25 = vmul.f32 %v911_v63, %v911_v63 }
 0x104   : > { %v2208_v9 = vpop.f32.mrf.mxu0  ;;  %1453 = vst [vmem:[%s2580_s24 + $0x258] sm:$0xff] %v2641_v31  ;;  %v2648_v38 = vadd.f32 %v2575_v8, %v1158_v36  ;;  %v2272_v43 = vpop.f32.mrf.mxu1 }
 0x105   : > { %v1775_v11 = vadd.f32 %v1774_v3, %v1648_v5  ;;  %1387 = vst [vmem:[%s2580_s24 + $0x48] sm:$0xff] %v903_v6  ;;  %v1514_v12 = vadd.f32 %v1513_v4, %v903_v6  ;;  %v1649_v13 = vmul.f32 %v903_v6, %v903_v6  ;;  %v924_v14 = vadd.f32 %v2208_v9, %v2575_v8 }
 0x106   : > { %v915_v16 = vpop.f32.mrf.mxu0  ;;  %1451 = vst [vmem:[%s2580_s24 + $0x248] sm:$0xff] %v2648_v38  ;;  %v2655_v45 = vadd.f32 %v2272_v43, %v2575_v8  ;;  %v1171_v50 = vpop.f32.mrf.mxu1 }
 0x107   : > { %v1515_v19 = vadd.f32 %v1514_v12, %v908_v49  ;;  %v1776_v20 = vadd.f32 %v1775_v11, %v1649_v13  ;;  %1392 = vst [vmem:[%s2580_s24 + $0x70] sm:$0xff] %v924_v14  ;;  %v916_v21 = vadd.f32 %v2575_v8, %v915_v16  ;;  %v1654_v46 = vmul.f32 %v924_v14, %v924_v14 }
 0x108   : > { %v2209_v23 = vpop.f32.mrf.mxu0  ;;  %1456 = vst [vmem:[%s2580_s24 + $0x270] sm:$0xff] %v2655_v45  ;;  %v2662_v52 = vadd.f32 %v2575_v8, %v1171_v50  ;;  %v2273_v57 = vpop.f32.mrf.mxu1 }
 0x109   : > { %v1516_v26 = vadd.f32 %v1515_v19, %v911_v63  ;;  %v1777_v27 = vadd.f32 %v1776_v20, %v1650_v18  ;;  %1390 = vst [vmem:[%s2580_s24 + $0x60] sm:$0xff] %v916_v21  ;;  %v927_v28 = vadd.f32 %v2209_v23, %v2575_v8  ;;  %v1652_v34 = vmul.f32 %v916_v21, %v916_v21 }
 0x10a   : > { %v918_v30 = vpop.f32.mrf.mxu0  ;;  %1454 = vst [vmem:[%s2580_s24 + $0x260] sm:$0xff] %v2662_v52  ;;  %v2669_v59 = vadd.f32 %v2273_v57, %v2575_v8  ;;  %v1174_v0 = vpop.f32.mrf.mxu1 }
 0x10b   : > { %v1778_v32 = vadd.f32 %v1777_v27, %v1651_v25  ;;  %v1517_v33 = vadd.f32 %v1516_v26, %v916_v21  ;;  %1393 = vst [vmem:[%s2580_s24 + $0x78] sm:$0xff] %v927_v28  ;;  %v919_v35 = vadd.f32 %v2575_v8, %v918_v30  ;;  %v1655_v53 = vmul.f32 %v927_v28, %v927_v28 }
 0x10c   : > { %v2212_v37 = vpop.f32.mrf.mxu0  ;;  %1457 = vst [vmem:[%s2580_s24 + $0x278] sm:$0xff] %v2669_v59  ;;  %v2676_v2 = vadd.f32 %v2575_v8, %v1174_v0  ;;  %v2276_v7 = vpop.f32.mrf.mxu1 }
 0x10d   : > { %v1779_v39 = vadd.f32 %v1778_v32, %v1652_v34  ;;  %1391 = vst [vmem:[%s2580_s24 + $0x68] sm:$0xff] %v919_v35  ;;  %v1518_v40 = vadd.f32 %v1517_v33, %v919_v35  ;;  %v1653_v41 = vmul.f32 %v919_v35, %v919_v35  ;;  %v940_v42 = vadd.f32 %v2212_v37, %v2575_v8 }
 0x10e   : > { %v931_v44 = vpop.f32.mrf.mxu0  ;;  %1455 = vst [vmem:[%s2580_s24 + $0x268] sm:$0xff] %v2676_v2  ;;  %v2683_v11 = vadd.f32 %v2276_v7, %v2575_v8  ;;  %v1187_v16 = vpop.f32.mrf.mxu1 }
 0x10f   : > { %v1519_v47 = vadd.f32 %v1518_v40, %v924_v14  ;;  %v1780_v48 = vadd.f32 %v1779_v39, %v1653_v41  ;;  %1396 = vst [vmem:[%s2580_s24 + $0x90] sm:$0xff] %v940_v42  ;;  %v932_v49 = vadd.f32 %v2575_v8, %v931_v44  ;;  %v1658_v12 = vmul.f32 %v940_v42, %v940_v42 }
 0x110   : > { %v2213_v51 = vpop.f32.mrf.mxu0  ;;  %1460 = vst [vmem:[%s2580_s24 + $0x290] sm:$0xff] %v2683_v11  ;;  %v2690_v19 = vadd.f32 %v2575_v8, %v1187_v16  ;;  %v2277_v25 = vpop.f32.mrf.mxu1 }
 0x111   : > { %v1520_v54 = vadd.f32 %v1519_v47, %v927_v28  ;;  %v1781_v55 = vadd.f32 %v1780_v48, %v1654_v46  ;;  %1394 = vst [vmem:[%s2580_s24 + $0x80] sm:$0xff] %v932_v49  ;;  %v943_v56 = vadd.f32 %v2213_v51, %v2575_v8  ;;  %v1656_v62 = vmul.f32 %v932_v49, %v932_v49 }
 0x112   : > { %v934_v58 = vpop.f32.mrf.mxu0  ;;  %1458 = vst [vmem:[%s2580_s24 + $0x280] sm:$0xff] %v2690_v19  ;;  %v2697_v27 = vadd.f32 %v2277_v25, %v2575_v8  ;;  %v1190_v33 = vpop.f32.mrf.mxu1 }
 0x113   : > { %v1782_v60 = vadd.f32 %v1781_v55, %v1655_v53  ;;  %v1521_v61 = vadd.f32 %v1520_v54, %v932_v49  ;;  %1397 = vst [vmem:[%s2580_s24 + $0x98] sm:$0xff] %v943_v56  ;;  %v935_v63 = vadd.f32 %v2575_v8, %v934_v58  ;;  %v1659_v20 = vmul.f32 %v943_v56, %v943_v56 }
 0x114   : > { %v2216_v1 = vpop.f32.mrf.mxu0  ;;  %1461 = vst [vmem:[%s2580_s24 + $0x298] sm:$0xff] %v2697_v27  ;;  %v2704_v35 = vadd.f32 %v2575_v8, %v1190_v33  ;;  %v2280_v41 = vpop.f32.mrf.mxu1 }
 0x115   : > { %v1783_v3 = vadd.f32 %v1782_v60, %v1656_v62  ;;  %1395 = vst [vmem:[%s2580_s24 + $0x88] sm:$0xff] %v935_v63  ;;  %v1522_v4 = vadd.f32 %v1521_v61, %v935_v63  ;;  %v1657_v5 = vmul.f32 %v935_v63, %v935_v63  ;;  %v956_v6 = vadd.f32 %v2216_v1, %v2575_v8 }
 0x116   : > { %v947_v9 = vpop.f32.mrf.mxu0  ;;  %1459 = vst [vmem:[%s2580_s24 + $0x288] sm:$0xff] %v2704_v35  ;;  %v2711_v43 = vadd.f32 %v2280_v41, %v2575_v8  ;;  %v1203_v49 = vpop.f32.mrf.mxu1 }
 0x117   : > { %v1523_v13 = vadd.f32 %v1522_v4, %v940_v42  ;;  %v1784_v14 = vadd.f32 %v1783_v3, %v1657_v5  ;;  %1400 = vst [vmem:[%s2580_s24 + $0xb0] sm:$0xff] %v956_v6  ;;  %v948_v15 = vadd.f32 %v2575_v8, %v947_v9  ;;  %v1662_v44 = vmul.f32 %v956_v6, %v956_v6 }
 0x118   : > { %v2217_v18 = vpop.f32.mrf.mxu0  ;;  %1464 = vst [vmem:[%s2580_s24 + $0x2b0] sm:$0xff] %v2711_v43  ;;  %v2718_v51 = vadd.f32 %v2575_v8, %v1203_v49  ;;  %v2281_v57 = vpop.f32.mrf.mxu1 }
 0x119   : > { %v1524_v21 = vadd.f32 %v1523_v13, %v943_v56  ;;  %v1785_v22 = vadd.f32 %v1784_v14, %v1658_v12  ;;  %1398 = vst [vmem:[%s2580_s24 + $0xa0] sm:$0xff] %v948_v15  ;;  %v959_v23 = vadd.f32 %v2217_v18, %v2575_v8  ;;  %v1660_v30 = vmul.f32 %v948_v15, %v948_v15 }
 0x11a   : > { %v950_v26 = vpop.f32.mrf.mxu0  ;;  %1462 = vst [vmem:[%s2580_s24 + $0x2a0] sm:$0xff] %v2718_v51  ;;  %v2725_v60 = vadd.f32 %v2281_v57, %v2575_v8  ;;  %v1206_v1 = vpop.f32.mrf.mxu1 }
 0x11b   : > { %v1786_v28 = vadd.f32 %v1785_v22, %v1659_v20  ;;  %v1525_v29 = vadd.f32 %v1524_v21, %v948_v15  ;;  %1401 = vst [vmem:[%s2580_s24 + $0xb8] sm:$0xff] %v959_v23  ;;  %v951_v32 = vadd.f32 %v2575_v8, %v950_v26  ;;  %v1663_v53 = vmul.f32 %v959_v23, %v959_v23 }
 0x11c   : > { %v2220_v34 = vpop.f32.mrf.mxu0  ;;  %1465 = vst [vmem:[%s2580_s24 + $0x2b8] sm:$0xff] %v2725_v60  ;;  %v2732_v4 = vadd.f32 %v2575_v8, %v1206_v1  ;;  %v2284_v12 = vpop.f32.mrf.mxu1 }
 0x11d   : > { %v1787_v36 = vadd.f32 %v1786_v28, %v1660_v30  ;;  %1399 = vst [vmem:[%s2580_s24 + $0xa8] sm:$0xff] %v951_v32  ;;  %v1526_v37 = vadd.f32 %v1525_v29, %v951_v32  ;;  %v1661_v39 = vmul.f32 %v951_v32, %v951_v32  ;;  %v972_v40 = vadd.f32 %v2220_v34, %v2575_v8 }
 0x11e   : > { %v963_v42 = vpop.f32.mrf.mxu0  ;;  %1463 = vst [vmem:[%s2580_s24 + $0x2a8] sm:$0xff] %v2732_v4  ;;  %v2739_v14 = vadd.f32 %v2284_v12, %v2575_v8  ;;  %v1219_v21 = vpop.f32.mrf.mxu1 }
 0x11f   : > { %v1527_v46 = vadd.f32 %v1526_v37, %v956_v6  ;;  %v1788_v47 = vadd.f32 %v1787_v36, %v1661_v39  ;;  %1404 = vst [vmem:[%s2580_s24 + $0xd0] sm:$0xff] %v972_v40  ;;  %v964_v48 = vadd.f32 %v2575_v8, %v963_v42  ;;  %v1666_v15 = vmul.f32 %v972_v40, %v972_v40 }
 0x120   : > { %v2221_v50 = vpop.f32.mrf.mxu0  ;;  %1468 = vst [vmem:[%s2580_s24 + $0x2d0] sm:$0xff] %v2739_v14  ;;  %v2285_v30 = vpop.f32.mrf.mxu1 }
 0x121   : > { %v1528_v54 = vadd.f32 %v1527_v46, %v959_v23  ;;  %v1789_v55 = vadd.f32 %v1788_v47, %v1662_v44  ;;  %1402 = vst [vmem:[%s2580_s24 + $0xc0] sm:$0xff] %v964_v48  ;;  %v975_v56 = vadd.f32 %v2221_v50, %v2575_v8  ;;  %v1664_v63 = vmul.f32 %v964_v48, %v964_v48 }
 0x122   : > { %v966_v58 = vpop.f32.mrf.mxu0  ;;  %v2746_v23 = vadd.f32 %v2575_v8, %v1219_v21  ;;  %v2753_v33 = vadd.f32 %v2285_v30, %v2575_v8 }
 0x123   : > { %v1790_v61 = vadd.f32 %v1789_v55, %v1663_v53  ;;  %v1529_v62 = vadd.f32 %v1528_v54, %v964_v48  ;;  %1405 = vst [vmem:[%s2580_s24 + $0xd8] sm:$0xff] %v975_v56  ;;  %v967_v0 = vadd.f32 %v2575_v8, %v966_v58  ;;  %v1667_v25 = vmul.f32 %v975_v56, %v975_v56 }
 0x124   : > { %v2224_v3 = vpop.f32.mrf.mxu0  ;;  %1466 = vst [vmem:[%s2580_s24 + $0x2c0] sm:$0xff] %v2746_v23  ;;  %1469 = vst [vmem:[%s2580_s24 + $0x2d8] sm:$0xff] %v2753_v33 }
 0x125   : > { %v1791_v5 = vadd.f32 %v1790_v61, %v1664_v63  ;;  %1403 = vst [vmem:[%s2580_s24 + $0xc8] sm:$0xff] %v967_v0  ;;  %v1530_v6 = vadd.f32 %v1529_v62, %v967_v0  ;;  %v1665_v7 = vmul.f32 %v967_v0, %v967_v0  ;;  %v988_v9 = vadd.f32 %v2224_v3, %v2575_v8 }
 0x126   : > { %v979_v13 = vpop.f32.mrf.mxu0 }
 0x127   : > { %v1531_v16 = vadd.f32 %v1530_v6, %v972_v40  ;;  %v1792_v18 = vadd.f32 %v1791_v5, %v1665_v7  ;;  %1408 = vst [vmem:[%s2580_s24 + $0xf0] sm:$0xff] %v988_v9  ;;  %v980_v20 = vadd.f32 %v2575_v8, %v979_v13  ;;  %v1222_v40 = vpop.f32.mrf.mxu1  ;;  %v1670_v54 = vmul.f32 %v988_v9, %v988_v9 }
 0x128   : > { %v2225_v22 = vpop.f32.mrf.mxu0  ;;  %v2760_v42 = vadd.f32 %v2575_v8, %v1222_v40 }
 0x129   : > { %v1532_v26 = vadd.f32 %v1531_v16, %v975_v56  ;;  %v1793_v28 = vadd.f32 %v1792_v18, %v1666_v15  ;;  %1406 = vst [vmem:[%s2580_s24 + $0xe0] sm:$0xff] %v980_v20  ;;  %v991_v29 = vadd.f32 %v2225_v22, %v2575_v8  ;;  %v1668_v37 = vmul.f32 %v980_v20, %v980_v20  ;;  %v2288_v49 = vpop.f32.mrf.mxu1 }
 0x12a   : > { %v982_v32 = vpop.f32.mrf.mxu0  ;;  %1467 = vst [vmem:[%s2580_s24 + $0x2c8] sm:$0xff] %v2760_v42  ;;  %v2767_v53 = vadd.f32 %v2288_v49, %v2575_v8 }
 0x12b   : > { %v1794_v34 = vadd.f32 %v1793_v28, %v1667_v25  ;;  %v1533_v36 = vadd.f32 %v1532_v26, %v980_v20  ;;  %1409 = vst [vmem:[%s2580_s24 + $0xf8] sm:$0xff] %v991_v29  ;;  %v983_v39 = vadd.f32 %v2575_v8, %v982_v32  ;;  %v1235_v58 = vpop.f32.mrf.mxu1  ;;  %v1671_v63 = vmul.f32 %v991_v29, %v991_v29 }
 0x12c   : > { %v2228_v41 = vpop.f32.mrf.mxu0  ;;  %1472 = vst [vmem:[%s2580_s24 + $0x2f0] sm:$0xff] %v2767_v53  ;;  %v2774_v62 = vadd.f32 %v2575_v8, %v1235_v58 }
 0x12d   : > { %v1795_v44 = vadd.f32 %v1794_v34, %v1668_v37  ;;  %1407 = vst [vmem:[%s2580_s24 + $0xe8] sm:$0xff] %v983_v39  ;;  %v1534_v46 = vadd.f32 %v1533_v36, %v983_v39  ;;  %v1669_v47 = vmul.f32 %v983_v39, %v983_v39  ;;  %v1004_v48 = vadd.f32 %v2228_v41, %v2575_v8  ;;  %v2289_v5 = vpop.f32.mrf.mxu1 }
 0x12e   : > { %v995_v50 = vpop.f32.mrf.mxu0  ;;  %1470 = vst [vmem:[%s2580_s24 + $0x2e0] sm:$0xff] %v2774_v62  ;;  %v2781_v7 = vadd.f32 %v2289_v5, %v2575_v8 }
 0x12f   : > { %v1535_v55 = vadd.f32 %v1534_v46, %v988_v9  ;;  %v1796_v56 = vadd.f32 %v1795_v44, %v1669_v47  ;;  %1412 = vst [vmem:[%s2580_s24 + $0x110] sm:$0xff] %v1004_v48  ;;  %v996_v57 = vadd.f32 %v2575_v8, %v995_v50  ;;  %v1238_v16 = vpop.f32.mrf.mxu1  ;;  %v1674_v32 = vmul.f32 %v1004_v48, %v1004_v48 }
 0x130   : > { %v2229_v61 = vpop.f32.mrf.mxu0  ;;  %1473 = vst [vmem:[%s2580_s24 + $0x2f8] sm:$0xff] %v2781_v7  ;;  %v2788_v20 = vadd.f32 %v2575_v8, %v1238_v16 }
 0x131   : > { %v1536_v0 = vadd.f32 %v1535_v55, %v991_v29  ;;  %v1797_v1 = vadd.f32 %v1796_v56, %v1670_v54  ;;  %1410 = vst [vmem:[%s2580_s24 + $0x100] sm:$0xff] %v996_v57  ;;  %v1007_v3 = vadd.f32 %v2229_v61, %v2575_v8  ;;  %v1672_v13 = vmul.f32 %v996_v57, %v996_v57  ;;  %v2292_v28 = vpop.f32.mrf.mxu1 }
 0x132   : > { %v998_v6 = vpop.f32.mrf.mxu0  ;;  %1471 = vst [vmem:[%s2580_s24 + $0x2e8] sm:$0xff] %v2788_v20  ;;  %v2795_v30 = vadd.f32 %v2292_v28, %v2575_v8 }
 0x133   : > { %v1798_v9 = vadd.f32 %v1797_v1, %v1671_v63  ;;  %v1537_v12 = vadd.f32 %v1536_v0, %v996_v57  ;;  %1413 = vst [vmem:[%s2580_s24 + $0x118] sm:$0xff] %v1007_v3  ;;  %v999_v15 = vadd.f32 %v2575_v8, %v998_v6  ;;  %v1251_v39 = vpop.f32.mrf.mxu1  ;;  %v1675_v44 = vmul.f32 %v1007_v3, %v1007_v3 }
 0x134   : > { %v2232_v18 = vpop.f32.mrf.mxu0  ;;  %1476 = vst [vmem:[%s2580_s24 + $0x310] sm:$0xff] %v2795_v30  ;;  %v2802_v41 = vadd.f32 %v2575_v8, %v1251_v39 }
 0x135   : > { %v1799_v21 = vadd.f32 %v1798_v9, %v1672_v13  ;;  %1411 = vst [vmem:[%s2580_s24 + $0x108] sm:$0xff] %v999_v15  ;;  %v1538_v22 = vadd.f32 %v1537_v12, %v999_v15  ;;  %v1673_v25 = vmul.f32 %v999_v15, %v999_v15  ;;  %v1020_v26 = vadd.f32 %v2232_v18, %v2575_v8  ;;  %v2293_v49 = vpop.f32.mrf.mxu1 }
 0x136   : > { %v1011_v29 = vpop.f32.mrf.mxu0  ;;  %1474 = vst [vmem:[%s2580_s24 + $0x300] sm:$0xff] %v2802_v41  ;;  %v2809_v54 = vadd.f32 %v2293_v49, %v2575_v8 }
 0x137   : > { %v1539_v34 = vadd.f32 %v1538_v22, %v1004_v48  ;;  %v1800_v36 = vadd.f32 %v1799_v21, %v1673_v25  ;;  %1416 = vst [vmem:[%s2580_s24 + $0x130] sm:$0xff] %v1020_v26  ;;  %v1012_v37 = vadd.f32 %v2575_v8, %v1011_v29  ;;  %v1254_v61 = vpop.f32.mrf.mxu1  ;;  %v1678_v15 = vmul.f32 %v1020_v26, %v1020_v26 }
 0x138   : > { %v2233_v40 = vpop.f32.mrf.mxu0  ;;  %1477 = vst [vmem:[%s2580_s24 + $0x318] sm:$0xff] %v2809_v54  ;;  %v2816_v0 = vadd.f32 %v2575_v8, %v1254_v61 }
 0x139   : > { %v1540_v46 = vadd.f32 %v1539_v34, %v1007_v3  ;;  %v1801_v47 = vadd.f32 %v1800_v36, %v1674_v32  ;;  %1414 = vst [vmem:[%s2580_s24 + $0x120] sm:$0xff] %v1012_v37  ;;  %v1023_v48 = vadd.f32 %v2233_v40, %v2575_v8  ;;  %v1676_v57 = vmul.f32 %v1012_v37, %v1012_v37  ;;  %v2296_v9 = vpop.f32.mrf.mxu1 }
 0x13a   : > { %v1014_v50 = vpop.f32.mrf.mxu0  ;;  %1475 = vst [vmem:[%s2580_s24 + $0x308] sm:$0xff] %v2816_v0  ;;  %v2823_v13 = vadd.f32 %v2296_v9, %v2575_v8 }
 0x13b   : > { %v1802_v55 = vadd.f32 %v1801_v47, %v1675_v44  ;;  %v1541_v56 = vadd.f32 %v1540_v46, %v1012_v37  ;;  %1417 = vst [vmem:[%s2580_s24 + $0x138] sm:$0xff] %v1023_v48  ;;  %v1015_v58 = vadd.f32 %v2575_v8, %v1014_v50  ;;  %v1267_v22 = vpop.f32.mrf.mxu1  ;;  %v1679_v29 = vmul.f32 %v1023_v48, %v1023_v48 }
 0x13c   : > { %v2236_v63 = vpop.f32.mrf.mxu0  ;;  %1480 = vst [vmem:[%s2580_s24 + $0x330] sm:$0xff] %v2823_v13  ;;  %v2830_v28 = vadd.f32 %v2575_v8, %v1267_v22 }
 0x13d   : > { %v1803_v1 = vadd.f32 %v1802_v55, %v1676_v57  ;;  %1415 = vst [vmem:[%s2580_s24 + $0x128] sm:$0xff] %v1015_v58  ;;  %v1542_v3 = vadd.f32 %v1541_v56, %v1015_v58  ;;  %v1677_v5 = vmul.f32 %v1015_v58, %v1015_v58  ;;  %v1036_v6 = vadd.f32 %v2236_v63, %v2575_v8  ;;  %v2297_v36 = vpop.f32.mrf.mxu1 }
 0x13e   : > { %v1027_v12 = vpop.f32.mrf.mxu0  ;;  %1478 = vst [vmem:[%s2580_s24 + $0x320] sm:$0xff] %v2830_v28  ;;  %v2837_v39 = vadd.f32 %v2297_v36, %v2575_v8 }
 0x13f   : > { %v1543_v16 = vadd.f32 %v1542_v3, %v1020_v26  ;;  %v1804_v18 = vadd.f32 %v1803_v1, %v1677_v5  ;;  %1420 = vst [vmem:[%s2580_s24 + $0x150] sm:$0xff] %v1036_v6  ;;  %v1028_v21 = vadd.f32 %v2575_v8, %v1027_v12  ;;  %v1682_v3 = vmul.f32 %v1036_v6, %v1036_v6 }
 0x140   : > { %v2237_v25 = vpop.f32.mrf.mxu0  ;;  %1481 = vst [vmem:[%s2580_s24 + $0x338] sm:$0xff] %v2837_v39 }
 0x141   : > { %v1544_v32 = vadd.f32 %v1543_v16, %v1023_v48  ;;  %v1805_v34 = vadd.f32 %v1804_v18, %v1678_v15  ;;  %1418 = vst [vmem:[%s2580_s24 + $0x140] sm:$0xff] %v1028_v21  ;;  %v1039_v26 = vadd.f32 %v2237_v25, %v2575_v8  ;;  %v1680_v46 = vmul.f32 %v1028_v21, %v1028_v21  ;;  %v1270_v48 = vpop.f32.mrf.mxu1 }
 0x142   : > { %v1030_v37 = vpop.f32.mrf.mxu0  ;;  %v2844_v50 = vadd.f32 %v2575_v8, %v1270_v48 }
 0x143   : > { %v1806_v40 = vadd.f32 %v1805_v34, %v1679_v29  ;;  %v1545_v44 = vadd.f32 %v1544_v32, %v1028_v21  ;;  %1421 = vst [vmem:[%s2580_s24 + $0x158] sm:$0xff] %v1039_v26  ;;  %v1031_v47 = vadd.f32 %v2575_v8, %v1030_v37  ;;  %v2300_v61 = vpop.f32.mrf.mxu1  ;;  %v1683_v21 = vmul.f32 %v1039_v26, %v1039_v26 }
 0x144   : > { %v2240_v49 = vpop.f32.mrf.mxu0  ;;  %1479 = vst [vmem:[%s2580_s24 + $0x328] sm:$0xff] %v2844_v50  ;;  %v2851_v1 = vadd.f32 %v2300_v61, %v2575_v8 }
 0x145   : > { %v1807_v55 = vadd.f32 %v1806_v40, %v1680_v46  ;;  %1419 = vst [vmem:[%s2580_s24 + $0x148] sm:$0xff] %v1031_v47  ;;  %v1546_v56 = vadd.f32 %v1545_v44, %v1031_v47  ;;  %v1681_v57 = vmul.f32 %v1031_v47, %v1031_v47  ;;  %v1052_v58 = vadd.f32 %v2240_v49, %v2575_v8  ;;  %v1283_v15 = vpop.f32.mrf.mxu1 }
 0x146   : > { %v1043_v63 = vpop.f32.mrf.mxu0  ;;  %1484 = vst [vmem:[%s2580_s24 + $0x350] sm:$0xff] %v2851_v1  ;;  %v2858_v18 = vadd.f32 %v2575_v8, %v1283_v15 }
 0x147   : > { %v1547_v5 = vadd.f32 %v1546_v56, %v1036_v6  ;;  %v1808_v9 = vadd.f32 %v1807_v55, %v1681_v57  ;;  %1424 = vst [vmem:[%s2580_s24 + $0x170] sm:$0xff] %v1052_v58  ;;  %v1044_v12 = vadd.f32 %v2575_v8, %v1043_v63  ;;  %v2301_v29 = vpop.f32.mrf.mxu1 }
 0x148   : > { %v2241_v16 = vpop.f32.mrf.mxu0  ;;  %1482 = vst [vmem:[%s2580_s24 + $0x340] sm:$0xff] %v2858_v18  ;;  %v2865_v34 = vadd.f32 %v2301_v29, %v2575_v8 }
 0x149   : > { %v1548_v22 = vadd.f32 %v1547_v5, %v1039_v26  ;;  %v1809_v25 = vadd.f32 %v1808_v9, %v1682_v3  ;;  %1422 = vst [vmem:[%s2580_s24 + $0x160] sm:$0xff] %v1044_v12  ;;  %v1055_v6 = vadd.f32 %v2241_v16, %v2575_v8  ;;  %v1684_v40 = vmul.f32 %v1044_v12, %v1044_v12  ;;  %v1286_v26 = vpop.f32.mrf.mxu1 }
 0x14a   : > { %v1046_v32 = vpop.f32.mrf.mxu0  ;;  %1485 = vst [vmem:[%s2580_s24 + $0x358] sm:$0xff] %v2865_v34  ;;  %v2872_v47 = vadd.f32 %v2575_v8, %v1286_v26  ;;  %v1686_v3 = vmul.f32 %v1052_v58, %v1052_v58 }
 0x14b   : > { %v1810_v36 = vadd.f32 %v1809_v25, %v1683_v21  ;;  %v1549_v37 = vadd.f32 %v1548_v22, %v1044_v12  ;;  %1425 = vst [vmem:[%s2580_s24 + $0x178] sm:$0xff] %v1055_v6  ;;  %v1047_v44 = vadd.f32 %v2575_v8, %v1046_v32  ;;  %v2304_v57 = vpop.f32.mrf.mxu1  ;;  %v1687_v22 = vmul.f32 %v1055_v6, %v1055_v6 }
 0x14c   : > { %v2244_v46 = vpop.f32.mrf.mxu0  ;;  %1483 = vst [vmem:[%s2580_s24 + $0x348] sm:$0xff] %v2872_v47  ;;  %v2879_v63 = vadd.f32 %v2304_v57, %v2575_v8 }
 0x14d   : > { %v1811_v48 = vadd.f32 %v1810_v36, %v1684_v40  ;;  %1423 = vst [vmem:[%s2580_s24 + $0x168] sm:$0xff] %v1047_v44  ;;  %v1550_v49 = vadd.f32 %v1549_v37, %v1047_v44  ;;  %v1685_v55 = vmul.f32 %v1047_v44, %v1047_v44  ;;  %v1068_v56 = vadd.f32 %v2244_v46, %v2575_v8  ;;  %v1299_v15 = vpop.f32.mrf.mxu1 }
 0x14e   : > { %v1059_v61 = vpop.f32.mrf.mxu0  ;;  %1488 = vst [vmem:[%s2580_s24 + $0x370] sm:$0xff] %v2879_v63  ;;  %v2886_v21 = vadd.f32 %v2575_v8, %v1299_v15 }
 0x14f   : > { %v1551_v5 = vadd.f32 %v1550_v49, %v1052_v58  ;;  %v1812_v9 = vadd.f32 %v1811_v48, %v1685_v55  ;;  %1428 = vst [vmem:[%s2580_s24 + $0x190] sm:$0xff] %v1068_v56  ;;  %v1060_v12 = vadd.f32 %v2575_v8, %v1059_v61  ;;  %v2305_v32 = vpop.f32.mrf.mxu1  ;;  %v1690_v15 = vmul.f32 %v1068_v56, %v1068_v56 }
 0x150   : > { %v2245_v16 = vpop.f32.mrf.mxu0  ;;  %1486 = vst [vmem:[%s2580_s24 + $0x360] sm:$0xff] %v2886_v21  ;;  %v2893_v37 = vadd.f32 %v2305_v32, %v2575_v8 }
 0x151   : > { %v1552_v25 = vadd.f32 %v1551_v5, %v1055_v6  ;;  %v1813_v29 = vadd.f32 %v1812_v9, %v1686_v3  ;;  %1426 = vst [vmem:[%s2580_s24 + $0x180] sm:$0xff] %v1060_v12  ;;  %v1071_v58 = vadd.f32 %v2245_v16, %v2575_v8  ;;  %v1688_v26 = vmul.f32 %v1060_v12, %v1060_v12  ;;  %v1302_v6 = vpop.f32.mrf.mxu1 }
 0x152   : > { %v1062_v36 = vpop.f32.mrf.mxu0  ;;  %1489 = vst [vmem:[%s2580_s24 + $0x378] sm:$0xff] %v2893_v37  ;;  %v2900_v49 = vadd.f32 %v2575_v8, %v1302_v6 }
 0x153   : > { %v1814_v40 = vadd.f32 %v1813_v29, %v1687_v22  ;;  %v1553_v44 = vadd.f32 %v1552_v25, %v1060_v12  ;;  %1429 = vst [vmem:[%s2580_s24 + $0x198] sm:$0xff] %v1071_v58  ;;  %v1063_v46 = vadd.f32 %v2575_v8, %v1062_v36  ;;  %v2308_v5 = vpop.f32.mrf.mxu1 }
 0x154   : > { %v2248_v48 = vpop.f32.mrf.mxu0  ;;  %1487 = vst [vmem:[%s2580_s24 + $0x368] sm:$0xff] %v2900_v49  ;;  %v2907_v12 = vadd.f32 %v2308_v5, %v2575_v8 }
 0x155   : > { %v1815_v55 = vadd.f32 %v1814_v40, %v1688_v26  ;;  %1427 = vst [vmem:[%s2580_s24 + $0x188] sm:$0xff] %v1063_v46  ;;  %v1554_v57 = vadd.f32 %v1553_v44, %v1063_v46  ;;  %v1689_v61 = vmul.f32 %v1063_v46, %v1063_v46  ;;  %v1084_v3 = vadd.f32 %v2248_v48, %v2575_v8  ;;  %v1315_v29 = vpop.f32.mrf.mxu1 }
 0x156   : > { %v1075_v9 = vpop.f32.mrf.mxu0  ;;  %3239 = vst [vmem:[#allocation2_spill] sm:$0xff] %v2907_v12  ;;  %1492 = vst [vmem:[%s2580_s24 + $0x390] sm:$0xff] %v2907_v12  ;;  %v2914_v36 = vadd.f32 %v2575_v8, %v1315_v29  ;;  %v1691_v40 = vmul.f32 %v1071_v58, %v1071_v58 }
 0x157   : > { %v1555_v16 = vadd.f32 %v1554_v57, %v1068_v56  ;;  %v1816_v22 = vadd.f32 %v1815_v55, %v1689_v61  ;;  %1432 = vst [vmem:[%s2580_s24 + $0x1b0] sm:$0xff] %v1084_v3  ;;  %v1076_v25 = vadd.f32 %v2575_v8, %v1075_v9  ;;  %v2309_v46 = vpop.f32.mrf.mxu1 }
 0x158   : > { %v2249_v32 = vpop.f32.mrf.mxu0  ;;  %1490 = vst [vmem:[%s2580_s24 + $0x380] sm:$0xff] %v2914_v36  ;;  %v2921_v48 = vadd.f32 %v2309_v46, %v2575_v8 }
 0x159   : > { %v1556_v44 = vadd.f32 %v1555_v16, %v1071_v58  ;;  %v1817_v26 = vadd.f32 %v1816_v22, %v1690_v15  ;;  %1430 = vst [vmem:[%s2580_s24 + $0x1a0] sm:$0xff] %v1076_v25  ;;  %v1087_v56 = vadd.f32 %v2249_v32, %v2575_v8  ;;  %v1692_v61 = vmul.f32 %v1076_v25, %v1076_v25  ;;  %v1318_v58 = vpop.f32.mrf.mxu1 }
 0x15a   : > { %v1078_v6 = vpop.f32.mrf.mxu0  ;;  %3240 = vst [vmem:[#allocation3_spill] sm:$0xff] %v2921_v48  ;;  %1493 = vst [vmem:[%s2580_s24 + $0x398] sm:$0xff] %v2921_v48  ;;  %v2928_v15 = vadd.f32 %v2575_v8, %v1318_v58 }
 0x15b   : > { %v1818_v55 = vadd.f32 %v1817_v26, %v1691_v40  ;;  %v1557_v57 = vadd.f32 %v1556_v44, %v1076_v25  ;;  %1433 = vst [vmem:[%s2580_s24 + $0x1b8] sm:$0xff] %v1087_v56  ;;  %v1079_v5 = vadd.f32 %v2575_v8, %v1078_v6  ;;  %v2312_v40 = vpop.f32.mrf.mxu1  ;;  %v1694_v26 = vmul.f32 %v1084_v3, %v1084_v3 }
 0x15c   : > { %v2252_v9 = vpop.f32.mrf.mxu0  ;;  %3241 = vst [vmem:[#allocation4_spill] sm:$0xff] %v2928_v15  ;;  %1491 = vst [vmem:[%s2580_s24 + $0x388] sm:$0xff] %v2928_v15  ;;  %v2935_v44 = vadd.f32 %v2312_v40, %v2575_v8  ;;  %v1695_v58 = vmul.f32 %v1087_v56, %v1087_v56 }
 0x15d   : > { %v1819_v16 = vadd.f32 %v1818_v55, %v1692_v61  ;;  %1431 = vst [vmem:[%s2580_s24 + $0x1a8] sm:$0xff] %v1079_v5  ;;  %v1558_v22 = vadd.f32 %v1557_v57, %v1079_v5  ;;  %v1693_v29 = vmul.f32 %v1079_v5, %v1079_v5  ;;  %v1100_v32 = vadd.f32 %v2252_v9, %v2575_v8  ;;  %v1331_v61 = vpop.f32.mrf.mxu1 }
 0x15e   : > { %v1091_v25 = vpop.f32.mrf.mxu0  ;;  %3242 = vst [vmem:[#allocation5_spill] sm:$0xff] %v2935_v44  ;;  %1496 = vst [vmem:[%s2580_s24 + $0x3b0] sm:$0xff] %v2935_v44  ;;  %v2942_v5 = vadd.f32 %v2575_v8, %v1331_v61 }
 0x15f   : > { %v1559_v46 = vadd.f32 %v1558_v22, %v1084_v3  ;;  %v1820_v6 = vadd.f32 %v1819_v16, %v1693_v29  ;;  %1436 = vst [vmem:[%s2580_s24 + $0x1d0] sm:$0xff] %v1100_v32  ;;  %v1092_v55 = vadd.f32 %v2575_v8, %v1091_v25  ;;  %v2313_v3 = vpop.f32.mrf.mxu1  ;;  %v1698_v44 = vmul.f32 %v1100_v32, %v1100_v32 }
 0x160   : > { %v2253_v57 = vpop.f32.mrf.mxu0  ;;  %3243 = vst [vmem:[#allocation6_spill] sm:$0xff] %v2942_v5  ;;  %1494 = vst [vmem:[%s2580_s24 + $0x3a0] sm:$0xff] %v2942_v5  ;;  %v2949_v22 = vadd.f32 %v2313_v3, %v2575_v8 }
 0x161   : > { %v1560_v9 = vadd.f32 %v1559_v46, %v1087_v56  ;;  %v1821_v40 = vadd.f32 %v1820_v6, %v1694_v26  ;;  %1434 = vst [vmem:[%s2580_s24 + $0x1c0] sm:$0xff] %v1092_v55  ;;  %v1103_v48 = vadd.f32 %v2253_v57, %v2575_v8  ;;  %v1696_v61 = vmul.f32 %v1092_v55, %v1092_v55  ;;  %v2955_v56 = vld [vmem:[%s3205_s2] ss:$0 sm:$0xff]  ;;  %v1334_v46 = vpop.f32.mrf.mxu1 }
 0x162   : > { %v1094_v16 = vpop.f32.mrf.mxu0  ;;  %3244 = vst [vmem:[#allocation7_spill] sm:$0xff] %v2949_v22  ;;  %1497 = vst [vmem:[%s2580_s24 + $0x3b8] sm:$0xff] %v2949_v22  ;;  %v2961_v8 = vadd.f32 %v2955_v56, %v1334_v46 }
 0x163   : > { %v1822_v29 = vadd.f32 %v1821_v40, %v1695_v58  ;;  %v1561_v25 = vadd.f32 %v1560_v9, %v1092_v55  ;;  %1437 = vst [vmem:[%s2580_s24 + $0x1d8] sm:$0xff] %v1103_v48  ;;  %v1095_v26 = vadd.f32 %v2955_v56, %v1094_v16  ;;  %v2316_v40 = vpop.f32.mrf.mxu1 }
 0x164   : > { %v2256_v6 = vpop.f32.mrf.mxu0  ;;  %3245 = vst [vmem:[#allocation8_spill] sm:$0xff] %v2961_v8  ;;  %1495 = vst [vmem:[%s2580_s24 + $0x3a8] sm:$0xff] %v2961_v8  ;;  %v2968_v16 = vadd.f32 %v2955_v56, %v2316_v40 }
 0x165   : > { %v1823_v57 = vadd.f32 %v1822_v29, %v1696_v61  ;;  %1435 = vst [vmem:[%s2580_s24 + $0x1c8] sm:$0xff] %v1095_v26  ;;  %v1562_v55 = vadd.f32 %v1561_v25, %v1095_v26  ;;  %v1697_v58 = vmul.f32 %v1095_v26, %v1095_v26  ;;  %v1116_v9 = vadd.f32 %v2955_v56, %v2256_v6  ;;  %v1347_v61 = vpop.f32.mrf.mxu1 }
 0x166   : > { %v1107_v3 = vpop.f32.mrf.mxu0  ;;  %3246 = vst [vmem:[#allocation9_spill] sm:$0xff] %v2968_v16  ;;  %1500 = vst [vmem:[%s2580_s24 + $0x3d0] sm:$0xff] %v2968_v16  ;;  %v2975_v26 = vadd.f32 %v2955_v56, %v1347_v61  ;;  %v1699_v6 = vmul.f32 %v1103_v48, %v1103_v48 }
 0x167   : > { %v1563_v22 = vadd.f32 %v1562_v55, %v1100_v32  ;;  %v1824_v46 = vadd.f32 %v1823_v57, %v1697_v58  ;;  %1440 = vst [vmem:[%s2580_s24 + $0x1f0] sm:$0xff] %v1116_v9  ;;  %v1108_v29 = vadd.f32 %v2955_v56, %v1107_v3  ;;  %v2317_v57 = vpop.f32.mrf.mxu1 }
 0x168   : > { %v2257_v25 = vpop.f32.mrf.mxu0  ;;  %3247 = vst [vmem:[#allocation10_spill] sm:$0xff] %v2975_v26  ;;  %1498 = vst [vmem:[%s2580_s24 + $0x3c0] sm:$0xff] %v2975_v26  ;;  %v2982_v58 = vadd.f32 %v2955_v56, %v2317_v57 }
 0x169   : > { %v1564_v8 = vadd.f32 %v1563_v22, %v1103_v48  ;;  %v1825_v40 = vadd.f32 %v1824_v46, %v1698_v44  ;;  %1438 = vst [vmem:[%s2580_s24 + $0x1e0] sm:$0xff] %v1108_v29  ;;  %v1119_v32 = vadd.f32 %v2955_v56, %v2257_v25  ;;  %v1700_v61 = vmul.f32 %v1108_v29, %v1108_v29  ;;  %v1350_v44 = vpop.f32.mrf.mxu1 }
 0x16a   : > { %v1110_v55 = vpop.f32.mrf.mxu0  ;;  %3248 = vst [vmem:[#allocation11_spill] sm:$0xff] %v2982_v58  ;;  %1501 = vst [vmem:[%s2580_s24 + $0x3d8] sm:$0xff] %v2982_v58  ;;  %v2989_v22 = vadd.f32 %v2955_v56, %v1350_v44 }
 0x16b   : > { %v1826_v3 = vadd.f32 %v1825_v40, %v1699_v6  ;;  %v1565_v16 = vadd.f32 %v1564_v8, %v1108_v29  ;;  %1441 = vst [vmem:[%s2580_s24 + $0x1f8] sm:$0xff] %v1119_v32  ;;  %v1111_v48 = vadd.f32 %v2955_v56, %v1110_v55  ;;  %v2320_v57 = vpop.f32.mrf.mxu1  ;;  %v1702_v29 = vmul.f32 %v1116_v9, %v1116_v9 }
 0x16c   : > { %3249 = vst [vmem:[#allocation12_spill] sm:$0xff] %v2989_v22  ;;  %1499 = vst [vmem:[%s2580_s24 + $0x3c8] sm:$0xff] %v2989_v22  ;;  %v2995_v8 = vadd.f32 %v2955_v56, %v2320_v57 }
 0x16d   : > { %v1827_v46 = vadd.f32 %v1826_v3, %v1700_v61  ;;  %1439 = vst [vmem:[%s2580_s24 + $0x1e8] sm:$0xff] %v1111_v48  ;;  %v1566_v25 = vadd.f32 %v1565_v16, %v1111_v48  ;;  %v1701_v26 = vmul.f32 %v1111_v48, %v1111_v48  ;;  %v1363_v55 = vpop.f32.mrf.mxu1  ;;  %v1703_v16 = vmul.f32 %v1119_v32, %v1119_v32 }
 0x16e   : > { %3250 = vst [vmem:[#allocation13_spill] sm:$0xff] %v2995_v8  ;;  %1504 = vst [vmem:[%s2580_s24 + $0x3f0] sm:$0xff] %v2995_v8  ;;  %v3000_v3 = vadd.f32 %v2955_v56, %v1363_v55 }
 0x16f   : > { %v1567_v6 = vadd.f32 %v1566_v25, %v1116_v9  ;;  %v1828_v40 = vadd.f32 %v1827_v46, %v1701_v26  ;;  %v2321_v44 = vpop.f32.mrf.mxu1  ;;  %v2419_v9 = vld [vmem:[%s2580_s24 + $0x200] sm:$0xff] }
 0x170   : > { %3251 = vst [vmem:[#allocation14_spill] sm:$0xff] %v3000_v3  ;;  %1502 = vst [vmem:[%s2580_s24 + $0x3e0] sm:$0xff] %v3000_v3  ;;  %v3005_v57 = vadd.f32 %v2955_v56, %v2321_v44  ;;  %v1704_v26 = vmul.f32 %v2419_v9, %v2419_v9  ;;  %v2421_v44 = vld [vmem:[%s2580_s24 + $0x210] sm:$0xff] }
 0x171   : > { %v1568_v61 = vadd.f32 %v1567_v6, %v1119_v32  ;;  %v1829_v48 = vadd.f32 %v1828_v40, %v1702_v29  ;;  %v1366_v8 = vpop.f32.mrf.mxu1  ;;  %v2420_v6 = vld [vmem:[%s2580_s24 + $0x208] sm:$0xff]  ;;  %v1706_v3 = vmul.f32 %v2421_v44, %v2421_v44 }
 0x172   : > { %3252 = vst [vmem:[#allocation15_spill] sm:$0xff] %v3005_v57  ;;  %1505 = vst [vmem:[%s2580_s24 + $0x3f8] sm:$0xff] %v3005_v57  ;;  %v3011_v32 = vadd.f32 %v2955_v56, %v1366_v8  ;;  %v1705_v55 = vmul.f32 %v2420_v6, %v2420_v6  ;;  %v2423_v57 = vld [vmem:[%s2580_s24 + $0x220] sm:$0xff] }
 0x173   : > { %v1569_v46 = vadd.f32 %v2419_v9, %v1568_v61  ;;  %v1830_v25 = vadd.f32 %v1829_v48, %v1703_v16  ;;  %v2422_v16 = vld [vmem:[%s2580_s24 + $0x218] sm:$0xff]  ;;  %v1708_v56 = vmul.f32 %v2423_v57, %v2423_v57 }
 0x174   : > { %3253 = vst [vmem:[#allocation16_spill] sm:$0xff] %v3011_v32  ;;  %1503 = vst [vmem:[%s2580_s24 + $0x3e8] sm:$0xff] %v3011_v32  ;;  %v1707_v61 = vmul.f32 %v2422_v16, %v2422_v16 }
 0x175   : > { %v1831_v29 = vadd.f32 %v1830_v25, %v1704_v26  ;;  %v1570_v40 = vadd.f32 %v2420_v6, %v1569_v46  ;;  %v1709_v25 = vmul.f32 %v2620_v10, %v2620_v10  ;;  %v2424_v6 = vld [vmem:[%s2580_s24 + $0x230] sm:$0xff] }
 0x176   : > { %v1710_v32 = vmul.f32 %v2424_v6, %v2424_v6 }
 0x177   : > { %v1571_v58 = vadd.f32 %v2421_v44, %v1570_v40  ;;  %v1832_v22 = vadd.f32 %v1831_v29, %v1705_v55  ;;  %v2425_v29 = vld [vmem:[%s2580_s24 + $0x238] sm:$0xff] }
 0x178   : > { %v1711_v55 = vmul.f32 %v2425_v29, %v2425_v29 }
 0x179   : > { %v1833_v48 = vadd.f32 %v1832_v22, %v1706_v3  ;;  %v1572_v9 = vadd.f32 %v2422_v16, %v1571_v58  ;;  %v1712_v22 = vmul.f32 %v2634_v24, %v2634_v24  ;;  %v1714_v16 = vmul.f32 %v2627_v17, %v2627_v17 }
 0x17b   : > { %v1573_v5 = vadd.f32 %v2423_v57, %v1572_v9  ;;  %v1834_v8 = vadd.f32 %v1833_v48, %v1707_v61  ;;  %v1716_v9 = vmul.f32 %v2662_v52, %v2662_v52 }
 0x17d   : > { %v1835_v26 = vadd.f32 %v1834_v8, %v1708_v56  ;;  %v1574_v46 = vadd.f32 %v1573_v5, %v2620_v10  ;;  %v1713_v10 = vmul.f32 %v2648_v38, %v2648_v38 }
 0x17f   : > { %v1575_v12 = vadd.f32 %v2424_v6, %v1574_v46  ;;  %v1836_v40 = vadd.f32 %v1835_v26, %v1709_v25  ;;  %v1717_v26 = vmul.f32 %v2676_v2, %v2676_v2 }
 0x181   : > { %v1837_v44 = vadd.f32 %v1836_v40, %v1710_v32  ;;  %v1576_v15 = vadd.f32 %v2425_v29, %v1575_v12  ;;  %v1715_v12 = vmul.f32 %v2641_v31, %v2641_v31  ;;  %v1720_v29 = vmul.f32 %v2690_v19, %v2690_v19 }
 0x183   : > { %v1577_v58 = vadd.f32 %v1576_v15, %v2634_v24  ;;  %v1838_v3 = vadd.f32 %v1837_v44, %v1711_v55 }
 0x185   : > { %v1839_v57 = vadd.f32 %v1838_v3, %v1712_v22  ;;  %v1578_v5 = vadd.f32 %v1577_v58, %v2648_v38  ;;  %v1721_v58 = vmul.f32 %v2704_v35, %v2704_v35 }
 0x187   : > { %v1579_v61 = vadd.f32 %v1578_v5, %v2627_v17  ;;  %v1840_v48 = vadd.f32 %v1839_v57, %v1713_v10  ;;  %v1718_v17 = vmul.f32 %v2655_v45, %v2655_v45  ;;  %v1724_v10 = vmul.f32 %v2718_v51, %v2718_v51 }
 0x189   : > { %v1841_v15 = vadd.f32 %v1840_v48, %v1714_v16  ;;  %v1580_v32 = vadd.f32 %v1579_v61, %v2641_v31  ;;  %v1719_v31 = vmul.f32 %v2669_v59, %v2669_v59  ;;  %v1725_v48 = vmul.f32 %v2732_v4, %v2732_v4 }
 0x18b   : > { %v1581_v24 = vadd.f32 %v1580_v32, %v2662_v52  ;;  %v1842_v56 = vadd.f32 %v1841_v15, %v1715_v12 }
 0x18d   : > { %v1843_v8 = vadd.f32 %v1842_v56, %v1716_v9  ;;  %v1582_v38 = vadd.f32 %v1581_v24, %v2676_v2  ;;  %v1728_v9 = vmul.f32 %v2746_v23, %v2746_v23 }
 0x18f   : > { %v1583_v46 = vadd.f32 %v1582_v38, %v2655_v45  ;;  %v1844_v25 = vadd.f32 %v1843_v8, %v1717_v26  ;;  %v1722_v45 = vmul.f32 %v2683_v11, %v2683_v11  ;;  %v1729_v38 = vmul.f32 %v2760_v42, %v2760_v42 }
 0x191   : > { %v1845_v6 = vadd.f32 %v1844_v25, %v1718_v17  ;;  %v1584_v40 = vadd.f32 %v1583_v46, %v2669_v59  ;;  %v1723_v59 = vmul.f32 %v2697_v27, %v2697_v27 }
 0x193   : > { %v1585_v52 = vadd.f32 %v1584_v40, %v2690_v19  ;;  %v1846_v55 = vadd.f32 %v1845_v6, %v1719_v31  ;;  %v1732_v31 = vmul.f32 %v2774_v62, %v2774_v62 }
 0x195   : > { %v1847_v44 = vadd.f32 %v1846_v55, %v1720_v29  ;;  %v1586_v2 = vadd.f32 %v1585_v52, %v2704_v35  ;;  %v1733_v52 = vmul.f32 %v2788_v20, %v2788_v20 }
 0x197   : > { %v1587_v22 = vadd.f32 %v1586_v2, %v2683_v11  ;;  %v1848_v3 = vadd.f32 %v1847_v44, %v1721_v58  ;;  %v1726_v11 = vmul.f32 %v2711_v43, %v2711_v43  ;;  %v1736_v58 = vmul.f32 %v2802_v41, %v2802_v41 }
 0x199   : > { %v1849_v57 = vadd.f32 %v1848_v3, %v1722_v45  ;;  %v1588_v5 = vadd.f32 %v1587_v22, %v2697_v27  ;;  %v1727_v27 = vmul.f32 %v2725_v60, %v2725_v60  ;;  %v1737_v3 = vmul.f32 %v2816_v0, %v2816_v0 }
 0x19b   : > { %v1589_v19 = vadd.f32 %v1588_v5, %v2718_v51  ;;  %v1850_v16 = vadd.f32 %v1849_v57, %v1723_v59 }
 0x19d   : > { %v1851_v61 = vadd.f32 %v1850_v16, %v1724_v10  ;;  %v1590_v35 = vadd.f32 %v1589_v19, %v2732_v4  ;;  %v1740_v10 = vmul.f32 %v2830_v28, %v2830_v28 }
 0x19f   : > { %v1591_v12 = vadd.f32 %v1590_v35, %v2711_v43  ;;  %v1852_v15 = vadd.f32 %v1851_v61, %v1725_v48  ;;  %v1730_v43 = vmul.f32 %v2739_v14, %v2739_v14  ;;  %v1741_v35 = vmul.f32 %v2844_v50, %v2844_v50 }
 0x1a1   : > { %v1853_v32 = vadd.f32 %v1852_v15, %v1726_v11  ;;  %v1592_v24 = vadd.f32 %v1591_v12, %v2725_v60  ;;  %v1731_v60 = vmul.f32 %v2753_v33, %v2753_v33 }
 0x1a3   : > { %v1593_v51 = vadd.f32 %v1592_v24, %v2746_v23  ;;  %v1854_v56 = vadd.f32 %v1853_v32, %v1727_v27  ;;  %v1744_v27 = vmul.f32 %v2858_v18, %v2858_v18 }
 0x1a5   : > { %v1855_v8 = vadd.f32 %v1854_v56, %v1728_v9  ;;  %v1594_v4 = vadd.f32 %v1593_v51, %v2760_v42  ;;  %v1745_v51 = vmul.f32 %v2872_v47, %v2872_v47 }
 0x1a7   : > { %v1595_v26 = vadd.f32 %v1594_v4, %v2739_v14  ;;  %v1856_v17 = vadd.f32 %v1855_v8, %v1729_v38  ;;  %v1734_v14 = vmul.f32 %v2767_v53, %v2767_v53  ;;  %v1748_v38 = vmul.f32 %v2886_v21, %v2886_v21 }
 0x1a9   : > { %v1857_v46 = vadd.f32 %v1856_v17, %v1730_v43  ;;  %v1596_v25 = vadd.f32 %v1595_v26, %v2753_v33  ;;  %v1735_v33 = vmul.f32 %v2781_v7, %v2781_v7  ;;  %v1749_v17 = vmul.f32 %v2900_v49, %v2900_v49 }
 0x1ab   : > { %v1597_v23 = vadd.f32 %v1596_v25, %v2774_v62  ;;  %v1858_v6 = vadd.f32 %v1857_v46, %v1731_v60 }
 0x1ad   : > { %v1859_v40 = vadd.f32 %v1858_v6, %v1732_v31  ;;  %v1598_v42 = vadd.f32 %v1597_v23, %v2788_v20  ;;  %v1752_v31 = vmul.f32 %v2914_v36, %v2914_v36 }
 0x1af   : > { %v1599_v29 = vadd.f32 %v1598_v42, %v2767_v53  ;;  %v1860_v55 = vadd.f32 %v1859_v40, %v1733_v52  ;;  %v1738_v53 = vmul.f32 %v2795_v30, %v2795_v30 }
 0x1b1   : > { %v1861_v44 = vadd.f32 %v1860_v55, %v1734_v14  ;;  %v1600_v2 = vadd.f32 %v1599_v29, %v2781_v7  ;;  %v1739_v7 = vmul.f32 %v2809_v54, %v2809_v54 }
 0x1b3   : > { %v1601_v62 = vadd.f32 %v1600_v2, %v2802_v41  ;;  %v1862_v45 = vadd.f32 %v1861_v44, %v1735_v33  ;;  %v3256_v33 = vld [vmem:[#allocation3_spill] sm:$0xff] }
 0x1b5   : > { %v1863_v22 = vadd.f32 %v1862_v45, %v1736_v58  ;;  %v1602_v20 = vadd.f32 %v1601_v62, %v2816_v0 }
 0x1b7   : > { %v1603_v59 = vadd.f32 %v1602_v20, %v2795_v30  ;;  %v1864_v57 = vadd.f32 %v1863_v22, %v1737_v3  ;;  %v1742_v30 = vmul.f32 %v2823_v13, %v2823_v13  ;;  %v3258_v20 = vld [vmem:[#allocation8_spill] sm:$0xff] }
 0x1b9   : > { %v1865_v5 = vadd.f32 %v1864_v57, %v1738_v53  ;;  %v1604_v19 = vadd.f32 %v1603_v59, %v2809_v54  ;;  %v1743_v54 = vmul.f32 %v2837_v39, %v2837_v39  ;;  %v1757_v53 = vmul.f32 %v3258_v20, %v3258_v20  ;;  %v3259_v59 = vld [vmem:[#allocation5_spill] sm:$0xff] }
 0x1ba   : > { %v1758_v57 = vmul.f32 %v3259_v59, %v3259_v59 }
 0x1bb   : > { %v1605_v41 = vadd.f32 %v1604_v19, %v2830_v28  ;;  %v1866_v16 = vadd.f32 %v1865_v5, %v1739_v7  ;;  %v3260_v19 = vld [vmem:[#allocation7_spill] sm:$0xff] }
 0x1bd   : > { %v1867_v61 = vadd.f32 %v1866_v16, %v1740_v10  ;;  %v1606_v0 = vadd.f32 %v1605_v41, %v2844_v50  ;;  %v1759_v41 = vmul.f32 %v3260_v19, %v3260_v19 }
 0x1bf   : > { %v1607_v48 = vadd.f32 %v1606_v0, %v2823_v13  ;;  %v1868_v11 = vadd.f32 %v1867_v61, %v1741_v35  ;;  %v1746_v13 = vmul.f32 %v2851_v1, %v2851_v1  ;;  %v3261_v61 = vld [vmem:[#allocation10_spill] sm:$0xff] }
 0x1c0   : > { %v1760_v35 = vmul.f32 %v3261_v61, %v3261_v61 }
 0x1c1   : > { %v1869_v12 = vadd.f32 %v1868_v11, %v1742_v30  ;;  %v1608_v15 = vadd.f32 %v1607_v48, %v2837_v39  ;;  %v1747_v39 = vmul.f32 %v2865_v34, %v2865_v34  ;;  %v3262_v11 = vld [vmem:[#allocation12_spill] sm:$0xff] }
 0x1c3   : > { %v1609_v28 = vadd.f32 %v1608_v15, %v2858_v18  ;;  %v1870_v32 = vadd.f32 %v1869_v12, %v1743_v54  ;;  %v1761_v12 = vmul.f32 %v3262_v11, %v3262_v11  ;;  %v3263_v15 = vld [vmem:[#allocation9_spill] sm:$0xff] }
 0x1c5   : > { %v1871_v24 = vadd.f32 %v1870_v32, %v1744_v27  ;;  %v1610_v50 = vadd.f32 %v1609_v28, %v2872_v47  ;;  %v1762_v28 = vmul.f32 %v3263_v15, %v3263_v15 }
 0x1c7   : > { %v1611_v9 = vadd.f32 %v1610_v50, %v2851_v1  ;;  %v1872_v56 = vadd.f32 %v1871_v24, %v1745_v51  ;;  %v1750_v1 = vmul.f32 %v2879_v63, %v2879_v63  ;;  %v3264_v24 = vld [vmem:[#allocation11_spill] sm:$0xff] }
 0x1c8   : > { %v1763_v50 = vmul.f32 %v3264_v24, %v3264_v24 }
 0x1c9   : > { %v1873_v8 = vadd.f32 %v1872_v56, %v1746_v13  ;;  %v1612_v4 = vadd.f32 %v1611_v9, %v2865_v34  ;;  %v1751_v34 = vmul.f32 %v2893_v37, %v2893_v37  ;;  %v3265_v9 = vld [vmem:[#allocation14_spill] sm:$0xff] }
 0x1cb   : > { %v1613_v18 = vadd.f32 %v1612_v4, %v2886_v21  ;;  %v1874_v43 = vadd.f32 %v1873_v8, %v1747_v39  ;;  %v1764_v39 = vmul.f32 %v3265_v9, %v3265_v9 }
 0x1cd   : > { %v1875_v26 = vadd.f32 %v1874_v43, %v1748_v38  ;;  %v1614_v47 = vadd.f32 %v1613_v18, %v2900_v49  ;;  %v3254_v49 = vld [vmem:[#allocation4_spill] sm:$0xff] }
 0x1ce   : > { %v1753_v52 = vmul.f32 %v3254_v49, %v3254_v49  ;;  %v3266_v18 = vld [vmem:[#allocation16_spill] sm:$0xff] }
 0x1cf   : > { %v1615_v60 = vadd.f32 %v1614_v47, %v2879_v63  ;;  %v1876_v46 = vadd.f32 %v1875_v26, %v1749_v17  ;;  %v3255_v63 = vld [vmem:[#allocation2_spill] sm:$0xff]  ;;  %v1765_v43 = vmul.f32 %v3266_v18, %v3266_v18  ;;  %v3267_v26 = vld [vmem:[#allocation13_spill] sm:$0xff] }
 0x1d0   : > { %v1754_v14 = vmul.f32 %v3255_v63, %v3255_v63  ;;  %v1766_v47 = vmul.f32 %v3267_v26, %v3267_v26 }
 0x1d1   : > { %v1877_v25 = vadd.f32 %v1876_v46, %v1750_v1  ;;  %v1616_v23 = vadd.f32 %v1615_v60, %v2893_v37  ;;  %v1755_v37 = vmul.f32 %v3256_v33, %v3256_v33  ;;  %v3268_v60 = vld [vmem:[#allocation15_spill] sm:$0xff] }
 0x1d2   : > { %v1767_v46 = vmul.f32 %v3268_v60, %v3268_v60 }
 0x1d3   : > { %v1617_v21 = vadd.f32 %v1616_v23, %v2914_v36  ;;  %v1878_v6 = vadd.f32 %v1877_v25, %v1751_v34  ;;  %v3257_v36 = vld [vmem:[#allocation6_spill] sm:$0xff] }
 0x1d4   : > { %v1756_v58 = vmul.f32 %v3257_v36, %v3257_v36 }
 0x1d5   : > { %v1879_v40 = vadd.f32 %v1878_v6, %v1752_v31  ;;  %v1618_v42 = vadd.f32 %v1617_v21, %v3254_v49 }
 0x1d7   : > { %v1619_v29 = vadd.f32 %v1618_v42, %v3255_v63  ;;  %v1880_v55 = vadd.f32 %v1879_v40, %v1753_v52 }
 0x1d9   : > { %v1881_v44 = vadd.f32 %v1880_v55, %v1754_v14  ;;  %v1620_v2 = vadd.f32 %v1619_v29, %v3256_v33 }
 0x1db   : > { %v1621_v62 = vadd.f32 %v1620_v2, %v3257_v36  ;;  %v1882_v45 = vadd.f32 %v1881_v44, %v1755_v37 }
 0x1dd   : > { %v1883_v22 = vadd.f32 %v1882_v45, %v1756_v58  ;;  %v1622_v3 = vadd.f32 %v1621_v62, %v3258_v20 }
 0x1df   : > { %v1623_v7 = vadd.f32 %v1622_v3, %v3259_v59  ;;  %v1884_v5 = vadd.f32 %v1883_v22, %v1757_v53 }
 0x1e1   : > { %v1885_v10 = vadd.f32 %v1884_v5, %v1758_v57  ;;  %v1624_v16 = vadd.f32 %v1623_v7, %v3260_v19 }
 0x1e3   : > { %v1625_v0 = vadd.f32 %v1624_v16, %v3261_v61  ;;  %v1886_v30 = vadd.f32 %v1885_v10, %v1759_v41 }
 0x1e5   : > { %v1887_v48 = vadd.f32 %v1886_v30, %v1760_v35  ;;  %v1626_v54 = vadd.f32 %v1625_v0, %v3262_v11 }
 0x1e7   : > { %v1627_v27 = vadd.f32 %v1626_v54, %v3263_v15  ;;  %v1888_v32 = vadd.f32 %v1887_v48, %v1761_v12 }
 0x1e9   : > { %v1889_v51 = vadd.f32 %v1888_v32, %v1762_v28  ;;  %v1628_v13 = vadd.f32 %v1627_v27, %v3264_v24 }
 0x1eb   : > { %v1629_v56 = vadd.f32 %v1628_v13, %v3265_v9  ;;  %v1890_v8 = vadd.f32 %v1889_v51, %v1763_v50 }
 0x1ed   : > { %v1891_v4 = vadd.f32 %v1890_v8, %v1764_v39  ;;  %v1630_v38 = vadd.f32 %v1629_v56, %v3266_v18 }
 0x1ef   : > { %v1631_v17 = vadd.f32 %v1630_v38, %v3267_v26  ;;  %v1892_v1 = vadd.f32 %v1891_v4, %v1765_v43 }
 0x1f1   : > { %v1632_v34 = vadd.f32 %v1631_v17, %v3268_v60  ;;  %v1893_v25 = vadd.f32 %v1892_v1, %v1766_v47 }
 0x1f3   : > { %v1633_v23 = vrot.slane %v1632_v34, 4  ;;  %v1894_v21 = vadd.f32 %v1893_v25, %v1767_v46 }
 0x1f5   : > { %v1634_v31 = vadd.f32 %v1633_v23, %v1632_v34  ;;  %v1895_v6 = vrot.slane %v1894_v21, 4 }
 0x1f7   : > { %v1635_v40 = vrot.slane %v1634_v31, 2  ;;  %v1896_v49 = vadd.f32 %v1895_v6, %v1894_v21 }
 0x1f9   : > { %v1636_v42 = vadd.f32 %v1635_v40, %v1634_v31  ;;  %v1897_v52 = vrot.slane %v1896_v49, 2 }
 0x1fb   : > { %v1637_v63 = vrot.slane %v1636_v42, 1  ;;  %v1898_v14 = vadd.f32 %v1897_v52, %v1896_v49 }
 0x1fd   : > { %v1638_v29 = vadd.f32 %v1637_v63, %v1636_v42  ;;  %v1899_v55 = vrot.slane %v1898_v14, 1 }
 0x1ff   : > { %1639 = vst [vmem:[%s244_s29] sm:$0xff] %v1638_v29  ;;  %v1900_v33 = vadd.f32 %v1899_v55, %v1898_v14 }
 0x201   : > { %1901 = vst [vmem:[%s248_s7] sm:$0xff] %v1900_v33 }
 0x202 PF: > { %s16_s18 = sadd.s32 1, %s2432_s18  }
 0x203   : > { %p13_p5 = scmp.ge.s32.totalorder %s16_s18, 4  }
 0x205   :  { %15 = sbr.rel (!%p13_p5) target bundleno = 1 (0x1), region = 86 }

// kernel: critic_forward.10
= control target key start
LH: loop header
LB: loop body
LE: loop exit
PB: predicated region body
PF: predicated region fallthrough
CT: control target
= control target key end

     0   :  { %s1191_s12 = smov 0   ;;  %s1747_s0 = inlined_call_operand.vmem [shape: f32[2048,128], index: 0, kind: input, shape index: {}]   ;;  %s1748_s1 = inlined_call_operand.vmem [shape: f32[1,128], index: 1, kind: input, shape index: {}]   ;;  %s1749_s2 = inlined_call_operand.vmem [shape: f32[1,128], index: 2, kind: input, shape index: {}]   ;;  %s1750_s3 = inlined_call_operand.vmem [shape: f32[2048,128], index: 3, kind: output, shape index: {}]  }
   0x1 LB: > { %s1140_s13 = sadd.s32 4294967295, %s1169_s12   ;;  %p1144_p0 = scmp.ge.s32.totalorder %s1169_s12, 1  ;;  %s1169_s12 = sphi %s1191_s12, %s13_s12  }
   0x2   : > { %p138_p1 = scmp.lt.s32.totalorder %s1169_s12, 3 }
   0x4   : > { %p139_p2 = pnand %p1144_p0, %p138_p1 }
   0x5   : > { %s1145_s14 = sshll.u32 (!%p139_p2), %s1140_s13, 7 }
   0x6   : > { %142 = sbr.rel (%p139_p2) target bundleno = 180 (0xb4), region = 32  ;;  %p163_p3 = scmp.lt.s32.totalorder (!%p139_p2), %s1145_s14, 255 }
   0xb   : > { %s1752_s14 = smov (!%p163_p3, %s1145_s14), 255  ;;  %v1205_v0 = vld [vmem:[%s1748_s1] ss:$0 sm:$0xff] }
   0xc   : > { %s1146_s15 = sshll.u32 %s1752_s14, 3  ;;  %v1215_v1 = vld [vmem:[%s1749_s2] ss:$0 sm:$0xff] }
   0xd   : > { %s1210_s20 = scalar_lea.vmem %s1747_s0, %s1146_s15  ;;  %s1243_s25 = scalar_lea.vmem %s1750_s3, %s1146_s15 }
   0xe   : > { %v174_v2 = vld [vmem:[%s1210_s20] sm:$0xff]  ;;  %v175_v3 = vld [vmem:[%s1210_s20 + $0x8] sm:$0xff]  ;;  %v176_v4 = vld [vmem:[%s1210_s20 + $0x10] sm:$0xff] }
   0xf   : > { %v309_v5 = vmul.f32 %v1205_v0, %v174_v2  ;;  %v310_v6 = vmul.f32 %v1205_v0, %v175_v3  ;;  %v311_v7 = vmul.f32 %v1205_v0, %v176_v4  ;;  %v177_v8 = vld [vmem:[%s1210_s20 + $0x18] sm:$0xff]  ;;  %v178_v9 = vld [vmem:[%s1210_s20 + $0x20] sm:$0xff]  ;;  %v179_v10 = vld [vmem:[%s1210_s20 + $0x28] sm:$0xff] }
  0x10   : > { %v312_v11 = vmul.f32 %v1205_v0, %v177_v8  ;;  %v313_v12 = vmul.f32 %v1205_v0, %v178_v9  ;;  %v314_v13 = vmul.f32 %v1205_v0, %v179_v10  ;;  %v180_v14 = vld [vmem:[%s1210_s20 + $0x30] sm:$0xff]  ;;  %v181_v15 = vld [vmem:[%s1210_s20 + $0x38] sm:$0xff]  ;;  %v182_v24 = vld [vmem:[%s1210_s20 + $0x40] sm:$0xff] }
  0x11   : > { %v444_v16 = vadd.f32 %v1215_v1, %v309_v5  ;;  %v445_v17 = vadd.f32 %v1215_v1, %v310_v6  ;;  %v446_v18 = vadd.f32 %v1215_v1, %v311_v7  ;;  %v315_v19 = vmul.f32 %v1205_v0, %v180_v14  ;;  %v183_v32 = vld [vmem:[%s1210_s20 + $0x48] sm:$0xff]  ;;  %v184_v33 = vld [vmem:[%s1210_s20 + $0x50] sm:$0xff]  ;;  %v185_v34 = vld [vmem:[%s1210_s20 + $0x58] sm:$0xff] }
  0x12   : > { %v447_v20 = vadd.f32 %v1215_v1, %v312_v11  ;;  %v448_v21 = vadd.f32 %v1215_v1, %v313_v12  ;;  %v449_v22 = vadd.f32 %v1215_v1, %v314_v13  ;;  %v316_v23 = vmul.f32 %v1205_v0, %v181_v15  ;;  %v186_v46 = vld [vmem:[%s1210_s20 + $0x60] sm:$0xff]  ;;  %v187_v47 = vld [vmem:[%s1210_s20 + $0x68] sm:$0xff]  ;;  %v188_v58 = vld [vmem:[%s1210_s20 + $0x70] sm:$0xff] }
  0x13   : > { %vm572_vm0 = vcmp.ge.f32.partialorder %v444_v16, 0.0  ;;  %v700_v25 = vmul.f32 0.2, %v444_v16  ;;  %vm573_vm1 = vcmp.ge.f32.partialorder %v445_v17, 0.0  ;;  %v701_v26 = vmul.f32 0.2, %v445_v17 }
  0x14   : > { %vm574_vm2 = vcmp.ge.f32.partialorder %v446_v18, 0.0  ;;  %v702_v27 = vmul.f32 0.2, %v446_v18  ;;  %vm575_vm3 = vcmp.ge.f32.partialorder %v447_v20, 0.0  ;;  %v703_v28 = vmul.f32 0.2, %v447_v20 }
  0x15   : > { %v828_v29 = vsel %vm572_vm0, %v444_v16, %v700_v25  ;;  %v829_v30 = vsel %vm573_vm1, %v445_v17, %v701_v26  ;;  %vm576_vm4 = vcmp.ge.f32.partialorder %v448_v21, 0.0  ;;  %v704_v31 = vmul.f32 0.2, %v448_v21  ;;  %v189_v59 = vld [vmem:[%s1210_s20 + $0x78] sm:$0xff]  ;;  %v190_v6 = vld [vmem:[%s1210_s20 + $0x80] sm:$0xff]  ;;  %v191_v7 = vld [vmem:[%s1210_s20 + $0x88] sm:$0xff] }
  0x16   : > { %956 = vst [vmem:[%s1243_s25] sm:$0xff] %v828_v29  ;;  %957 = vst [vmem:[%s1243_s25 + $0x8] sm:$0xff] %v829_v30  ;;  %v830_v35 = vsel %vm574_vm2, %v446_v18, %v702_v27  ;;  %v831_v36 = vsel %vm575_vm3, %v447_v20, %v703_v28  ;;  %vm577_vm5 = vcmp.ge.f32.partialorder %v449_v22, 0.0  ;;  %v705_v37 = vmul.f32 0.2, %v449_v22  ;;  %v192_v12 = vld [vmem:[%s1210_s20 + $0x90] sm:$0xff]  ;;  %v193_v13 = vld [vmem:[%s1210_s20 + $0x98] sm:$0xff] }
  0x17   : > { %958 = vst [vmem:[%s1243_s25 + $0x10] sm:$0xff] %v830_v35  ;;  %959 = vst [vmem:[%s1243_s25 + $0x18] sm:$0xff] %v831_v36  ;;  %v832_v38 = vsel %vm576_vm4, %v448_v21, %v704_v31  ;;  %v450_v39 = vadd.f32 %v1215_v1, %v315_v19  ;;  %v451_v40 = vadd.f32 %v1215_v1, %v316_v23  ;;  %v195_v25 = vld [vmem:[%s1210_s20 + $0xa8] sm:$0xff]  ;;  %v196_v36 = vld [vmem:[%s1210_s20 + $0xb0] sm:$0xff] }
  0x18   : > { %v317_v41 = vmul.f32 %v1205_v0, %v182_v24  ;;  %960 = vst [vmem:[%s1243_s25 + $0x20] sm:$0xff] %v832_v38  ;;  %v833_v42 = vsel %vm577_vm5, %v449_v22, %v705_v37  ;;  %v318_v43 = vmul.f32 %v1205_v0, %v183_v32  ;;  %v319_v44 = vmul.f32 %v1205_v0, %v184_v33  ;;  %v194_v24 = vld [vmem:[%s1210_s20 + $0xa0] sm:$0xff]  ;;  %v197_v37 = vld [vmem:[%s1210_s20 + $0xb8] sm:$0xff] }
  0x19   : > { %v320_v45 = vmul.f32 %v1205_v0, %v185_v34  ;;  %961 = vst [vmem:[%s1243_s25 + $0x28] sm:$0xff] %v833_v42  ;;  %vm578_vm6 = vcmp.ge.f32.partialorder %v450_v39, 0.0  ;;  %v706_v48 = vmul.f32 0.2, %v450_v39  ;;  %vm579_vm7 = vcmp.ge.f32.partialorder %v451_v40, 0.0 }
  0x1a   : > { %v707_v49 = vmul.f32 0.2, %v451_v40  ;;  %v452_v50 = vadd.f32 %v1215_v1, %v317_v41  ;;  %v453_v51 = vadd.f32 %v1215_v1, %v318_v43  ;;  %v454_v52 = vadd.f32 %v1215_v1, %v319_v44 }
  0x1b   : > { %v455_v53 = vadd.f32 %v1215_v1, %v320_v45  ;;  %v834_v54 = vsel %vm578_vm6, %v450_v39, %v706_v48  ;;  %v321_v56 = vmul.f32 %v1205_v0, %v186_v46  ;;  %v322_v57 = vmul.f32 %v1205_v0, %v187_v47  ;;  %v198_v46 = vld [vmem:[%s1210_s20 + $0xc0] sm:$0xff]  ;;  %v199_v47 = vld [vmem:[%s1210_s20 + $0xc8] sm:$0xff] }
  0x1c   : > { %v835_v55 = vsel %vm579_vm7, %v451_v40, %v707_v49  ;;  %962 = vst [vmem:[%s1243_s25 + $0x30] sm:$0xff] %v834_v54  ;;  %vm580_vm8 = vcmp.ge.f32.partialorder %v452_v50, 0.0  ;;  %v708_v60 = vmul.f32 0.2, %v452_v50  ;;  %vm581_vm9 = vcmp.ge.f32.partialorder %v453_v51, 0.0 }
  0x1d   : > { %963 = vst [vmem:[%s1243_s25 + $0x38] sm:$0xff] %v835_v55  ;;  %v709_v61 = vmul.f32 0.2, %v453_v51  ;;  %vm582_vm10 = vcmp.ge.f32.partialorder %v454_v52, 0.0  ;;  %v710_v62 = vmul.f32 0.2, %v454_v52  ;;  %v456_v4 = vadd.f32 %v1215_v1, %v321_v56 }
  0x1e   : > { %vm583_vm11 = vcmp.ge.f32.partialorder %v455_v53, 0.0  ;;  %v711_v63 = vmul.f32 0.2, %v455_v53  ;;  %v836_v2 = vsel %vm580_vm8, %v452_v50, %v708_v60  ;;  %v457_v5 = vadd.f32 %v1215_v1, %v322_v57 }
  0x1f   : > { %v837_v3 = vsel %vm581_vm9, %v453_v51, %v709_v61  ;;  %964 = vst [vmem:[%s1243_s25 + $0x40] sm:$0xff] %v836_v2  ;;  %v838_v8 = vsel %vm582_vm10, %v454_v52, %v710_v62  ;;  %v323_v10 = vmul.f32 %v1205_v0, %v188_v58  ;;  %v324_v11 = vmul.f32 %v1205_v0, %v189_v59  ;;  %v200_v52 = vld [vmem:[%s1210_s20 + $0xd0] sm:$0xff]  ;;  %v202_v2 = vld [vmem:[%s1210_s20 + $0xe0] sm:$0xff] }
  0x20   : > { %965 = vst [vmem:[%s1243_s25 + $0x48] sm:$0xff] %v837_v3  ;;  %v839_v9 = vsel %vm583_vm11, %v455_v53, %v711_v63  ;;  %966 = vst [vmem:[%s1243_s25 + $0x50] sm:$0xff] %v838_v8  ;;  %vm584_vm12 = vcmp.ge.f32.partialorder %v456_v4, 0.0  ;;  %v712_v14 = vmul.f32 0.2, %v456_v4  ;;  %vm585_vm13 = vcmp.ge.f32.partialorder %v457_v5, 0.0 }
  0x21   : > { %967 = vst [vmem:[%s1243_s25 + $0x58] sm:$0xff] %v839_v9  ;;  %v713_v15 = vmul.f32 0.2, %v457_v5  ;;  %v458_v16 = vadd.f32 %v1215_v1, %v323_v10  ;;  %v459_v17 = vadd.f32 %v1215_v1, %v324_v11  ;;  %v325_v18 = vmul.f32 %v1205_v0, %v190_v6  ;;  %v201_v53 = vld [vmem:[%s1210_s20 + $0xd8] sm:$0xff]  ;;  %v203_v3 = vld [vmem:[%s1210_s20 + $0xe8] sm:$0xff] }
  0x22   : > { %v326_v19 = vmul.f32 %v1205_v0, %v191_v7  ;;  %v840_v20 = vsel %vm584_vm12, %v456_v4, %v712_v14  ;;  %v327_v22 = vmul.f32 %v1205_v0, %v192_v12  ;;  %v328_v23 = vmul.f32 %v1205_v0, %v193_v13  ;;  %v204_v14 = vld [vmem:[%s1210_s20 + $0xf0] sm:$0xff] }
  0x23   : > { %v841_v21 = vsel %vm585_vm13, %v457_v5, %v713_v15  ;;  %968 = vst [vmem:[%s1243_s25 + $0x60] sm:$0xff] %v840_v20  ;;  %vm586_vm14 = vcmp.ge.f32.partialorder %v458_v16, 0.0  ;;  %v714_v26 = vmul.f32 0.2, %v458_v16  ;;  %vm587_vm15 = vcmp.ge.f32.partialorder %v459_v17, 0.0  ;;  %v205_v15 = vld [vmem:[%s1210_s20 + $0xf8] sm:$0xff] }
  0x24   : > { %969 = vst [vmem:[%s1243_s25 + $0x68] sm:$0xff] %v841_v21  ;;  %v715_v27 = vmul.f32 0.2, %v459_v17  ;;  %v460_v28 = vadd.f32 %v1215_v1, %v325_v18  ;;  %v461_v29 = vadd.f32 %v1215_v1, %v326_v19  ;;  %v462_v30 = vadd.f32 %v1215_v1, %v327_v22 }
  0x25   : > { %v463_v31 = vadd.f32 %v1215_v1, %v328_v23  ;;  %v842_v32 = vsel %vm586_vm14, %v458_v16, %v714_v26  ;;  %v329_v34 = vmul.f32 %v1205_v0, %v194_v24  ;;  %v330_v35 = vmul.f32 %v1205_v0, %v195_v25  ;;  %v206_v24 = vld [vmem:[%s1210_s20 + $0x100] sm:$0xff]  ;;  %v207_v25 = vld [vmem:[%s1210_s20 + $0x108] sm:$0xff] }
  0x26   : > { %v843_v33 = vsel %vm587_vm15, %v459_v17, %v715_v27  ;;  %970 = vst [vmem:[%s1243_s25 + $0x70] sm:$0xff] %v842_v32  ;;  %vm588_vm0 = vcmp.ge.f32.partialorder %v460_v28, 0.0  ;;  %v716_v38 = vmul.f32 0.2, %v460_v28  ;;  %vm589_vm1 = vcmp.ge.f32.partialorder %v461_v29, 0.0 }
  0x27   : > { %971 = vst [vmem:[%s1243_s25 + $0x78] sm:$0xff] %v843_v33  ;;  %v717_v39 = vmul.f32 0.2, %v461_v29  ;;  %vm590_vm2 = vcmp.ge.f32.partialorder %v462_v30, 0.0  ;;  %v718_v40 = vmul.f32 0.2, %v462_v30  ;;  %v464_v44 = vadd.f32 %v1215_v1, %v329_v34 }
  0x28   : > { %vm591_vm3 = vcmp.ge.f32.partialorder %v463_v31, 0.0  ;;  %v719_v41 = vmul.f32 0.2, %v463_v31  ;;  %v844_v42 = vsel %vm588_vm0, %v460_v28, %v716_v38  ;;  %v465_v45 = vadd.f32 %v1215_v1, %v330_v35 }
  0x29   : > { %v845_v43 = vsel %vm589_vm1, %v461_v29, %v717_v39  ;;  %972 = vst [vmem:[%s1243_s25 + $0x80] sm:$0xff] %v844_v42  ;;  %v846_v48 = vsel %vm590_vm2, %v462_v30, %v718_v40  ;;  %v331_v50 = vmul.f32 %v1205_v0, %v196_v36  ;;  %v332_v51 = vmul.f32 %v1205_v0, %v197_v37  ;;  %v208_v30 = vld [vmem:[%s1210_s20 + $0x110] sm:$0xff]  ;;  %v210_v42 = vld [vmem:[%s1210_s20 + $0x120] sm:$0xff] }
  0x2a   : > { %973 = vst [vmem:[%s1243_s25 + $0x88] sm:$0xff] %v845_v43  ;;  %v847_v49 = vsel %vm591_vm3, %v463_v31, %v719_v41  ;;  %974 = vst [vmem:[%s1243_s25 + $0x90] sm:$0xff] %v846_v48  ;;  %vm592_vm4 = vcmp.ge.f32.partialorder %v464_v44, 0.0  ;;  %v720_v54 = vmul.f32 0.2, %v464_v44  ;;  %vm593_vm5 = vcmp.ge.f32.partialorder %v465_v45, 0.0 }
  0x2b   : > { %975 = vst [vmem:[%s1243_s25 + $0x98] sm:$0xff] %v847_v49  ;;  %v721_v55 = vmul.f32 0.2, %v465_v45  ;;  %v466_v56 = vadd.f32 %v1215_v1, %v331_v50  ;;  %v467_v57 = vadd.f32 %v1215_v1, %v332_v51  ;;  %v333_v58 = vmul.f32 %v1205_v0, %v198_v46  ;;  %v209_v31 = vld [vmem:[%s1210_s20 + $0x118] sm:$0xff]  ;;  %v211_v43 = vld [vmem:[%s1210_s20 + $0x128] sm:$0xff] }
  0x2c   : > { %v334_v59 = vmul.f32 %v1205_v0, %v199_v47  ;;  %v848_v60 = vsel %vm592_vm4, %v464_v44, %v720_v54  ;;  %v335_v62 = vmul.f32 %v1205_v0, %v200_v52  ;;  %v336_v63 = vmul.f32 %v1205_v0, %v201_v53  ;;  %v212_v54 = vld [vmem:[%s1210_s20 + $0x130] sm:$0xff] }
  0x2d   : > { %v849_v61 = vsel %vm593_vm5, %v465_v45, %v721_v55  ;;  %976 = vst [vmem:[%s1243_s25 + $0xa0] sm:$0xff] %v848_v60  ;;  %vm594_vm6 = vcmp.ge.f32.partialorder %v466_v56, 0.0  ;;  %v722_v4 = vmul.f32 0.2, %v466_v56  ;;  %vm595_vm7 = vcmp.ge.f32.partialorder %v467_v57, 0.0  ;;  %v213_v55 = vld [vmem:[%s1210_s20 + $0x138] sm:$0xff] }
  0x2e   : > { %977 = vst [vmem:[%s1243_s25 + $0xa8] sm:$0xff] %v849_v61  ;;  %v723_v5 = vmul.f32 0.2, %v467_v57  ;;  %v468_v6 = vadd.f32 %v1215_v1, %v333_v58  ;;  %v469_v7 = vadd.f32 %v1215_v1, %v334_v59  ;;  %v470_v8 = vadd.f32 %v1215_v1, %v335_v62 }
  0x2f   : > { %v471_v9 = vadd.f32 %v1215_v1, %v336_v63  ;;  %v850_v10 = vsel %vm594_vm6, %v466_v56, %v722_v4  ;;  %v337_v12 = vmul.f32 %v1205_v0, %v202_v2  ;;  %v338_v13 = vmul.f32 %v1205_v0, %v203_v3  ;;  %v214_v2 = vld [vmem:[%s1210_s20 + $0x140] sm:$0xff]  ;;  %v215_v3 = vld [vmem:[%s1210_s20 + $0x148] sm:$0xff] }
  0x30   : > { %v851_v11 = vsel %vm595_vm7, %v467_v57, %v723_v5  ;;  %978 = vst [vmem:[%s1243_s25 + $0xb0] sm:$0xff] %v850_v10  ;;  %vm596_vm8 = vcmp.ge.f32.partialorder %v468_v6, 0.0  ;;  %v724_v16 = vmul.f32 0.2, %v468_v6  ;;  %vm597_vm9 = vcmp.ge.f32.partialorder %v469_v7, 0.0 }
  0x31   : > { %979 = vst [vmem:[%s1243_s25 + $0xb8] sm:$0xff] %v851_v11  ;;  %v725_v17 = vmul.f32 0.2, %v469_v7  ;;  %vm598_vm10 = vcmp.ge.f32.partialorder %v470_v8, 0.0  ;;  %v726_v18 = vmul.f32 0.2, %v470_v8  ;;  %v472_v22 = vadd.f32 %v1215_v1, %v337_v12 }
  0x32   : > { %vm599_vm11 = vcmp.ge.f32.partialorder %v471_v9, 0.0  ;;  %v727_v19 = vmul.f32 0.2, %v471_v9  ;;  %v852_v20 = vsel %vm596_vm8, %v468_v6, %v724_v16  ;;  %v473_v23 = vadd.f32 %v1215_v1, %v338_v13 }
  0x33   : > { %v853_v21 = vsel %vm597_vm9, %v469_v7, %v725_v17  ;;  %980 = vst [vmem:[%s1243_s25 + $0xc0] sm:$0xff] %v852_v20  ;;  %v854_v26 = vsel %vm598_vm10, %v470_v8, %v726_v18  ;;  %v339_v28 = vmul.f32 %v1205_v0, %v204_v14  ;;  %v340_v29 = vmul.f32 %v1205_v0, %v205_v15  ;;  %v216_v8 = vld [vmem:[%s1210_s20 + $0x150] sm:$0xff]  ;;  %v218_v20 = vld [vmem:[%s1210_s20 + $0x160] sm:$0xff] }
  0x34   : > { %981 = vst [vmem:[%s1243_s25 + $0xc8] sm:$0xff] %v853_v21  ;;  %v855_v27 = vsel %vm599_vm11, %v471_v9, %v727_v19  ;;  %982 = vst [vmem:[%s1243_s25 + $0xd0] sm:$0xff] %v854_v26  ;;  %vm600_vm12 = vcmp.ge.f32.partialorder %v472_v22, 0.0  ;;  %v728_v32 = vmul.f32 0.2, %v472_v22  ;;  %vm601_vm13 = vcmp.ge.f32.partialorder %v473_v23, 0.0 }
  0x35   : > { %983 = vst [vmem:[%s1243_s25 + $0xd8] sm:$0xff] %v855_v27  ;;  %v729_v33 = vmul.f32 0.2, %v473_v23  ;;  %v474_v34 = vadd.f32 %v1215_v1, %v339_v28  ;;  %v475_v35 = vadd.f32 %v1215_v1, %v340_v29  ;;  %v341_v36 = vmul.f32 %v1205_v0, %v206_v24  ;;  %v217_v9 = vld [vmem:[%s1210_s20 + $0x158] sm:$0xff]  ;;  %v219_v21 = vld [vmem:[%s1210_s20 + $0x168] sm:$0xff] }
  0x36   : > { %v342_v37 = vmul.f32 %v1205_v0, %v207_v25  ;;  %v856_v38 = vsel %vm600_vm12, %v472_v22, %v728_v32  ;;  %v343_v40 = vmul.f32 %v1205_v0, %v208_v30  ;;  %v344_v41 = vmul.f32 %v1205_v0, %v209_v31  ;;  %v220_v32 = vld [vmem:[%s1210_s20 + $0x170] sm:$0xff] }
  0x37   : > { %v857_v39 = vsel %vm601_vm13, %v473_v23, %v729_v33  ;;  %984 = vst [vmem:[%s1243_s25 + $0xe0] sm:$0xff] %v856_v38  ;;  %vm602_vm14 = vcmp.ge.f32.partialorder %v474_v34, 0.0  ;;  %v730_v44 = vmul.f32 0.2, %v474_v34  ;;  %vm603_vm15 = vcmp.ge.f32.partialorder %v475_v35, 0.0  ;;  %v221_v33 = vld [vmem:[%s1210_s20 + $0x178] sm:$0xff] }
  0x38   : > { %985 = vst [vmem:[%s1243_s25 + $0xe8] sm:$0xff] %v857_v39  ;;  %v731_v45 = vmul.f32 0.2, %v475_v35  ;;  %v476_v46 = vadd.f32 %v1215_v1, %v341_v36  ;;  %v477_v47 = vadd.f32 %v1215_v1, %v342_v37  ;;  %v478_v48 = vadd.f32 %v1215_v1, %v343_v40 }
  0x39   : > { %v479_v49 = vadd.f32 %v1215_v1, %v344_v41  ;;  %v858_v50 = vsel %vm602_vm14, %v474_v34, %v730_v44  ;;  %v345_v52 = vmul.f32 %v1205_v0, %v210_v42  ;;  %v346_v53 = vmul.f32 %v1205_v0, %v211_v43  ;;  %v222_v42 = vld [vmem:[%s1210_s20 + $0x180] sm:$0xff]  ;;  %v223_v43 = vld [vmem:[%s1210_s20 + $0x188] sm:$0xff] }
  0x3a   : > { %v859_v51 = vsel %vm603_vm15, %v475_v35, %v731_v45  ;;  %986 = vst [vmem:[%s1243_s25 + $0xf0] sm:$0xff] %v858_v50  ;;  %vm604_vm0 = vcmp.ge.f32.partialorder %v476_v46, 0.0  ;;  %v732_v56 = vmul.f32 0.2, %v476_v46  ;;  %vm605_vm1 = vcmp.ge.f32.partialorder %v477_v47, 0.0 }
  0x3b   : > { %987 = vst [vmem:[%s1243_s25 + $0xf8] sm:$0xff] %v859_v51  ;;  %v733_v57 = vmul.f32 0.2, %v477_v47  ;;  %vm606_vm2 = vcmp.ge.f32.partialorder %v478_v48, 0.0  ;;  %v734_v58 = vmul.f32 0.2, %v478_v48  ;;  %v480_v62 = vadd.f32 %v1215_v1, %v345_v52 }
  0x3c   : > { %vm607_vm3 = vcmp.ge.f32.partialorder %v479_v49, 0.0  ;;  %v735_v59 = vmul.f32 0.2, %v479_v49  ;;  %v860_v60 = vsel %vm604_vm0, %v476_v46, %v732_v56  ;;  %v481_v63 = vadd.f32 %v1215_v1, %v346_v53 }
  0x3d   : > { %v861_v61 = vsel %vm605_vm1, %v477_v47, %v733_v57  ;;  %988 = vst [vmem:[%s1243_s25 + $0x100] sm:$0xff] %v860_v60  ;;  %v862_v4 = vsel %vm606_vm2, %v478_v48, %v734_v58  ;;  %v347_v6 = vmul.f32 %v1205_v0, %v212_v54  ;;  %v348_v7 = vmul.f32 %v1205_v0, %v213_v55  ;;  %v224_v48 = vld [vmem:[%s1210_s20 + $0x190] sm:$0xff]  ;;  %v226_v60 = vld [vmem:[%s1210_s20 + $0x1a0] sm:$0xff] }
  0x3e   : > { %989 = vst [vmem:[%s1243_s25 + $0x108] sm:$0xff] %v861_v61  ;;  %v863_v5 = vsel %vm607_vm3, %v479_v49, %v735_v59  ;;  %990 = vst [vmem:[%s1243_s25 + $0x110] sm:$0xff] %v862_v4  ;;  %vm608_vm4 = vcmp.ge.f32.partialorder %v480_v62, 0.0  ;;  %v736_v10 = vmul.f32 0.2, %v480_v62  ;;  %vm609_vm5 = vcmp.ge.f32.partialorder %v481_v63, 0.0 }
  0x3f   : > { %991 = vst [vmem:[%s1243_s25 + $0x118] sm:$0xff] %v863_v5  ;;  %v737_v11 = vmul.f32 0.2, %v481_v63  ;;  %v482_v12 = vadd.f32 %v1215_v1, %v347_v6  ;;  %v483_v13 = vadd.f32 %v1215_v1, %v348_v7  ;;  %v349_v14 = vmul.f32 %v1205_v0, %v214_v2  ;;  %v225_v49 = vld [vmem:[%s1210_s20 + $0x198] sm:$0xff]  ;;  %v227_v61 = vld [vmem:[%s1210_s20 + $0x1a8] sm:$0xff] }
  0x40   : > { %v350_v15 = vmul.f32 %v1205_v0, %v215_v3  ;;  %v864_v16 = vsel %vm608_vm4, %v480_v62, %v736_v10  ;;  %v351_v18 = vmul.f32 %v1205_v0, %v216_v8  ;;  %v352_v19 = vmul.f32 %v1205_v0, %v217_v9  ;;  %v228_v10 = vld [vmem:[%s1210_s20 + $0x1b0] sm:$0xff] }
  0x41   : > { %v865_v17 = vsel %vm609_vm5, %v481_v63, %v737_v11  ;;  %992 = vst [vmem:[%s1243_s25 + $0x120] sm:$0xff] %v864_v16  ;;  %vm610_vm6 = vcmp.ge.f32.partialorder %v482_v12, 0.0  ;;  %v738_v22 = vmul.f32 0.2, %v482_v12  ;;  %vm611_vm7 = vcmp.ge.f32.partialorder %v483_v13, 0.0  ;;  %v229_v11 = vld [vmem:[%s1210_s20 + $0x1b8] sm:$0xff] }
  0x42   : > { %993 = vst [vmem:[%s1243_s25 + $0x128] sm:$0xff] %v865_v17  ;;  %v739_v23 = vmul.f32 0.2, %v483_v13  ;;  %v484_v24 = vadd.f32 %v1215_v1, %v349_v14  ;;  %v485_v25 = vadd.f32 %v1215_v1, %v350_v15  ;;  %v486_v26 = vadd.f32 %v1215_v1, %v351_v18 }
  0x43   : > { %v487_v27 = vadd.f32 %v1215_v1, %v352_v19  ;;  %v866_v28 = vsel %vm610_vm6, %v482_v12, %v738_v22  ;;  %v353_v30 = vmul.f32 %v1205_v0, %v218_v20  ;;  %v354_v31 = vmul.f32 %v1205_v0, %v219_v21  ;;  %v230_v20 = vld [vmem:[%s1210_s20 + $0x1c0] sm:$0xff]  ;;  %v231_v21 = vld [vmem:[%s1210_s20 + $0x1c8] sm:$0xff] }
  0x44   : > { %v867_v29 = vsel %vm611_vm7, %v483_v13, %v739_v23  ;;  %994 = vst [vmem:[%s1243_s25 + $0x130] sm:$0xff] %v866_v28  ;;  %vm612_vm8 = vcmp.ge.f32.partialorder %v484_v24, 0.0  ;;  %v740_v34 = vmul.f32 0.2, %v484_v24  ;;  %vm613_vm9 = vcmp.ge.f32.partialorder %v485_v25, 0.0 }
  0x45   : > { %995 = vst [vmem:[%s1243_s25 + $0x138] sm:$0xff] %v867_v29  ;;  %v741_v35 = vmul.f32 0.2, %v485_v25  ;;  %vm614_vm10 = vcmp.ge.f32.partialorder %v486_v26, 0.0  ;;  %v742_v36 = vmul.f32 0.2, %v486_v26  ;;  %v488_v40 = vadd.f32 %v1215_v1, %v353_v30 }
  0x46   : > { %vm615_vm11 = vcmp.ge.f32.partialorder %v487_v27, 0.0  ;;  %v743_v37 = vmul.f32 0.2, %v487_v27  ;;  %v868_v38 = vsel %vm612_vm8, %v484_v24, %v740_v34  ;;  %v489_v41 = vadd.f32 %v1215_v1, %v354_v31 }
  0x47   : > { %v869_v39 = vsel %vm613_vm9, %v485_v25, %v741_v35  ;;  %996 = vst [vmem:[%s1243_s25 + $0x140] sm:$0xff] %v868_v38  ;;  %v870_v44 = vsel %vm614_vm10, %v486_v26, %v742_v36  ;;  %v355_v46 = vmul.f32 %v1205_v0, %v220_v32  ;;  %v356_v47 = vmul.f32 %v1205_v0, %v221_v33  ;;  %v232_v26 = vld [vmem:[%s1210_s20 + $0x1d0] sm:$0xff]  ;;  %v234_v38 = vld [vmem:[%s1210_s20 + $0x1e0] sm:$0xff] }
  0x48   : > { %997 = vst [vmem:[%s1243_s25 + $0x148] sm:$0xff] %v869_v39  ;;  %v871_v45 = vsel %vm615_vm11, %v487_v27, %v743_v37  ;;  %998 = vst [vmem:[%s1243_s25 + $0x150] sm:$0xff] %v870_v44  ;;  %vm616_vm12 = vcmp.ge.f32.partialorder %v488_v40, 0.0  ;;  %v744_v50 = vmul.f32 0.2, %v488_v40  ;;  %vm617_vm13 = vcmp.ge.f32.partialorder %v489_v41, 0.0 }
  0x49   : > { %999 = vst [vmem:[%s1243_s25 + $0x158] sm:$0xff] %v871_v45  ;;  %v745_v51 = vmul.f32 0.2, %v489_v41  ;;  %v490_v52 = vadd.f32 %v1215_v1, %v355_v46  ;;  %v491_v53 = vadd.f32 %v1215_v1, %v356_v47  ;;  %v357_v54 = vmul.f32 %v1205_v0, %v222_v42  ;;  %v233_v27 = vld [vmem:[%s1210_s20 + $0x1d8] sm:$0xff]  ;;  %v235_v39 = vld [vmem:[%s1210_s20 + $0x1e8] sm:$0xff] }
  0x4a   : > { %v358_v55 = vmul.f32 %v1205_v0, %v223_v43  ;;  %v872_v56 = vsel %vm616_vm12, %v488_v40, %v744_v50  ;;  %v359_v58 = vmul.f32 %v1205_v0, %v224_v48  ;;  %v360_v59 = vmul.f32 %v1205_v0, %v225_v49  ;;  %v236_v50 = vld [vmem:[%s1210_s20 + $0x1f0] sm:$0xff] }
  0x4b   : > { %v873_v57 = vsel %vm617_vm13, %v489_v41, %v745_v51  ;;  %1000 = vst [vmem:[%s1243_s25 + $0x160] sm:$0xff] %v872_v56  ;;  %vm618_vm14 = vcmp.ge.f32.partialorder %v490_v52, 0.0  ;;  %v746_v62 = vmul.f32 0.2, %v490_v52  ;;  %vm619_vm15 = vcmp.ge.f32.partialorder %v491_v53, 0.0  ;;  %v237_v51 = vld [vmem:[%s1210_s20 + $0x1f8] sm:$0xff] }
  0x4c   : > { %1001 = vst [vmem:[%s1243_s25 + $0x168] sm:$0xff] %v873_v57  ;;  %v747_v63 = vmul.f32 0.2, %v491_v53  ;;  %v492_v2 = vadd.f32 %v1215_v1, %v357_v54  ;;  %v493_v3 = vadd.f32 %v1215_v1, %v358_v55  ;;  %v494_v4 = vadd.f32 %v1215_v1, %v359_v58 }
  0x4d   : > { %v495_v5 = vadd.f32 %v1215_v1, %v360_v59  ;;  %v874_v6 = vsel %vm618_vm14, %v490_v52, %v746_v62  ;;  %v361_v8 = vmul.f32 %v1205_v0, %v226_v60  ;;  %v362_v9 = vmul.f32 %v1205_v0, %v227_v61  ;;  %v238_v60 = vld [vmem:[%s1210_s20 + $0x200] sm:$0xff]  ;;  %v239_v61 = vld [vmem:[%s1210_s20 + $0x208] sm:$0xff] }
  0x4e   : > { %v875_v7 = vsel %vm619_vm15, %v491_v53, %v747_v63  ;;  %1002 = vst [vmem:[%s1243_s25 + $0x170] sm:$0xff] %v874_v6  ;;  %vm620_vm0 = vcmp.ge.f32.partialorder %v492_v2, 0.0  ;;  %v748_v12 = vmul.f32 0.2, %v492_v2  ;;  %vm621_vm1 = vcmp.ge.f32.partialorder %v493_v3, 0.0 }
  0x4f   : > { %1003 = vst [vmem:[%s1243_s25 + $0x178] sm:$0xff] %v875_v7  ;;  %v749_v13 = vmul.f32 0.2, %v493_v3  ;;  %vm622_vm2 = vcmp.ge.f32.partialorder %v494_v4, 0.0  ;;  %v750_v14 = vmul.f32 0.2, %v494_v4  ;;  %v496_v18 = vadd.f32 %v1215_v1, %v361_v8 }
  0x50   : > { %vm623_vm3 = vcmp.ge.f32.partialorder %v495_v5, 0.0  ;;  %v751_v15 = vmul.f32 0.2, %v495_v5  ;;  %v876_v16 = vsel %vm620_vm0, %v492_v2, %v748_v12  ;;  %v497_v19 = vadd.f32 %v1215_v1, %v362_v9 }
  0x51   : > { %v877_v17 = vsel %vm621_vm1, %v493_v3, %v749_v13  ;;  %1004 = vst [vmem:[%s1243_s25 + $0x180] sm:$0xff] %v876_v16  ;;  %v878_v22 = vsel %vm622_vm2, %v494_v4, %v750_v14  ;;  %v363_v24 = vmul.f32 %v1205_v0, %v228_v10  ;;  %v364_v25 = vmul.f32 %v1205_v0, %v229_v11  ;;  %v240_v4 = vld [vmem:[%s1210_s20 + $0x210] sm:$0xff]  ;;  %v242_v16 = vld [vmem:[%s1210_s20 + $0x220] sm:$0xff] }
  0x52   : > { %1005 = vst [vmem:[%s1243_s25 + $0x188] sm:$0xff] %v877_v17  ;;  %v879_v23 = vsel %vm623_vm3, %v495_v5, %v751_v15  ;;  %1006 = vst [vmem:[%s1243_s25 + $0x190] sm:$0xff] %v878_v22  ;;  %vm624_vm4 = vcmp.ge.f32.partialorder %v496_v18, 0.0  ;;  %v752_v28 = vmul.f32 0.2, %v496_v18  ;;  %vm625_vm5 = vcmp.ge.f32.partialorder %v497_v19, 0.0 }
  0x53   : > { %1007 = vst [vmem:[%s1243_s25 + $0x198] sm:$0xff] %v879_v23  ;;  %v753_v29 = vmul.f32 0.2, %v497_v19  ;;  %v498_v30 = vadd.f32 %v1215_v1, %v363_v24  ;;  %v499_v31 = vadd.f32 %v1215_v1, %v364_v25  ;;  %v365_v32 = vmul.f32 %v1205_v0, %v230_v20  ;;  %v241_v5 = vld [vmem:[%s1210_s20 + $0x218] sm:$0xff]  ;;  %v243_v17 = vld [vmem:[%s1210_s20 + $0x228] sm:$0xff] }
  0x54   : > { %v366_v33 = vmul.f32 %v1205_v0, %v231_v21  ;;  %v880_v34 = vsel %vm624_vm4, %v496_v18, %v752_v28  ;;  %v367_v36 = vmul.f32 %v1205_v0, %v232_v26  ;;  %v368_v37 = vmul.f32 %v1205_v0, %v233_v27  ;;  %v244_v28 = vld [vmem:[%s1210_s20 + $0x230] sm:$0xff] }
  0x55   : > { %v881_v35 = vsel %vm625_vm5, %v497_v19, %v753_v29  ;;  %1008 = vst [vmem:[%s1243_s25 + $0x1a0] sm:$0xff] %v880_v34  ;;  %vm626_vm6 = vcmp.ge.f32.partialorder %v498_v30, 0.0  ;;  %v754_v40 = vmul.f32 0.2, %v498_v30  ;;  %vm627_vm7 = vcmp.ge.f32.partialorder %v499_v31, 0.0  ;;  %v245_v29 = vld [vmem:[%s1210_s20 + $0x238] sm:$0xff] }
  0x56   : > { %1009 = vst [vmem:[%s1243_s25 + $0x1a8] sm:$0xff] %v881_v35  ;;  %v755_v41 = vmul.f32 0.2, %v499_v31  ;;  %v500_v42 = vadd.f32 %v1215_v1, %v365_v32  ;;  %v501_v43 = vadd.f32 %v1215_v1, %v366_v33  ;;  %v502_v44 = vadd.f32 %v1215_v1, %v367_v36 }
  0x57   : > { %v503_v45 = vadd.f32 %v1215_v1, %v368_v37  ;;  %v882_v46 = vsel %vm626_vm6, %v498_v30, %v754_v40  ;;  %v369_v48 = vmul.f32 %v1205_v0, %v234_v38  ;;  %v370_v49 = vmul.f32 %v1205_v0, %v235_v39  ;;  %v246_v38 = vld [vmem:[%s1210_s20 + $0x240] sm:$0xff]  ;;  %v247_v39 = vld [vmem:[%s1210_s20 + $0x248] sm:$0xff] }
  0x58   : > { %v883_v47 = vsel %vm627_vm7, %v499_v31, %v755_v41  ;;  %1010 = vst [vmem:[%s1243_s25 + $0x1b0] sm:$0xff] %v882_v46  ;;  %vm628_vm8 = vcmp.ge.f32.partialorder %v500_v42, 0.0  ;;  %v756_v52 = vmul.f32 0.2, %v500_v42  ;;  %vm629_vm9 = vcmp.ge.f32.partialorder %v501_v43, 0.0 }
  0x59   : > { %1011 = vst [vmem:[%s1243_s25 + $0x1b8] sm:$0xff] %v883_v47  ;;  %v757_v53 = vmul.f32 0.2, %v501_v43  ;;  %vm630_vm10 = vcmp.ge.f32.partialorder %v502_v44, 0.0  ;;  %v758_v54 = vmul.f32 0.2, %v502_v44  ;;  %v504_v58 = vadd.f32 %v1215_v1, %v369_v48 }
  0x5a   : > { %vm631_vm11 = vcmp.ge.f32.partialorder %v503_v45, 0.0  ;;  %v759_v55 = vmul.f32 0.2, %v503_v45  ;;  %v884_v56 = vsel %vm628_vm8, %v500_v42, %v756_v52  ;;  %v505_v59 = vadd.f32 %v1215_v1, %v370_v49 }
  0x5b   : > { %v885_v57 = vsel %vm629_vm9, %v501_v43, %v757_v53  ;;  %1012 = vst [vmem:[%s1243_s25 + $0x1c0] sm:$0xff] %v884_v56  ;;  %v886_v62 = vsel %vm630_vm10, %v502_v44, %v758_v54  ;;  %v371_v2 = vmul.f32 %v1205_v0, %v236_v50  ;;  %v372_v3 = vmul.f32 %v1205_v0, %v237_v51  ;;  %v248_v44 = vld [vmem:[%s1210_s20 + $0x250] sm:$0xff]  ;;  %v250_v56 = vld [vmem:[%s1210_s20 + $0x260] sm:$0xff] }
  0x5c   : > { %1013 = vst [vmem:[%s1243_s25 + $0x1c8] sm:$0xff] %v885_v57  ;;  %v887_v63 = vsel %vm631_vm11, %v503_v45, %v759_v55  ;;  %1014 = vst [vmem:[%s1243_s25 + $0x1d0] sm:$0xff] %v886_v62  ;;  %vm632_vm12 = vcmp.ge.f32.partialorder %v504_v58, 0.0  ;;  %v760_v6 = vmul.f32 0.2, %v504_v58  ;;  %vm633_vm13 = vcmp.ge.f32.partialorder %v505_v59, 0.0 }
  0x5d   : > { %1015 = vst [vmem:[%s1243_s25 + $0x1d8] sm:$0xff] %v887_v63  ;;  %v761_v7 = vmul.f32 0.2, %v505_v59  ;;  %v506_v8 = vadd.f32 %v1215_v1, %v371_v2  ;;  %v507_v9 = vadd.f32 %v1215_v1, %v372_v3  ;;  %v373_v10 = vmul.f32 %v1205_v0, %v238_v60  ;;  %v249_v45 = vld [vmem:[%s1210_s20 + $0x258] sm:$0xff]  ;;  %v251_v57 = vld [vmem:[%s1210_s20 + $0x268] sm:$0xff] }
  0x5e   : > { %v374_v11 = vmul.f32 %v1205_v0, %v239_v61  ;;  %v888_v12 = vsel %vm632_vm12, %v504_v58, %v760_v6  ;;  %v375_v14 = vmul.f32 %v1205_v0, %v240_v4  ;;  %v376_v15 = vmul.f32 %v1205_v0, %v241_v5  ;;  %v1530_v3 = vld [vmem:[%s1748_s1] ss:$0 sm:$0xff]  ;;  %v252_v6 = vld [vmem:[%s1210_s20 + $0x270] sm:$0xff] }
  0x5f   : > { %v889_v13 = vsel %vm633_vm13, %v505_v59, %v761_v7  ;;  %1016 = vst [vmem:[%s1243_s25 + $0x1e0] sm:$0xff] %v888_v12  ;;  %vm634_vm14 = vcmp.ge.f32.partialorder %v506_v8, 0.0  ;;  %v762_v18 = vmul.f32 0.2, %v506_v8  ;;  %vm635_vm15 = vcmp.ge.f32.partialorder %v507_v9, 0.0  ;;  %v253_v7 = vld [vmem:[%s1210_s20 + $0x278] sm:$0xff] }
  0x60   : > { %1017 = vst [vmem:[%s1243_s25 + $0x1e8] sm:$0xff] %v889_v13  ;;  %v763_v19 = vmul.f32 0.2, %v507_v9  ;;  %v508_v20 = vadd.f32 %v1215_v1, %v373_v10  ;;  %v509_v21 = vadd.f32 %v1215_v1, %v374_v11  ;;  %v510_v22 = vadd.f32 %v1215_v1, %v375_v14  ;;  %v1521_v59 = vld [vmem:[%s1749_s2] ss:$0 sm:$0xff] }
  0x61   : > { %v511_v23 = vadd.f32 %v1215_v1, %v376_v15  ;;  %v890_v24 = vsel %vm634_vm14, %v506_v8, %v762_v18  ;;  %v377_v26 = vmul.f32 %v1205_v0, %v242_v16  ;;  %v378_v27 = vmul.f32 %v1205_v0, %v243_v17  ;;  %v254_v16 = vld [vmem:[%s1210_s20 + $0x280] sm:$0xff]  ;;  %v255_v17 = vld [vmem:[%s1210_s20 + $0x288] sm:$0xff] }
  0x62   : > { %v891_v25 = vsel %vm635_vm15, %v507_v9, %v763_v19  ;;  %1018 = vst [vmem:[%s1243_s25 + $0x1f0] sm:$0xff] %v890_v24  ;;  %vm636_vm0 = vcmp.ge.f32.partialorder %v508_v20, 0.0  ;;  %v764_v30 = vmul.f32 0.2, %v508_v20  ;;  %vm637_vm1 = vcmp.ge.f32.partialorder %v509_v21, 0.0 }
  0x63   : > { %1019 = vst [vmem:[%s1243_s25 + $0x1f8] sm:$0xff] %v891_v25  ;;  %v765_v31 = vmul.f32 0.2, %v509_v21  ;;  %vm638_vm2 = vcmp.ge.f32.partialorder %v510_v22, 0.0  ;;  %v766_v32 = vmul.f32 0.2, %v510_v22  ;;  %v512_v36 = vadd.f32 %v1215_v1, %v377_v26 }
  0x64   : > { %vm639_vm3 = vcmp.ge.f32.partialorder %v511_v23, 0.0  ;;  %v767_v33 = vmul.f32 0.2, %v511_v23  ;;  %v892_v34 = vsel %vm636_vm0, %v508_v20, %v764_v30  ;;  %v513_v37 = vadd.f32 %v1215_v1, %v378_v27 }
  0x65   : > { %v893_v35 = vsel %vm637_vm1, %v509_v21, %v765_v31  ;;  %1020 = vst [vmem:[%s1243_s25 + $0x200] sm:$0xff] %v892_v34  ;;  %v894_v40 = vsel %vm638_vm2, %v510_v22, %v766_v32  ;;  %v379_v42 = vmul.f32 %v1205_v0, %v244_v28  ;;  %v380_v43 = vmul.f32 %v1205_v0, %v245_v29  ;;  %v256_v22 = vld [vmem:[%s1210_s20 + $0x290] sm:$0xff]  ;;  %v258_v34 = vld [vmem:[%s1210_s20 + $0x2a0] sm:$0xff] }
  0x66   : > { %1021 = vst [vmem:[%s1243_s25 + $0x208] sm:$0xff] %v893_v35  ;;  %v895_v41 = vsel %vm639_vm3, %v511_v23, %v767_v33  ;;  %1022 = vst [vmem:[%s1243_s25 + $0x210] sm:$0xff] %v894_v40  ;;  %vm640_vm4 = vcmp.ge.f32.partialorder %v512_v36, 0.0  ;;  %v768_v46 = vmul.f32 0.2, %v512_v36  ;;  %vm641_vm5 = vcmp.ge.f32.partialorder %v513_v37, 0.0 }
  0x67   : > { %1023 = vst [vmem:[%s1243_s25 + $0x218] sm:$0xff] %v895_v41  ;;  %v769_v47 = vmul.f32 0.2, %v513_v37  ;;  %v514_v48 = vadd.f32 %v1215_v1, %v379_v42  ;;  %v515_v49 = vadd.f32 %v1215_v1, %v380_v43  ;;  %v381_v50 = vmul.f32 %v1205_v0, %v246_v38  ;;  %v257_v23 = vld [vmem:[%s1210_s20 + $0x298] sm:$0xff]  ;;  %v259_v35 = vld [vmem:[%s1210_s20 + $0x2a8] sm:$0xff] }
  0x68   : > { %v382_v51 = vmul.f32 %v1205_v0, %v247_v39  ;;  %v896_v52 = vsel %vm640_vm4, %v512_v36, %v768_v46  ;;  %v383_v54 = vmul.f32 %v1205_v0, %v248_v44  ;;  %v384_v55 = vmul.f32 %v1205_v0, %v249_v45  ;;  %v260_v46 = vld [vmem:[%s1210_s20 + $0x2b0] sm:$0xff] }
  0x69   : > { %v897_v53 = vsel %vm641_vm5, %v513_v37, %v769_v47  ;;  %1024 = vst [vmem:[%s1243_s25 + $0x220] sm:$0xff] %v896_v52  ;;  %vm642_vm6 = vcmp.ge.f32.partialorder %v514_v48, 0.0  ;;  %v770_v58 = vmul.f32 0.2, %v514_v48  ;;  %vm643_vm7 = vcmp.ge.f32.partialorder %v515_v49, 0.0  ;;  %v261_v47 = vld [vmem:[%s1210_s20 + $0x2b8] sm:$0xff] }
  0x6a   : > { %1025 = vst [vmem:[%s1243_s25 + $0x228] sm:$0xff] %v897_v53  ;;  %v771_v1 = vmul.f32 0.2, %v515_v49  ;;  %v516_v60 = vadd.f32 %v1521_v59, %v381_v50  ;;  %v517_v0 = vadd.f32 %v1521_v59, %v382_v51  ;;  %v518_v61 = vadd.f32 %v1521_v59, %v383_v54 }
  0x6b   : > { %v519_v62 = vadd.f32 %v1521_v59, %v384_v55  ;;  %v898_v63 = vsel %vm642_vm6, %v514_v48, %v770_v58  ;;  %v385_v4 = vmul.f32 %v1530_v3, %v250_v56  ;;  %v386_v5 = vmul.f32 %v1530_v3, %v251_v57  ;;  %v262_v56 = vld [vmem:[%s1210_s20 + $0x2c0] sm:$0xff]  ;;  %v263_v57 = vld [vmem:[%s1210_s20 + $0x2c8] sm:$0xff] }
  0x6c   : > { %v899_v2 = vsel %vm643_vm7, %v515_v49, %v771_v1  ;;  %1026 = vst [vmem:[%s1243_s25 + $0x230] sm:$0xff] %v898_v63  ;;  %vm644_vm8 = vcmp.ge.f32.partialorder %v516_v60, 0.0  ;;  %v772_v8 = vmul.f32 0.2, %v516_v60  ;;  %vm645_vm9 = vcmp.ge.f32.partialorder %v517_v0, 0.0 }
  0x6d   : > { %1027 = vst [vmem:[%s1243_s25 + $0x238] sm:$0xff] %v899_v2  ;;  %v773_v9 = vmul.f32 0.2, %v517_v0  ;;  %vm646_vm10 = vcmp.ge.f32.partialorder %v518_v61, 0.0  ;;  %v774_v10 = vmul.f32 0.2, %v518_v61  ;;  %v520_v14 = vadd.f32 %v1521_v59, %v385_v4 }
  0x6e   : > { %vm647_vm11 = vcmp.ge.f32.partialorder %v519_v62, 0.0  ;;  %v775_v11 = vmul.f32 0.2, %v519_v62  ;;  %v900_v12 = vsel %vm644_vm8, %v516_v60, %v772_v8  ;;  %v521_v15 = vadd.f32 %v1521_v59, %v386_v5 }
  0x6f   : > { %v901_v13 = vsel %vm645_vm9, %v517_v0, %v773_v9  ;;  %1028 = vst [vmem:[%s1243_s25 + $0x240] sm:$0xff] %v900_v12  ;;  %v902_v18 = vsel %vm646_vm10, %v518_v61, %v774_v10  ;;  %v387_v20 = vmul.f32 %v1530_v3, %v252_v6  ;;  %v388_v21 = vmul.f32 %v1530_v3, %v253_v7  ;;  %v264_v61 = vld [vmem:[%s1210_s20 + $0x2d0] sm:$0xff]  ;;  %v266_v12 = vld [vmem:[%s1210_s20 + $0x2e0] sm:$0xff] }
  0x70   : > { %1029 = vst [vmem:[%s1243_s25 + $0x248] sm:$0xff] %v901_v13  ;;  %v903_v19 = vsel %vm647_vm11, %v519_v62, %v775_v11  ;;  %1030 = vst [vmem:[%s1243_s25 + $0x250] sm:$0xff] %v902_v18  ;;  %vm648_vm12 = vcmp.ge.f32.partialorder %v520_v14, 0.0  ;;  %v776_v24 = vmul.f32 0.2, %v520_v14  ;;  %vm649_vm13 = vcmp.ge.f32.partialorder %v521_v15, 0.0 }
  0x71   : > { %1031 = vst [vmem:[%s1243_s25 + $0x258] sm:$0xff] %v903_v19  ;;  %v777_v25 = vmul.f32 0.2, %v521_v15  ;;  %v522_v26 = vadd.f32 %v1521_v59, %v387_v20  ;;  %v523_v27 = vadd.f32 %v1521_v59, %v388_v21  ;;  %v389_v28 = vmul.f32 %v1530_v3, %v254_v16  ;;  %v265_v62 = vld [vmem:[%s1210_s20 + $0x2d8] sm:$0xff]  ;;  %v267_v13 = vld [vmem:[%s1210_s20 + $0x2e8] sm:$0xff] }
  0x72   : > { %v390_v29 = vmul.f32 %v1530_v3, %v255_v17  ;;  %v904_v30 = vsel %vm648_vm12, %v520_v14, %v776_v24  ;;  %v391_v32 = vmul.f32 %v1530_v3, %v256_v22  ;;  %v392_v33 = vmul.f32 %v1530_v3, %v257_v23  ;;  %v268_v24 = vld [vmem:[%s1210_s20 + $0x2f0] sm:$0xff] }
  0x73   : > { %v905_v31 = vsel %vm649_vm13, %v521_v15, %v777_v25  ;;  %1032 = vst [vmem:[%s1243_s25 + $0x260] sm:$0xff] %v904_v30  ;;  %vm650_vm14 = vcmp.ge.f32.partialorder %v522_v26, 0.0  ;;  %v778_v36 = vmul.f32 0.2, %v522_v26  ;;  %vm651_vm15 = vcmp.ge.f32.partialorder %v523_v27, 0.0  ;;  %v269_v25 = vld [vmem:[%s1210_s20 + $0x2f8] sm:$0xff] }
  0x74   : > { %1033 = vst [vmem:[%s1243_s25 + $0x268] sm:$0xff] %v905_v31  ;;  %v779_v37 = vmul.f32 0.2, %v523_v27  ;;  %v524_v38 = vadd.f32 %v1521_v59, %v389_v28  ;;  %v525_v39 = vadd.f32 %v1521_v59, %v390_v29  ;;  %v526_v40 = vadd.f32 %v1521_v59, %v391_v32 }
  0x75   : > { %v527_v41 = vadd.f32 %v1521_v59, %v392_v33  ;;  %v906_v42 = vsel %vm650_vm14, %v522_v26, %v778_v36  ;;  %v393_v44 = vmul.f32 %v1530_v3, %v258_v34  ;;  %v394_v45 = vmul.f32 %v1530_v3, %v259_v35  ;;  %v270_v34 = vld [vmem:[%s1210_s20 + $0x300] sm:$0xff]  ;;  %v271_v35 = vld [vmem:[%s1210_s20 + $0x308] sm:$0xff] }
  0x76   : > { %v907_v43 = vsel %vm651_vm15, %v523_v27, %v779_v37  ;;  %1034 = vst [vmem:[%s1243_s25 + $0x270] sm:$0xff] %v906_v42  ;;  %vm652_vm0 = vcmp.ge.f32.partialorder %v524_v38, 0.0  ;;  %v780_v48 = vmul.f32 0.2, %v524_v38  ;;  %vm653_vm1 = vcmp.ge.f32.partialorder %v525_v39, 0.0 }
  0x77   : > { %1035 = vst [vmem:[%s1243_s25 + $0x278] sm:$0xff] %v907_v43  ;;  %v781_v49 = vmul.f32 0.2, %v525_v39  ;;  %vm654_vm2 = vcmp.ge.f32.partialorder %v526_v40, 0.0  ;;  %v782_v50 = vmul.f32 0.2, %v526_v40  ;;  %v528_v54 = vadd.f32 %v1521_v59, %v393_v44 }
  0x78   : > { %vm655_vm3 = vcmp.ge.f32.partialorder %v527_v41, 0.0  ;;  %v783_v51 = vmul.f32 0.2, %v527_v41  ;;  %v908_v52 = vsel %vm652_vm0, %v524_v38, %v780_v48  ;;  %v529_v55 = vadd.f32 %v1521_v59, %v394_v45 }
  0x79   : > { %v909_v53 = vsel %vm653_vm1, %v525_v39, %v781_v49  ;;  %1036 = vst [vmem:[%s1243_s25 + $0x280] sm:$0xff] %v908_v52  ;;  %v910_v58 = vsel %vm654_vm2, %v526_v40, %v782_v50  ;;  %v395_v60 = vmul.f32 %v1530_v3, %v260_v46  ;;  %v396_v0 = vmul.f32 %v1530_v3, %v261_v47  ;;  %v272_v40 = vld [vmem:[%s1210_s20 + $0x310] sm:$0xff]  ;;  %v274_v52 = vld [vmem:[%s1210_s20 + $0x320] sm:$0xff] }
  0x7a   : > { %1037 = vst [vmem:[%s1243_s25 + $0x288] sm:$0xff] %v909_v53  ;;  %v911_v1 = vsel %vm655_vm3, %v527_v41, %v783_v51  ;;  %1038 = vst [vmem:[%s1243_s25 + $0x290] sm:$0xff] %v910_v58  ;;  %vm656_vm4 = vcmp.ge.f32.partialorder %v528_v54, 0.0  ;;  %v784_v63 = vmul.f32 0.2, %v528_v54  ;;  %vm657_vm5 = vcmp.ge.f32.partialorder %v529_v55, 0.0 }
  0x7b   : > { %1039 = vst [vmem:[%s1243_s25 + $0x298] sm:$0xff] %v911_v1  ;;  %v785_v2 = vmul.f32 0.2, %v529_v55  ;;  %v530_v4 = vadd.f32 %v1521_v59, %v395_v60  ;;  %v531_v5 = vadd.f32 %v1521_v59, %v396_v0  ;;  %v397_v6 = vmul.f32 %v1530_v3, %v262_v56  ;;  %v273_v41 = vld [vmem:[%s1210_s20 + $0x318] sm:$0xff]  ;;  %v275_v53 = vld [vmem:[%s1210_s20 + $0x328] sm:$0xff] }
  0x7c   : > { %v398_v7 = vmul.f32 %v1530_v3, %v263_v57  ;;  %v912_v8 = vsel %vm656_vm4, %v528_v54, %v784_v63  ;;  %v399_v10 = vmul.f32 %v1530_v3, %v264_v61  ;;  %v400_v11 = vmul.f32 %v1530_v3, %v265_v62  ;;  %v276_v63 = vld [vmem:[%s1210_s20 + $0x330] sm:$0xff] }
  0x7d   : > { %v913_v9 = vsel %vm657_vm5, %v529_v55, %v785_v2  ;;  %1040 = vst [vmem:[%s1243_s25 + $0x2a0] sm:$0xff] %v912_v8  ;;  %vm658_vm6 = vcmp.ge.f32.partialorder %v530_v4, 0.0  ;;  %v786_v14 = vmul.f32 0.2, %v530_v4  ;;  %vm659_vm7 = vcmp.ge.f32.partialorder %v531_v5, 0.0  ;;  %v277_v2 = vld [vmem:[%s1210_s20 + $0x338] sm:$0xff] }
  0x7e   : > { %1041 = vst [vmem:[%s1243_s25 + $0x2a8] sm:$0xff] %v913_v9  ;;  %v787_v15 = vmul.f32 0.2, %v531_v5  ;;  %v532_v16 = vadd.f32 %v1521_v59, %v397_v6  ;;  %v533_v17 = vadd.f32 %v1521_v59, %v398_v7  ;;  %v534_v18 = vadd.f32 %v1521_v59, %v399_v10 }
  0x7f   : > { %v535_v19 = vadd.f32 %v1521_v59, %v400_v11  ;;  %v914_v20 = vsel %vm658_vm6, %v530_v4, %v786_v14  ;;  %v401_v22 = vmul.f32 %v1530_v3, %v266_v12  ;;  %v402_v23 = vmul.f32 %v1530_v3, %v267_v13  ;;  %v278_v12 = vld [vmem:[%s1210_s20 + $0x340] sm:$0xff]  ;;  %v279_v13 = vld [vmem:[%s1210_s20 + $0x348] sm:$0xff] }
  0x80   : > { %v915_v21 = vsel %vm659_vm7, %v531_v5, %v787_v15  ;;  %1042 = vst [vmem:[%s1243_s25 + $0x2b0] sm:$0xff] %v914_v20  ;;  %vm660_vm8 = vcmp.ge.f32.partialorder %v532_v16, 0.0  ;;  %v788_v26 = vmul.f32 0.2, %v532_v16  ;;  %vm661_vm9 = vcmp.ge.f32.partialorder %v533_v17, 0.0 }
  0x81   : > { %1043 = vst [vmem:[%s1243_s25 + $0x2b8] sm:$0xff] %v915_v21  ;;  %v789_v27 = vmul.f32 0.2, %v533_v17  ;;  %vm662_vm10 = vcmp.ge.f32.partialorder %v534_v18, 0.0  ;;  %v790_v28 = vmul.f32 0.2, %v534_v18  ;;  %v536_v32 = vadd.f32 %v1521_v59, %v401_v22 }
  0x82   : > { %vm663_vm11 = vcmp.ge.f32.partialorder %v535_v19, 0.0  ;;  %v791_v29 = vmul.f32 0.2, %v535_v19  ;;  %v916_v30 = vsel %vm660_vm8, %v532_v16, %v788_v26  ;;  %v537_v33 = vadd.f32 %v1521_v59, %v402_v23 }
  0x83   : > { %v917_v31 = vsel %vm661_vm9, %v533_v17, %v789_v27  ;;  %1044 = vst [vmem:[%s1243_s25 + $0x2c0] sm:$0xff] %v916_v30  ;;  %v918_v36 = vsel %vm662_vm10, %v534_v18, %v790_v28  ;;  %v403_v38 = vmul.f32 %v1530_v3, %v268_v24  ;;  %v404_v39 = vmul.f32 %v1530_v3, %v269_v25  ;;  %v280_v18 = vld [vmem:[%s1210_s20 + $0x350] sm:$0xff]  ;;  %v282_v30 = vld [vmem:[%s1210_s20 + $0x360] sm:$0xff] }
  0x84   : > { %1045 = vst [vmem:[%s1243_s25 + $0x2c8] sm:$0xff] %v917_v31  ;;  %v919_v37 = vsel %vm663_vm11, %v535_v19, %v791_v29  ;;  %1046 = vst [vmem:[%s1243_s25 + $0x2d0] sm:$0xff] %v918_v36  ;;  %vm664_vm12 = vcmp.ge.f32.partialorder %v536_v32, 0.0  ;;  %v792_v42 = vmul.f32 0.2, %v536_v32  ;;  %vm665_vm13 = vcmp.ge.f32.partialorder %v537_v33, 0.0 }
  0x85   : > { %1047 = vst [vmem:[%s1243_s25 + $0x2d8] sm:$0xff] %v919_v37  ;;  %v793_v43 = vmul.f32 0.2, %v537_v33  ;;  %v538_v44 = vadd.f32 %v1521_v59, %v403_v38  ;;  %v539_v45 = vadd.f32 %v1521_v59, %v404_v39  ;;  %v405_v46 = vmul.f32 %v1530_v3, %v270_v34  ;;  %v281_v19 = vld [vmem:[%s1210_s20 + $0x358] sm:$0xff]  ;;  %v283_v31 = vld [vmem:[%s1210_s20 + $0x368] sm:$0xff] }
  0x86   : > { %v406_v47 = vmul.f32 %v1530_v3, %v271_v35  ;;  %v920_v48 = vsel %vm664_vm12, %v536_v32, %v792_v42  ;;  %v407_v50 = vmul.f32 %v1530_v3, %v272_v40  ;;  %v408_v51 = vmul.f32 %v1530_v3, %v273_v41  ;;  %v284_v42 = vld [vmem:[%s1210_s20 + $0x370] sm:$0xff] }
  0x87   : > { %v921_v49 = vsel %vm665_vm13, %v537_v33, %v793_v43  ;;  %1048 = vst [vmem:[%s1243_s25 + $0x2e0] sm:$0xff] %v920_v48  ;;  %vm666_vm14 = vcmp.ge.f32.partialorder %v538_v44, 0.0  ;;  %v794_v54 = vmul.f32 0.2, %v538_v44  ;;  %vm667_vm15 = vcmp.ge.f32.partialorder %v539_v45, 0.0  ;;  %v285_v43 = vld [vmem:[%s1210_s20 + $0x378] sm:$0xff] }
  0x88   : > { %1049 = vst [vmem:[%s1243_s25 + $0x2e8] sm:$0xff] %v921_v49  ;;  %v795_v55 = vmul.f32 0.2, %v539_v45  ;;  %v540_v56 = vadd.f32 %v1521_v59, %v405_v46  ;;  %v541_v57 = vadd.f32 %v1521_v59, %v406_v47  ;;  %v542_v58 = vadd.f32 %v1521_v59, %v407_v50 }
  0x89   : > { %v543_v1 = vadd.f32 %v1521_v59, %v408_v51  ;;  %v922_v60 = vsel %vm666_vm14, %v538_v44, %v794_v54  ;;  %v409_v61 = vmul.f32 %v1530_v3, %v274_v52  ;;  %v410_v62 = vmul.f32 %v1530_v3, %v275_v53  ;;  %v286_v52 = vld [vmem:[%s1210_s20 + $0x380] sm:$0xff]  ;;  %v287_v53 = vld [vmem:[%s1210_s20 + $0x388] sm:$0xff] }
  0x8a   : > { %v923_v0 = vsel %vm667_vm15, %v539_v45, %v795_v55  ;;  %1050 = vst [vmem:[%s1243_s25 + $0x2f0] sm:$0xff] %v922_v60  ;;  %vm668_vm0 = vcmp.ge.f32.partialorder %v540_v56, 0.0  ;;  %v796_v4 = vmul.f32 0.2, %v540_v56  ;;  %vm669_vm1 = vcmp.ge.f32.partialorder %v541_v57, 0.0 }
  0x8b   : > { %1051 = vst [vmem:[%s1243_s25 + $0x2f8] sm:$0xff] %v923_v0  ;;  %v797_v5 = vmul.f32 0.2, %v541_v57  ;;  %vm670_vm2 = vcmp.ge.f32.partialorder %v542_v58, 0.0  ;;  %v798_v6 = vmul.f32 0.2, %v542_v58  ;;  %v544_v10 = vadd.f32 %v1521_v59, %v409_v61 }
  0x8c   : > { %vm671_vm3 = vcmp.ge.f32.partialorder %v543_v1, 0.0  ;;  %v799_v7 = vmul.f32 0.2, %v543_v1  ;;  %v924_v8 = vsel %vm668_vm0, %v540_v56, %v796_v4  ;;  %v545_v11 = vadd.f32 %v1521_v59, %v410_v62 }
  0x8d   : > { %v925_v9 = vsel %vm669_vm1, %v541_v57, %v797_v5  ;;  %1052 = vst [vmem:[%s1243_s25 + $0x300] sm:$0xff] %v924_v8  ;;  %v926_v14 = vsel %vm670_vm2, %v542_v58, %v798_v6  ;;  %v411_v16 = vmul.f32 %v1530_v3, %v276_v63  ;;  %v412_v17 = vmul.f32 %v1530_v3, %v277_v2  ;;  %v288_v58 = vld [vmem:[%s1210_s20 + $0x390] sm:$0xff]  ;;  %v290_v8 = vld [vmem:[%s1210_s20 + $0x3a0] sm:$0xff] }
  0x8e   : > { %1053 = vst [vmem:[%s1243_s25 + $0x308] sm:$0xff] %v925_v9  ;;  %v927_v15 = vsel %vm671_vm3, %v543_v1, %v799_v7  ;;  %1054 = vst [vmem:[%s1243_s25 + $0x310] sm:$0xff] %v926_v14  ;;  %vm672_vm4 = vcmp.ge.f32.partialorder %v544_v10, 0.0  ;;  %v800_v20 = vmul.f32 0.2, %v544_v10  ;;  %vm673_vm5 = vcmp.ge.f32.partialorder %v545_v11, 0.0 }
  0x8f   : > { %1055 = vst [vmem:[%s1243_s25 + $0x318] sm:$0xff] %v927_v15  ;;  %v801_v21 = vmul.f32 0.2, %v545_v11  ;;  %v546_v22 = vadd.f32 %v1521_v59, %v411_v16  ;;  %v547_v23 = vadd.f32 %v1521_v59, %v412_v17  ;;  %v413_v24 = vmul.f32 %v1530_v3, %v278_v12  ;;  %v289_v1 = vld [vmem:[%s1210_s20 + $0x398] sm:$0xff]  ;;  %v291_v9 = vld [vmem:[%s1210_s20 + $0x3a8] sm:$0xff] }
  0x90   : > { %v414_v25 = vmul.f32 %v1530_v3, %v279_v13  ;;  %v928_v26 = vsel %vm672_vm4, %v544_v10, %v800_v20  ;;  %v415_v28 = vmul.f32 %v1530_v3, %v280_v18  ;;  %v416_v29 = vmul.f32 %v1530_v3, %v281_v19  ;;  %v292_v20 = vld [vmem:[%s1210_s20 + $0x3b0] sm:$0xff] }
  0x91   : > { %v929_v27 = vsel %vm673_vm5, %v545_v11, %v801_v21  ;;  %1056 = vst [vmem:[%s1243_s25 + $0x320] sm:$0xff] %v928_v26  ;;  %vm674_vm6 = vcmp.ge.f32.partialorder %v546_v22, 0.0  ;;  %v802_v32 = vmul.f32 0.2, %v546_v22  ;;  %vm675_vm7 = vcmp.ge.f32.partialorder %v547_v23, 0.0  ;;  %v293_v21 = vld [vmem:[%s1210_s20 + $0x3b8] sm:$0xff] }
  0x92   : > { %1057 = vst [vmem:[%s1243_s25 + $0x328] sm:$0xff] %v929_v27  ;;  %v803_v33 = vmul.f32 0.2, %v547_v23  ;;  %v548_v34 = vadd.f32 %v1521_v59, %v413_v24  ;;  %v549_v35 = vadd.f32 %v1521_v59, %v414_v25  ;;  %v550_v36 = vadd.f32 %v1521_v59, %v415_v28 }
  0x93   : > { %v551_v37 = vadd.f32 %v1521_v59, %v416_v29  ;;  %v930_v38 = vsel %vm674_vm6, %v546_v22, %v802_v32  ;;  %v417_v40 = vmul.f32 %v1530_v3, %v282_v30  ;;  %v418_v41 = vmul.f32 %v1530_v3, %v283_v31  ;;  %v294_v30 = vld [vmem:[%s1210_s20 + $0x3c0] sm:$0xff]  ;;  %v295_v31 = vld [vmem:[%s1210_s20 + $0x3c8] sm:$0xff] }
  0x94   : > { %v931_v39 = vsel %vm675_vm7, %v547_v23, %v803_v33  ;;  %1058 = vst [vmem:[%s1243_s25 + $0x330] sm:$0xff] %v930_v38  ;;  %vm676_vm8 = vcmp.ge.f32.partialorder %v548_v34, 0.0  ;;  %v804_v44 = vmul.f32 0.2, %v548_v34  ;;  %vm677_vm9 = vcmp.ge.f32.partialorder %v549_v35, 0.0 }
  0x95   : > { %1059 = vst [vmem:[%s1243_s25 + $0x338] sm:$0xff] %v931_v39  ;;  %v805_v45 = vmul.f32 0.2, %v549_v35  ;;  %vm678_vm10 = vcmp.ge.f32.partialorder %v550_v36, 0.0  ;;  %v806_v46 = vmul.f32 0.2, %v550_v36  ;;  %v552_v50 = vadd.f32 %v1521_v59, %v417_v40 }
  0x96   : > { %vm679_vm11 = vcmp.ge.f32.partialorder %v551_v37, 0.0  ;;  %v807_v47 = vmul.f32 0.2, %v551_v37  ;;  %v932_v48 = vsel %vm676_vm8, %v548_v34, %v804_v44  ;;  %v553_v51 = vadd.f32 %v1521_v59, %v418_v41 }
  0x97   : > { %v933_v49 = vsel %vm677_vm9, %v549_v35, %v805_v45  ;;  %1060 = vst [vmem:[%s1243_s25 + $0x340] sm:$0xff] %v932_v48  ;;  %v934_v54 = vsel %vm678_vm10, %v550_v36, %v806_v46  ;;  %v419_v56 = vmul.f32 %v1530_v3, %v284_v42  ;;  %v420_v57 = vmul.f32 %v1530_v3, %v285_v43  ;;  %v296_v36 = vld [vmem:[%s1210_s20 + $0x3d0] sm:$0xff]  ;;  %v298_v48 = vld [vmem:[%s1210_s20 + $0x3e0] sm:$0xff] }
  0x98   : > { %1061 = vst [vmem:[%s1243_s25 + $0x348] sm:$0xff] %v933_v49  ;;  %v935_v55 = vsel %vm679_vm11, %v551_v37, %v807_v47  ;;  %1062 = vst [vmem:[%s1243_s25 + $0x350] sm:$0xff] %v934_v54  ;;  %vm680_vm12 = vcmp.ge.f32.partialorder %v552_v50, 0.0  ;;  %v808_v60 = vmul.f32 0.2, %v552_v50  ;;  %vm681_vm13 = vcmp.ge.f32.partialorder %v553_v51, 0.0 }
  0x99   : > { %1063 = vst [vmem:[%s1243_s25 + $0x358] sm:$0xff] %v935_v55  ;;  %v809_v0 = vmul.f32 0.2, %v553_v51  ;;  %v554_v61 = vadd.f32 %v1521_v59, %v419_v56  ;;  %v555_v62 = vadd.f32 %v1521_v59, %v420_v57  ;;  %v421_v63 = vmul.f32 %v1530_v3, %v286_v52  ;;  %v297_v37 = vld [vmem:[%s1210_s20 + $0x3d8] sm:$0xff]  ;;  %v299_v49 = vld [vmem:[%s1210_s20 + $0x3e8] sm:$0xff] }
  0x9a   : > { %v422_v2 = vmul.f32 %v1530_v3, %v287_v53  ;;  %v936_v4 = vsel %vm680_vm12, %v552_v50, %v808_v60  ;;  %v423_v6 = vmul.f32 %v1530_v3, %v288_v58  ;;  %v424_v7 = vmul.f32 %v1530_v3, %v289_v1  ;;  %v300_v60 = vld [vmem:[%s1210_s20 + $0x3f0] sm:$0xff] }
  0x9b   : > { %v937_v5 = vsel %vm681_vm13, %v553_v51, %v809_v0  ;;  %1064 = vst [vmem:[%s1243_s25 + $0x360] sm:$0xff] %v936_v4  ;;  %vm682_vm14 = vcmp.ge.f32.partialorder %v554_v61, 0.0  ;;  %v810_v10 = vmul.f32 0.2, %v554_v61  ;;  %vm683_vm15 = vcmp.ge.f32.partialorder %v555_v62, 0.0  ;;  %v301_v0 = vld [vmem:[%s1210_s20 + $0x3f8] sm:$0xff] }
  0x9c   : > { %1065 = vst [vmem:[%s1243_s25 + $0x368] sm:$0xff] %v937_v5  ;;  %v811_v11 = vmul.f32 0.2, %v555_v62  ;;  %v556_v12 = vadd.f32 %v1521_v59, %v421_v63  ;;  %v557_v13 = vadd.f32 %v1521_v59, %v422_v2  ;;  %v558_v14 = vadd.f32 %v1521_v59, %v423_v6 }
  0x9d   : > { %v559_v15 = vadd.f32 %v1521_v59, %v424_v7  ;;  %v938_v16 = vsel %vm682_vm14, %v554_v61, %v810_v10  ;;  %v425_v18 = vmul.f32 %v1530_v3, %v290_v8  ;;  %v426_v19 = vmul.f32 %v1530_v3, %v291_v9 }
  0x9e   : > { %v939_v17 = vsel %vm683_vm15, %v555_v62, %v811_v11  ;;  %1066 = vst [vmem:[%s1243_s25 + $0x370] sm:$0xff] %v938_v16  ;;  %vm684_vm0 = vcmp.ge.f32.partialorder %v556_v12, 0.0  ;;  %v812_v22 = vmul.f32 0.2, %v556_v12  ;;  %vm685_vm1 = vcmp.ge.f32.partialorder %v557_v13, 0.0 }
  0x9f   : > { %1067 = vst [vmem:[%s1243_s25 + $0x378] sm:$0xff] %v939_v17  ;;  %v813_v23 = vmul.f32 0.2, %v557_v13  ;;  %vm686_vm2 = vcmp.ge.f32.partialorder %v558_v14, 0.0  ;;  %v814_v24 = vmul.f32 0.2, %v558_v14  ;;  %v560_v28 = vadd.f32 %v1521_v59, %v425_v18 }
  0xa0   : > { %vm687_vm3 = vcmp.ge.f32.partialorder %v559_v15, 0.0  ;;  %v815_v25 = vmul.f32 0.2, %v559_v15  ;;  %v940_v26 = vsel %vm684_vm0, %v556_v12, %v812_v22  ;;  %v561_v29 = vadd.f32 %v1521_v59, %v426_v19 }
  0xa1   : > { %v941_v27 = vsel %vm685_vm1, %v557_v13, %v813_v23  ;;  %1068 = vst [vmem:[%s1243_s25 + $0x380] sm:$0xff] %v940_v26  ;;  %v942_v32 = vsel %vm686_vm2, %v558_v14, %v814_v24  ;;  %v427_v34 = vmul.f32 %v1530_v3, %v292_v20  ;;  %v428_v35 = vmul.f32 %v1530_v3, %v293_v21 }
  0xa2   : > { %1069 = vst [vmem:[%s1243_s25 + $0x388] sm:$0xff] %v941_v27  ;;  %v943_v33 = vsel %vm687_vm3, %v559_v15, %v815_v25  ;;  %1070 = vst [vmem:[%s1243_s25 + $0x390] sm:$0xff] %v942_v32  ;;  %vm688_vm4 = vcmp.ge.f32.partialorder %v560_v28, 0.0  ;;  %v816_v38 = vmul.f32 0.2, %v560_v28  ;;  %vm689_vm5 = vcmp.ge.f32.partialorder %v561_v29, 0.0 }
  0xa3   : > { %1071 = vst [vmem:[%s1243_s25 + $0x398] sm:$0xff] %v943_v33  ;;  %v817_v39 = vmul.f32 0.2, %v561_v29  ;;  %v562_v40 = vadd.f32 %v1521_v59, %v427_v34  ;;  %v563_v41 = vadd.f32 %v1521_v59, %v428_v35  ;;  %v429_v42 = vmul.f32 %v1530_v3, %v294_v30 }
  0xa4   : > { %v430_v43 = vmul.f32 %v1530_v3, %v295_v31  ;;  %v944_v44 = vsel %vm688_vm4, %v560_v28, %v816_v38  ;;  %v431_v46 = vmul.f32 %v1530_v3, %v296_v36  ;;  %v432_v47 = vmul.f32 %v1530_v3, %v297_v37 }
  0xa5   : > { %v945_v45 = vsel %vm689_vm5, %v561_v29, %v817_v39  ;;  %1072 = vst [vmem:[%s1243_s25 + $0x3a0] sm:$0xff] %v944_v44  ;;  %vm690_vm6 = vcmp.ge.f32.partialorder %v562_v40, 0.0  ;;  %v818_v50 = vmul.f32 0.2, %v562_v40  ;;  %vm691_vm7 = vcmp.ge.f32.partialorder %v563_v41, 0.0 }
  0xa6   : > { %1073 = vst [vmem:[%s1243_s25 + $0x3a8] sm:$0xff] %v945_v45  ;;  %v819_v51 = vmul.f32 0.2, %v563_v41  ;;  %v564_v52 = vadd.f32 %v1521_v59, %v429_v42  ;;  %v565_v53 = vadd.f32 %v1521_v59, %v430_v43  ;;  %v566_v54 = vadd.f32 %v1521_v59, %v431_v46 }
  0xa7   : > { %v567_v55 = vadd.f32 %v1521_v59, %v432_v47  ;;  %v946_v56 = vsel %vm690_vm6, %v562_v40, %v818_v50  ;;  %v433_v58 = vmul.f32 %v1530_v3, %v298_v48  ;;  %v434_v1 = vmul.f32 %v1530_v3, %v299_v49 }
  0xa8   : > { %v947_v57 = vsel %vm691_vm7, %v563_v41, %v819_v51  ;;  %1074 = vst [vmem:[%s1243_s25 + $0x3b0] sm:$0xff] %v946_v56  ;;  %vm692_vm8 = vcmp.ge.f32.partialorder %v564_v52, 0.0  ;;  %v820_v61 = vmul.f32 0.2, %v564_v52  ;;  %vm693_vm9 = vcmp.ge.f32.partialorder %v565_v53, 0.0 }
  0xa9   : > { %1075 = vst [vmem:[%s1243_s25 + $0x3b8] sm:$0xff] %v947_v57  ;;  %v821_v62 = vmul.f32 0.2, %v565_v53  ;;  %vm694_vm10 = vcmp.ge.f32.partialorder %v566_v54, 0.0  ;;  %v822_v63 = vmul.f32 0.2, %v566_v54  ;;  %v568_v6 = vadd.f32 %v1521_v59, %v433_v58 }
  0xaa   : > { %vm695_vm11 = vcmp.ge.f32.partialorder %v567_v55, 0.0  ;;  %v823_v2 = vmul.f32 0.2, %v567_v55  ;;  %v948_v4 = vsel %vm692_vm8, %v564_v52, %v820_v61  ;;  %v569_v7 = vadd.f32 %v1521_v59, %v434_v1 }
  0xab   : > { %v949_v5 = vsel %vm693_vm9, %v565_v53, %v821_v62  ;;  %1076 = vst [vmem:[%s1243_s25 + $0x3c0] sm:$0xff] %v948_v4  ;;  %v950_v8 = vsel %vm694_vm10, %v566_v54, %v822_v63  ;;  %v435_v10 = vmul.f32 %v1530_v3, %v300_v60  ;;  %v436_v11 = vmul.f32 %v1530_v3, %v301_v0 }
  0xac   : > { %1077 = vst [vmem:[%s1243_s25 + $0x3c8] sm:$0xff] %v949_v5  ;;  %v951_v9 = vsel %vm695_vm11, %v567_v55, %v823_v2  ;;  %1078 = vst [vmem:[%s1243_s25 + $0x3d0] sm:$0xff] %v950_v8  ;;  %vm696_vm12 = vcmp.ge.f32.partialorder %v568_v6, 0.0  ;;  %v824_v12 = vmul.f32 0.2, %v568_v6  ;;  %vm697_vm13 = vcmp.ge.f32.partialorder %v569_v7, 0.0 }
  0xad   : > { %1079 = vst [vmem:[%s1243_s25 + $0x3d8] sm:$0xff] %v951_v9  ;;  %v825_v13 = vmul.f32 0.2, %v569_v7  ;;  %v570_v14 = vadd.f32 %v1521_v59, %v435_v10  ;;  %v571_v15 = vadd.f32 %v1521_v59, %v436_v11 }
  0xae   : > { %v952_v16 = vsel %vm696_vm12, %v568_v6, %v824_v12 }
  0xaf   : > { %v953_v17 = vsel %vm697_vm13, %v569_v7, %v825_v13  ;;  %1080 = vst [vmem:[%s1243_s25 + $0x3e0] sm:$0xff] %v952_v16  ;;  %vm698_vm14 = vcmp.ge.f32.partialorder %v570_v14, 0.0  ;;  %v826_v18 = vmul.f32 0.2, %v570_v14  ;;  %vm699_vm15 = vcmp.ge.f32.partialorder %v571_v15, 0.0 }
  0xb0   : > { %1081 = vst [vmem:[%s1243_s25 + $0x3e8] sm:$0xff] %v953_v17  ;;  %v827_v3 = vmul.f32 0.2, %v571_v15 }
  0xb1   : > { %v954_v19 = vsel %vm698_vm14, %v570_v14, %v826_v18 }
  0xb2   : > { %v955_v20 = vsel %vm699_vm15, %v571_v15, %v827_v3  ;;  %1082 = vst [vmem:[%s1243_s25 + $0x3f0] sm:$0xff] %v954_v19 }
  0xb3   : > { %1083 = vst [vmem:[%s1243_s25 + $0x3f8] sm:$0xff] %v955_v20 }
  0xb4 PF: > { %s13_s12 = sadd.s32 1, %s1169_s12  }
  0xb5   : > { %p10_p4 = scmp.ge.s32.totalorder %s13_s12, 4  }
  0xb7   :  { %12 = sbr.rel (!%p10_p4) target bundleno = 1 (0x1), region = 62 }

// kernel: critic_forward.11
= control target key start
LH: loop header
LB: loop body
LE: loop exit
PB: predicated region body
PF: predicated region fallthrough
CT: control target
= control target key end

     0   :  { %s1064_s18 = smov 0   ;;  %s1299_s0 = inlined_call_operand.vmem [shape: bf16[512,128], index: 0, kind: input, shape index: {}]   ;;  %s1300_s1 = inlined_call_operand.vmem [shape: bf16[128,128], index: 1, kind: input, shape index: {}]   ;;  %s1301_s2 = inlined_call_operand.vmem [shape: f32[1,128], index: 2, kind: input, shape index: {}]   ;;  %s1302_s3 = inlined_call_operand.vmem [shape: f32[512,128], index: 3, kind: output, shape index: {0}]   ;;  %s1303_s4 = inlined_call_operand.vmem [shape: f32[16,128], index: 4, kind: output, shape index: {1}]   ;;  %s1304_s5 = inlined_call_operand.vmem [shape: f32[16,128], index: 5, kind: output, shape index: {2}]  }
   0x1 LB: > { %s1070_s19 = sadd.s32 4294967295, %s1032_s18   ;;  %p872_p0 = scmp.ge.s32.totalorder %s1032_s18, 1  ;;  %s1032_s18 = sphi %s1064_s18, %s16_s18  }
   0x2   : > { %p193_p1 = scmp.lt.s32.totalorder %s1032_s18, 3 }
   0x4   : > { %p194_p2 = pnand %p872_p0, %p193_p1 }
   0x5   : > { %s873_s22 = sshll.u32 (!%p194_p2), %s1070_s19, 5  ;;  %p241_p4 = scmp.lt.s32.totalorder (!%p194_p2), %s1070_s19, 1 }
   0x6   : > { %197 = sbr.rel (%p194_p2) target bundleno = 322 (0x142), region = 32  ;;  %p230_p3 = scmp.lt.s32.totalorder (!%p194_p2), %s873_s22, 63 }
   0xb   : > { %v1002_v0 = vld [vmem:[%s1300_s1 + $0x38] sm:$0xff]   ;;  %v1003_v1 = vld [vmem:[%s1300_s1 + $0x30] sm:$0xff]   ;;  %s1306_s22 = smov (!%p230_p3, %s873_s22), 63  ;;  %v1004_v2 = vld [vmem:[%s1300_s1 + $0x28] sm:$0xff]   ;;  %s1308_s19 = smov (!%p241_p4, %s1070_s19), 1 }
   0xc   : > { %930 = vmatprep.subr.bf16.mxu0 %v1002_v0  ;;  %978 = vmatprep.subr.bf16.mxu1 %v1002_v0  ;;  %s874_s27 = sshll.u32 %s1306_s22, 2  ;;  %v1005_v3 = vld [vmem:[%s1300_s1 + $0x20] sm:$0xff]   ;;  %v1006_v5 = vld [vmem:[%s1300_s1 + $0x18] sm:$0xff]   ;;  %v1007_v6 = vld [vmem:[%s1300_s1 + $0x10] sm:$0xff]   ;;  %s876_s16 = sshll.u32 %s1306_s22, 3 }
   0xd   : > { %931 = vmatpush3.bf16.msra.mxu0 %v1002_v0  ;;  %986 = vmatpush3.bf16.msra.mxu1 %v1002_v0  ;;  %s1090_s30 = scalar_lea.vmem %s1299_s0, %s874_s27  ;;  %v1008_v8 = vld [vmem:[%s1300_s1 + $0x8] sm:$0xff]   ;;  %v1009_v9 = vld [vmem:[%s1300_s1] sm:$0xff]   ;;  %s1132_s24 = scalar_lea.vmem %s1302_s3, %s876_s16 }
   0xe   : > { %932 = vmatprep.subr.bf16.mxu0 %v1003_v1  ;;  %979 = vmatprep.subr.bf16.mxu1 %v1003_v1  ;;  %v1010_v4 = vld [vmem:[%s1090_s30] sm:$0xff]   ;;  %v1011_v10 = vld [vmem:[%s1090_s30 + $0x8] sm:$0xff]   ;;  %v1012_v12 = vld [vmem:[%s1090_s30 + $0x10] sm:$0xff]   ;;  %s877_s22 = sshll.u32 %s1308_s19, 3 }
   0xf   : > { %946 = vmatprep.mubr.bf16.mxu0 %v1010_v4  ;;  %v1018_v7 = vld [vmem:[%s1090_s30 + $0x40] sm:$0xff]   ;;  %v1019_v11 = vld [vmem:[%s1090_s30 + $0x48] sm:$0xff]   ;;  %v1020_v13 = vld [vmem:[%s1090_s30 + $0x50] sm:$0xff]   ;;  %s244_s27 = scalar_lea.vmem %s1303_s4, %s877_s22 }
  0x10   : > { %962 = vmatprep.mubr.bf16.mxu1 %v1018_v7  ;;  %v1013_v14 = vld [vmem:[%s1090_s30 + $0x18] sm:$0xff]   ;;  %v1014_v16 = vld [vmem:[%s1090_s30 + $0x20] sm:$0xff]   ;;  %v1015_v18 = vld [vmem:[%s1090_s30 + $0x28] sm:$0xff]  }
  0x11   : > { %933 = vmatpush3.bf16.msra.mxu0 %v1003_v1  ;;  %987 = vmatpush3.bf16.msra.mxu1 %v1003_v1  ;;  %v1021_v15 = vld [vmem:[%s1090_s30 + $0x58] sm:$0xff]   ;;  %v1022_v17 = vld [vmem:[%s1090_s30 + $0x60] sm:$0xff]   ;;  %v1023_v19 = vld [vmem:[%s1090_s30 + $0x68] sm:$0xff]  }
  0x12   : > { %934 = vmatprep.subr.bf16.mxu0 %v1004_v2  ;;  %980 = vmatprep.subr.bf16.mxu1 %v1004_v2  ;;  %v1016_v20 = vld [vmem:[%s1090_s30 + $0x30] sm:$0xff]   ;;  %v1017_v22 = vld [vmem:[%s1090_s30 + $0x38] sm:$0xff]   ;;  %v1127_v24 = vld [vmem:[%s1301_s2] ss:$0 sm:$0xff] }
  0x13   : > { %v1024_v21 = vld [vmem:[%s1090_s30 + $0x70] sm:$0xff]   ;;  %v1025_v23 = vld [vmem:[%s1090_s30 + $0x78] sm:$0xff]   ;;  %s248_s30 = scalar_lea.vmem %s1304_s5, %s877_s22 }
  0x15   : > { %935 = vmatpush3.bf16.msra.mxu0 %v1004_v2  ;;  %988 = vmatpush3.bf16.msra.mxu1 %v1004_v2 }
  0x16   : > { %936 = vmatprep.subr.bf16.mxu0 %v1005_v3  ;;  %981 = vmatprep.subr.bf16.mxu1 %v1005_v3 }
  0x19   : > { %937 = vmatpush3.bf16.msra.mxu0 %v1005_v3  ;;  %989 = vmatpush3.bf16.msra.mxu1 %v1005_v3 }
  0x1a   : > { %938 = vmatprep.subr.bf16.mxu0 %v1006_v5  ;;  %982 = vmatprep.subr.bf16.mxu1 %v1006_v5 }
  0x1d   : > { %939 = vmatpush3.bf16.msra.mxu0 %v1006_v5  ;;  %990 = vmatpush3.bf16.msra.mxu1 %v1006_v5 }
  0x1e   : > { %940 = vmatprep.subr.bf16.mxu0 %v1007_v6  ;;  %983 = vmatprep.subr.bf16.mxu1 %v1007_v6 }
  0x21   : > { %941 = vmatpush3.bf16.msra.mxu0 %v1007_v6  ;;  %991 = vmatpush3.bf16.msra.mxu1 %v1007_v6 }
  0x22   : > { %942 = vmatprep.subr.bf16.mxu0 %v1008_v8  ;;  %984 = vmatprep.subr.bf16.mxu1 %v1008_v8 }
  0x25   : > { %943 = vmatpush3.bf16.msra.mxu0 %v1008_v8  ;;  %992 = vmatpush3.bf16.msra.mxu1 %v1008_v8 }
  0x26   : > { %944 = vmatprep.subr.bf16.mxu0 %v1009_v9  ;;  %985 = vmatprep.subr.bf16.mxu1 %v1009_v9 }
  0x29   : > { %945 = vmatpush3.bf16.msra.mxu0 %v1009_v9  ;;  %993 = vmatpush3.bf16.msra.mxu1 %v1009_v9 }
  0x2c   : > { %947 = vmatmul.mubr.bf16.vlgmr.msra.gmra.mxu0 %v1011_v10  ;;  %963 = vmatmul.mubr.bf16.vlgmr.msra.gmra.mxu1 %v1019_v11 }
  0x2d   : > { %950 = vmatprep.mubr.bf16.mxu0 %v1012_v12  ;;  %966 = vmatprep.mubr.bf16.mxu1 %v1020_v13 }
  0x34   : > { %951 = vmatmul.mubr.bf16.gmra.mxu0 %v1013_v14  ;;  %967 = vmatmul.mubr.bf16.gmra.mxu1 %v1021_v15 }
  0x35   : > { %954 = vmatprep.mubr.bf16.mxu0 %v1014_v16  ;;  %970 = vmatprep.mubr.bf16.mxu1 %v1022_v17 }
  0x3c   : > { %955 = vmatmul.mubr.bf16.gmra.mxu0 %v1015_v18  ;;  %971 = vmatmul.mubr.bf16.gmra.mxu1 %v1023_v19 }
  0x3d   : > { %958 = vmatprep.mubr.bf16.mxu0 %v1016_v20  ;;  %974 = vmatprep.mubr.bf16.mxu1 %v1024_v21 }
  0x44   : > { %959 = vmatmul.mubr.bf16.gmra.mxu0 %v1017_v22  ;;  %975 = vmatmul.mubr.bf16.gmra.mxu1 %v1025_v23 }
  0xec   : > { %v948_v25 = vpop.f32.mrf.mxu0  ;;  %v964_v26 = vpop.f32.mrf.mxu1 }
  0xed   : > { %v492_v27 = vadd.f32 %v948_v25, %v1127_v24  ;;  %v1136_v28 = vadd.f32 %v964_v26, %v1127_v24 }
  0xee   : > { %v483_v29 = vpop.f32.mrf.mxu0  ;;  %v547_v30 = vpop.f32.mrf.mxu1 }
  0xef   : > { %612 = vst [vmem:[%s1132_s24 + $0x10] sm:$0xff] %v492_v27  ;;  %v484_v31 = vadd.f32 %v1127_v24, %v483_v29  ;;  %628 = vst [vmem:[%s1132_s24 + $0x90] sm:$0xff] %v1136_v28  ;;  %v1143_v32 = vadd.f32 %v1127_v24, %v547_v30  ;;  %v682_v50 = vmul.f32 %v492_v27, %v492_v27 }
  0xf0   : > { %v949_v33 = vpop.f32.mrf.mxu0  ;;  %v965_v34 = vpop.f32.mrf.mxu1 }
  0xf1   : > { %610 = vst [vmem:[%s1132_s24] sm:$0xff] %v484_v31  ;;  %v495_v35 = vadd.f32 %v949_v33, %v1127_v24  ;;  %626 = vst [vmem:[%s1132_s24 + $0x80] sm:$0xff] %v1143_v32  ;;  %v1150_v36 = vadd.f32 %v965_v34, %v1127_v24  ;;  %v680_v43 = vmul.f32 %v484_v31, %v484_v31 }
  0xf2   : > { %v486_v37 = vpop.f32.mrf.mxu0  ;;  %v550_v38 = vpop.f32.mrf.mxu1 }
  0xf3   : > { %613 = vst [vmem:[%s1132_s24 + $0x18] sm:$0xff] %v495_v35  ;;  %v487_v39 = vadd.f32 %v1127_v24, %v486_v37  ;;  %629 = vst [vmem:[%s1132_s24 + $0x98] sm:$0xff] %v1150_v36  ;;  %v1157_v40 = vadd.f32 %v1127_v24, %v550_v38  ;;  %v683_v57 = vmul.f32 %v495_v35, %v495_v35 }
  0xf4   : > { %v952_v41 = vpop.f32.mrf.mxu0  ;;  %v968_v42 = vpop.f32.mrf.mxu1 }
  0xf5   : > { %611 = vst [vmem:[%s1132_s24 + $0x8] sm:$0xff] %v487_v39  ;;  %v642_v44 = vadd.f32 %v487_v39, %v484_v31  ;;  %v681_v45 = vmul.f32 %v487_v39, %v487_v39  ;;  %v508_v46 = vadd.f32 %v952_v41, %v1127_v24  ;;  %627 = vst [vmem:[%s1132_s24 + $0x88] sm:$0xff] %v1157_v40 }
  0xf6   : > { %v499_v47 = vpop.f32.mrf.mxu0  ;;  %v1164_v48 = vadd.f32 %v968_v42, %v1127_v24  ;;  %v563_v49 = vpop.f32.mrf.mxu1 }
  0xf7   : > { %v643_v51 = vadd.f32 %v642_v44, %v492_v27  ;;  %v712_v52 = vadd.f32 %v681_v45, %v680_v43  ;;  %616 = vst [vmem:[%s1132_s24 + $0x30] sm:$0xff] %v508_v46  ;;  %v500_v53 = vadd.f32 %v1127_v24, %v499_v47  ;;  %v1171_v55 = vadd.f32 %v1127_v24, %v563_v49 }
  0xf8   : > { %v953_v54 = vpop.f32.mrf.mxu0  ;;  %632 = vst [vmem:[%s1132_s24 + $0xb0] sm:$0xff] %v1164_v48  ;;  %v969_v56 = vpop.f32.mrf.mxu1  ;;  %v686_v14 = vmul.f32 %v508_v46, %v508_v46 }
  0xf9   : > { %v713_v58 = vadd.f32 %v712_v52, %v682_v50  ;;  %614 = vst [vmem:[%s1132_s24 + $0x20] sm:$0xff] %v500_v53  ;;  %v644_v59 = vadd.f32 %v643_v51, %v495_v35  ;;  %v511_v60 = vadd.f32 %v953_v54, %v1127_v24  ;;  %630 = vst [vmem:[%s1132_s24 + $0xa0] sm:$0xff] %v1171_v55 }
  0xfa   : > { %v502_v61 = vpop.f32.mrf.mxu0  ;;  %v1178_v62 = vadd.f32 %v969_v56, %v1127_v24  ;;  %v566_v63 = vpop.f32.mrf.mxu1  ;;  %v684_v1 = vmul.f32 %v500_v53, %v500_v53 }
  0xfb   : > { %v645_v0 = vadd.f32 %v644_v59, %v500_v53  ;;  %v714_v2 = vadd.f32 %v713_v58, %v683_v57  ;;  %617 = vst [vmem:[%s1132_s24 + $0x38] sm:$0xff] %v511_v60  ;;  %v503_v3 = vadd.f32 %v1127_v24, %v502_v61  ;;  %v1185_v5 = vadd.f32 %v1127_v24, %v566_v63 }
  0xfc   : > { %v956_v4 = vpop.f32.mrf.mxu0  ;;  %633 = vst [vmem:[%s1132_s24 + $0xb8] sm:$0xff] %v1178_v62  ;;  %v972_v6 = vpop.f32.mrf.mxu1  ;;  %v687_v21 = vmul.f32 %v511_v60, %v511_v60 }
  0xfd   : > { %v715_v7 = vadd.f32 %v714_v2, %v684_v1  ;;  %615 = vst [vmem:[%s1132_s24 + $0x28] sm:$0xff] %v503_v3  ;;  %v646_v8 = vadd.f32 %v645_v0, %v503_v3  ;;  %v685_v9 = vmul.f32 %v503_v3, %v503_v3  ;;  %v524_v10 = vadd.f32 %v956_v4, %v1127_v24 }
  0xfe   : > { %v515_v11 = vpop.f32.mrf.mxu0  ;;  %631 = vst [vmem:[%s1132_s24 + $0xa8] sm:$0xff] %v1185_v5  ;;  %v1192_v12 = vadd.f32 %v972_v6, %v1127_v24  ;;  %v579_v13 = vpop.f32.mrf.mxu1 }
  0xff   : > { %v647_v15 = vadd.f32 %v646_v8, %v508_v46  ;;  %v716_v16 = vadd.f32 %v715_v7, %v685_v9  ;;  %620 = vst [vmem:[%s1132_s24 + $0x50] sm:$0xff] %v524_v10  ;;  %v516_v17 = vadd.f32 %v1127_v24, %v515_v11  ;;  %v1199_v19 = vadd.f32 %v1127_v24, %v579_v13 }
 0x100   : > { %v957_v18 = vpop.f32.mrf.mxu0  ;;  %636 = vst [vmem:[%s1132_s24 + $0xd0] sm:$0xff] %v1192_v12  ;;  %v973_v20 = vpop.f32.mrf.mxu1  ;;  %v690_v47 = vmul.f32 %v524_v10, %v524_v10 }
 0x101   : > { %v717_v22 = vadd.f32 %v716_v16, %v686_v14  ;;  %618 = vst [vmem:[%s1132_s24 + $0x40] sm:$0xff] %v516_v17  ;;  %v648_v23 = vadd.f32 %v647_v15, %v511_v60  ;;  %v527_v25 = vadd.f32 %v957_v18, %v1127_v24  ;;  %634 = vst [vmem:[%s1132_s24 + $0xc0] sm:$0xff] %v1199_v19 }
 0x102   : > { %v518_v26 = vpop.f32.mrf.mxu0  ;;  %v1206_v27 = vadd.f32 %v973_v20, %v1127_v24  ;;  %v582_v29 = vpop.f32.mrf.mxu1  ;;  %v688_v31 = vmul.f32 %v516_v17, %v516_v17  ;;  %v696_v16 = vmul.f32 %v1143_v32, %v1143_v32 }
 0x103   : > { %v649_v30 = vadd.f32 %v648_v23, %v516_v17  ;;  %v718_v33 = vadd.f32 %v717_v22, %v687_v21  ;;  %621 = vst [vmem:[%s1132_s24 + $0x58] sm:$0xff] %v527_v25  ;;  %v519_v34 = vadd.f32 %v1127_v24, %v518_v26  ;;  %v1213_v37 = vadd.f32 %v1127_v24, %v582_v29 }
 0x104   : > { %v960_v35 = vpop.f32.mrf.mxu0  ;;  %637 = vst [vmem:[%s1132_s24 + $0xd8] sm:$0xff] %v1206_v27  ;;  %v976_v38 = vpop.f32.mrf.mxu1  ;;  %v691_v56 = vmul.f32 %v527_v25, %v527_v25  ;;  %v698_v22 = vmul.f32 %v1136_v28, %v1136_v28  ;;  %v699_v26 = vmul.f32 %v1150_v36, %v1150_v36 }
 0x105   : > { %v719_v39 = vadd.f32 %v718_v33, %v688_v31  ;;  %619 = vst [vmem:[%s1132_s24 + $0x48] sm:$0xff] %v519_v34  ;;  %v650_v41 = vadd.f32 %v649_v30, %v519_v34  ;;  %v689_v42 = vmul.f32 %v519_v34, %v519_v34  ;;  %v540_v43 = vadd.f32 %v960_v35, %v1127_v24 }
 0x106   : > { %v531_v44 = vpop.f32.mrf.mxu0  ;;  %635 = vst [vmem:[%s1132_s24 + $0xc8] sm:$0xff] %v1213_v37  ;;  %v1220_v45 = vadd.f32 %v976_v38, %v1127_v24  ;;  %v595_v46 = vpop.f32.mrf.mxu1  ;;  %v700_v31 = vmul.f32 %v1171_v55, %v1171_v55  ;;  %v701_v35 = vmul.f32 %v1185_v5, %v1185_v5 }
 0x107   : > { %v651_v49 = vadd.f32 %v650_v41, %v524_v10  ;;  %v720_v50 = vadd.f32 %v719_v39, %v689_v42  ;;  %624 = vst [vmem:[%s1132_s24 + $0x70] sm:$0xff] %v540_v43  ;;  %v532_v51 = vadd.f32 %v1127_v24, %v531_v44  ;;  %v1227_v53 = vadd.f32 %v1127_v24, %v595_v46 }
 0x108   : > { %v961_v52 = vpop.f32.mrf.mxu0  ;;  %640 = vst [vmem:[%s1132_s24 + $0xf0] sm:$0xff] %v1220_v45  ;;  %v977_v54 = vpop.f32.mrf.mxu1  ;;  %v694_v9 = vmul.f32 %v540_v43, %v540_v43 }
 0x109   : > { %v721_v57 = vadd.f32 %v720_v50, %v690_v47  ;;  %622 = vst [vmem:[%s1132_s24 + $0x60] sm:$0xff] %v532_v51  ;;  %v652_v58 = vadd.f32 %v651_v49, %v527_v25  ;;  %v543_v59 = vadd.f32 %v961_v52, %v1127_v24  ;;  %638 = vst [vmem:[%s1132_s24 + $0xe0] sm:$0xff] %v1227_v53 }
 0x10a   : > { %v534_v60 = vpop.f32.mrf.mxu0  ;;  %v1234_v61 = vadd.f32 %v977_v54, %v1127_v24  ;;  %v598_v63 = vpop.f32.mrf.mxu1  ;;  %v692_v1 = vmul.f32 %v532_v51, %v532_v51  ;;  %v705_v47 = vmul.f32 %v1213_v37, %v1213_v37  ;;  %v708_v54 = vmul.f32 %v1227_v53, %v1227_v53 }
 0x10b   : > { %v653_v0 = vadd.f32 %v652_v58, %v532_v51  ;;  %v722_v2 = vadd.f32 %v721_v57, %v691_v56  ;;  %625 = vst [vmem:[%s1132_s24 + $0x78] sm:$0xff] %v543_v59  ;;  %v535_v3 = vadd.f32 %v1127_v24, %v534_v60  ;;  %v599_v4 = vadd.f32 %v1127_v24, %v598_v63 }
 0x10c   : > { %641 = vst [vmem:[%s1132_s24 + $0xf8] sm:$0xff] %v1234_v61  ;;  %v695_v13 = vmul.f32 %v543_v59, %v543_v59  ;;  %v697_v24 = vmul.f32 %v1157_v40, %v1157_v40  ;;  %v711_v63 = vmul.f32 %v1234_v61, %v1234_v61 }
 0x10d   : > { %v723_v6 = vadd.f32 %v722_v2, %v692_v1  ;;  %623 = vst [vmem:[%s1132_s24 + $0x68] sm:$0xff] %v535_v3  ;;  %v654_v7 = vadd.f32 %v653_v0, %v535_v3  ;;  %v693_v8 = vmul.f32 %v535_v3, %v535_v3  ;;  %639 = vst [vmem:[%s1132_s24 + $0xe8] sm:$0xff] %v599_v4 }
 0x10e   : > { %v709_v58 = vmul.f32 %v599_v4, %v599_v4 }
 0x10f   : > { %v655_v10 = vadd.f32 %v654_v7, %v540_v43  ;;  %v724_v11 = vadd.f32 %v723_v6, %v693_v8  ;;  %v704_v43 = vmul.f32 %v1199_v19, %v1199_v19 }
 0x111   : > { %v725_v14 = vadd.f32 %v724_v11, %v694_v9  ;;  %v656_v15 = vadd.f32 %v655_v10, %v543_v59 }
 0x113   : > { %v657_v17 = vadd.f32 %v656_v15, %v1143_v32  ;;  %v726_v18 = vadd.f32 %v725_v14, %v695_v13 }
 0x115   : > { %v658_v20 = vadd.f32 %v657_v17, %v1157_v40  ;;  %v727_v21 = vadd.f32 %v726_v18, %v696_v16 }
 0x117   : > { %v659_v23 = vadd.f32 %v658_v20, %v1136_v28  ;;  %v728_v25 = vadd.f32 %v727_v21, %v697_v24  ;;  %v702_v28 = vmul.f32 %v1164_v48, %v1164_v48 }
 0x119   : > { %v729_v29 = vadd.f32 %v728_v25, %v698_v22  ;;  %v660_v30 = vadd.f32 %v659_v23, %v1150_v36  ;;  %v703_v36 = vmul.f32 %v1178_v62, %v1178_v62 }
 0x11b   : > { %v661_v32 = vadd.f32 %v660_v30, %v1171_v55  ;;  %v730_v33 = vadd.f32 %v729_v29, %v699_v26 }
 0x11d   : > { %v731_v40 = vadd.f32 %v730_v33, %v700_v31  ;;  %v662_v34 = vadd.f32 %v661_v32, %v1185_v5 }
 0x11f   : > { %v663_v38 = vadd.f32 %v662_v34, %v1164_v48  ;;  %v732_v39 = vadd.f32 %v731_v40, %v701_v35  ;;  %v706_v48 = vmul.f32 %v1192_v12, %v1192_v12 }
 0x121   : > { %v733_v41 = vadd.f32 %v732_v39, %v702_v28  ;;  %v664_v42 = vadd.f32 %v663_v38, %v1178_v62  ;;  %v707_v62 = vmul.f32 %v1206_v27, %v1206_v27 }
 0x123   : > { %v665_v55 = vadd.f32 %v664_v42, %v1199_v19  ;;  %v734_v44 = vadd.f32 %v733_v41, %v703_v36 }
 0x125   : > { %v735_v46 = vadd.f32 %v734_v44, %v704_v43  ;;  %v666_v5 = vadd.f32 %v665_v55, %v1213_v37 }
 0x127   : > { %v667_v49 = vadd.f32 %v666_v5, %v1192_v12  ;;  %v736_v50 = vadd.f32 %v735_v46, %v705_v47  ;;  %v710_v12 = vmul.f32 %v1220_v45, %v1220_v45 }
 0x129   : > { %v737_v51 = vadd.f32 %v736_v50, %v706_v48  ;;  %v668_v19 = vadd.f32 %v667_v49, %v1206_v27 }
 0x12b   : > { %v669_v52 = vadd.f32 %v668_v19, %v1227_v53  ;;  %v738_v37 = vadd.f32 %v737_v51, %v707_v62 }
 0x12d   : > { %v739_v56 = vadd.f32 %v738_v37, %v708_v54  ;;  %v670_v57 = vadd.f32 %v669_v52, %v599_v4 }
 0x12f   : > { %v671_v59 = vadd.f32 %v670_v57, %v1220_v45  ;;  %v740_v60 = vadd.f32 %v739_v56, %v709_v58 }
 0x131   : > { %v672_v27 = vadd.f32 %v671_v59, %v1234_v61  ;;  %v741_v0 = vadd.f32 %v740_v60, %v710_v12 }
 0x133   : > { %v673_v1 = vrot.slane %v672_v27, 4  ;;  %v742_v2 = vadd.f32 %v741_v0, %v711_v63 }
 0x135   : > { %v674_v53 = vadd.f32 %v673_v1, %v672_v27  ;;  %v743_v3 = vrot.slane %v742_v2, 4 }
 0x137   : > { %v675_v6 = vrot.slane %v674_v53, 2  ;;  %v744_v4 = vadd.f32 %v743_v3, %v742_v2 }
 0x139   : > { %v676_v7 = vadd.f32 %v675_v6, %v674_v53  ;;  %v745_v8 = vrot.slane %v744_v4, 2 }
 0x13b   : > { %v677_v9 = vrot.slane %v676_v7, 1  ;;  %v746_v45 = vadd.f32 %v745_v8, %v744_v4 }
 0x13d   : > { %v678_v10 = vadd.f32 %v677_v9, %v676_v7  ;;  %v747_v11 = vrot.slane %v746_v45, 1 }
 0x13f   : > { %679 = vst [vmem:[%s244_s27] sm:$0xff] %v678_v10  ;;  %v748_v61 = vadd.f32 %v747_v11, %v746_v45 }
 0x141   : > { %749 = vst [vmem:[%s248_s30] sm:$0xff] %v748_v61 }
 0x142 PF: > { %s16_s18 = sadd.s32 1, %s1032_s18  }
 0x143   : > { %p13_p5 = scmp.ge.s32.totalorder %s16_s18, 4  }
 0x145   :  { %15 = sbr.rel (!%p13_p5) target bundleno = 1 (0x1), region = 86 }

// kernel: critic_forward.12
= control target key start
LH: loop header
LB: loop body
LE: loop exit
PB: predicated region body
PF: predicated region fallthrough
CT: control target
= control target key end

     0   :  { %s517_s12 = smov 0   ;;  %s679_s0 = inlined_call_operand.vmem [shape: f32[512,128], index: 0, kind: input, shape index: {}]   ;;  %s680_s1 = inlined_call_operand.vmem [shape: f32[1,128], index: 1, kind: input, shape index: {}]   ;;  %s681_s2 = inlined_call_operand.vmem [shape: f32[1,128], index: 2, kind: input, shape index: {}]   ;;  %s682_s3 = inlined_call_operand.vmem [shape: f32[512,128], index: 3, kind: output, shape index: {}]  }
   0x1 LB: > { %s468_s13 = sadd.s32 4294967295, %s495_s12   ;;  %p472_p0 = scmp.ge.s32.totalorder %s495_s12, 1  ;;  %s495_s12 = sphi %s517_s12, %s13_s12  }
   0x2   : > { %p138_p1 = scmp.lt.s32.totalorder %s495_s12, 3 }
   0x4   : > { %p139_p2 = pnand %p472_p0, %p138_p1 }
   0x5   : > { %s473_s14 = sshll.u32 (!%p139_p2), %s468_s13, 5 }
   0x6   : > { %142 = sbr.rel (%p139_p2) target bundleno = 60 (0x3c), region = 32  ;;  %p163_p3 = scmp.lt.s32.totalorder (!%p139_p2), %s473_s14, 63 }
   0xb   : > { %s684_s14 = smov (!%p163_p3, %s473_s14), 63  ;;  %v531_v0 = vld [vmem:[%s680_s1] ss:$0 sm:$0xff] }
   0xc   : > { %s474_s15 = sshll.u32 %s684_s14, 3  ;;  %v541_v1 = vld [vmem:[%s681_s2] ss:$0 sm:$0xff] }
   0xd   : > { %s536_s20 = scalar_lea.vmem %s679_s0, %s474_s15  ;;  %s569_s25 = scalar_lea.vmem %s682_s3, %s474_s15 }
   0xe   : > { %v174_v2 = vld [vmem:[%s536_s20] sm:$0xff]  ;;  %v175_v3 = vld [vmem:[%s536_s20 + $0x8] sm:$0xff]  ;;  %v176_v4 = vld [vmem:[%s536_s20 + $0x10] sm:$0xff] }
   0xf   : > { %v213_v5 = vmul.f32 %v531_v0, %v174_v2  ;;  %v214_v6 = vmul.f32 %v531_v0, %v175_v3  ;;  %v215_v7 = vmul.f32 %v531_v0, %v176_v4  ;;  %v177_v8 = vld [vmem:[%s536_s20 + $0x18] sm:$0xff]  ;;  %v178_v9 = vld [vmem:[%s536_s20 + $0x20] sm:$0xff]  ;;  %v179_v10 = vld [vmem:[%s536_s20 + $0x28] sm:$0xff] }
  0x10   : > { %v216_v11 = vmul.f32 %v531_v0, %v177_v8  ;;  %v217_v12 = vmul.f32 %v531_v0, %v178_v9  ;;  %v218_v13 = vmul.f32 %v531_v0, %v179_v10  ;;  %v180_v14 = vld [vmem:[%s536_s20 + $0x30] sm:$0xff]  ;;  %v181_v15 = vld [vmem:[%s536_s20 + $0x38] sm:$0xff]  ;;  %v182_v24 = vld [vmem:[%s536_s20 + $0x40] sm:$0xff] }
  0x11   : > { %v252_v16 = vadd.f32 %v541_v1, %v213_v5  ;;  %v253_v17 = vadd.f32 %v541_v1, %v214_v6  ;;  %v254_v18 = vadd.f32 %v541_v1, %v215_v7  ;;  %v219_v19 = vmul.f32 %v531_v0, %v180_v14  ;;  %v183_v32 = vld [vmem:[%s536_s20 + $0x48] sm:$0xff]  ;;  %v184_v33 = vld [vmem:[%s536_s20 + $0x50] sm:$0xff]  ;;  %v185_v34 = vld [vmem:[%s536_s20 + $0x58] sm:$0xff] }
  0x12   : > { %v255_v20 = vadd.f32 %v541_v1, %v216_v11  ;;  %v256_v21 = vadd.f32 %v541_v1, %v217_v12  ;;  %v257_v22 = vadd.f32 %v541_v1, %v218_v13  ;;  %v220_v23 = vmul.f32 %v531_v0, %v181_v15  ;;  %v186_v46 = vld [vmem:[%s536_s20 + $0x60] sm:$0xff]  ;;  %v187_v47 = vld [vmem:[%s536_s20 + $0x68] sm:$0xff]  ;;  %v188_v58 = vld [vmem:[%s536_s20 + $0x70] sm:$0xff] }
  0x13   : > { %vm284_vm0 = vcmp.ge.f32.partialorder %v252_v16, 0.0  ;;  %v316_v25 = vmul.f32 0.2, %v252_v16  ;;  %vm285_vm1 = vcmp.ge.f32.partialorder %v253_v17, 0.0  ;;  %v317_v26 = vmul.f32 0.2, %v253_v17 }
  0x14   : > { %vm286_vm2 = vcmp.ge.f32.partialorder %v254_v18, 0.0  ;;  %v318_v27 = vmul.f32 0.2, %v254_v18  ;;  %vm287_vm3 = vcmp.ge.f32.partialorder %v255_v20, 0.0  ;;  %v319_v28 = vmul.f32 0.2, %v255_v20 }
  0x15   : > { %v348_v29 = vsel %vm284_vm0, %v252_v16, %v316_v25  ;;  %v349_v30 = vsel %vm285_vm1, %v253_v17, %v317_v26  ;;  %vm288_vm4 = vcmp.ge.f32.partialorder %v256_v21, 0.0  ;;  %v320_v31 = vmul.f32 0.2, %v256_v21  ;;  %v189_v59 = vld [vmem:[%s536_s20 + $0x78] sm:$0xff]  ;;  %v190_v6 = vld [vmem:[%s536_s20 + $0x80] sm:$0xff]  ;;  %v191_v7 = vld [vmem:[%s536_s20 + $0x88] sm:$0xff] }
  0x16   : > { %380 = vst [vmem:[%s569_s25] sm:$0xff] %v348_v29  ;;  %381 = vst [vmem:[%s569_s25 + $0x8] sm:$0xff] %v349_v30  ;;  %v350_v35 = vsel %vm286_vm2, %v254_v18, %v318_v27  ;;  %v351_v36 = vsel %vm287_vm3, %v255_v20, %v319_v28  ;;  %vm289_vm5 = vcmp.ge.f32.partialorder %v257_v22, 0.0  ;;  %v321_v37 = vmul.f32 0.2, %v257_v22  ;;  %v192_v12 = vld [vmem:[%s536_s20 + $0x90] sm:$0xff]  ;;  %v193_v13 = vld [vmem:[%s536_s20 + $0x98] sm:$0xff] }
  0x17   : > { %382 = vst [vmem:[%s569_s25 + $0x10] sm:$0xff] %v350_v35  ;;  %383 = vst [vmem:[%s569_s25 + $0x18] sm:$0xff] %v351_v36  ;;  %v352_v38 = vsel %vm288_vm4, %v256_v21, %v320_v31  ;;  %v258_v39 = vadd.f32 %v541_v1, %v219_v19  ;;  %v259_v40 = vadd.f32 %v541_v1, %v220_v23  ;;  %v195_v25 = vld [vmem:[%s536_s20 + $0xa8] sm:$0xff]  ;;  %v196_v36 = vld [vmem:[%s536_s20 + $0xb0] sm:$0xff] }
  0x18   : > { %v221_v41 = vmul.f32 %v531_v0, %v182_v24  ;;  %384 = vst [vmem:[%s569_s25 + $0x20] sm:$0xff] %v352_v38  ;;  %v353_v42 = vsel %vm289_vm5, %v257_v22, %v321_v37  ;;  %v222_v43 = vmul.f32 %v531_v0, %v183_v32  ;;  %v223_v44 = vmul.f32 %v531_v0, %v184_v33  ;;  %v194_v24 = vld [vmem:[%s536_s20 + $0xa0] sm:$0xff]  ;;  %v197_v37 = vld [vmem:[%s536_s20 + $0xb8] sm:$0xff] }
  0x19   : > { %v224_v45 = vmul.f32 %v531_v0, %v185_v34  ;;  %385 = vst [vmem:[%s569_s25 + $0x28] sm:$0xff] %v353_v42  ;;  %vm290_vm6 = vcmp.ge.f32.partialorder %v258_v39, 0.0  ;;  %v322_v48 = vmul.f32 0.2, %v258_v39  ;;  %vm291_vm7 = vcmp.ge.f32.partialorder %v259_v40, 0.0 }
  0x1a   : > { %v323_v49 = vmul.f32 0.2, %v259_v40  ;;  %v260_v50 = vadd.f32 %v541_v1, %v221_v41  ;;  %v261_v51 = vadd.f32 %v541_v1, %v222_v43  ;;  %v262_v52 = vadd.f32 %v541_v1, %v223_v44 }
  0x1b   : > { %v263_v53 = vadd.f32 %v541_v1, %v224_v45  ;;  %v354_v54 = vsel %vm290_vm6, %v258_v39, %v322_v48  ;;  %v225_v56 = vmul.f32 %v531_v0, %v186_v46  ;;  %v226_v57 = vmul.f32 %v531_v0, %v187_v47  ;;  %v198_v46 = vld [vmem:[%s536_s20 + $0xc0] sm:$0xff]  ;;  %v199_v47 = vld [vmem:[%s536_s20 + $0xc8] sm:$0xff] }
  0x1c   : > { %v355_v55 = vsel %vm291_vm7, %v259_v40, %v323_v49  ;;  %386 = vst [vmem:[%s569_s25 + $0x30] sm:$0xff] %v354_v54  ;;  %vm292_vm8 = vcmp.ge.f32.partialorder %v260_v50, 0.0  ;;  %v324_v60 = vmul.f32 0.2, %v260_v50  ;;  %vm293_vm9 = vcmp.ge.f32.partialorder %v261_v51, 0.0 }
  0x1d   : > { %387 = vst [vmem:[%s569_s25 + $0x38] sm:$0xff] %v355_v55  ;;  %v325_v61 = vmul.f32 0.2, %v261_v51  ;;  %vm294_vm10 = vcmp.ge.f32.partialorder %v262_v52, 0.0  ;;  %v326_v62 = vmul.f32 0.2, %v262_v52  ;;  %v264_v4 = vadd.f32 %v541_v1, %v225_v56 }
  0x1e   : > { %vm295_vm11 = vcmp.ge.f32.partialorder %v263_v53, 0.0  ;;  %v327_v63 = vmul.f32 0.2, %v263_v53  ;;  %v356_v2 = vsel %vm292_vm8, %v260_v50, %v324_v60  ;;  %v265_v5 = vadd.f32 %v541_v1, %v226_v57 }
  0x1f   : > { %v357_v3 = vsel %vm293_vm9, %v261_v51, %v325_v61  ;;  %388 = vst [vmem:[%s569_s25 + $0x40] sm:$0xff] %v356_v2  ;;  %v358_v8 = vsel %vm294_vm10, %v262_v52, %v326_v62  ;;  %v227_v10 = vmul.f32 %v531_v0, %v188_v58  ;;  %v228_v11 = vmul.f32 %v531_v0, %v189_v59  ;;  %v200_v52 = vld [vmem:[%s536_s20 + $0xd0] sm:$0xff]  ;;  %v202_v2 = vld [vmem:[%s536_s20 + $0xe0] sm:$0xff] }
  0x20   : > { %389 = vst [vmem:[%s569_s25 + $0x48] sm:$0xff] %v357_v3  ;;  %v359_v9 = vsel %vm295_vm11, %v263_v53, %v327_v63  ;;  %390 = vst [vmem:[%s569_s25 + $0x50] sm:$0xff] %v358_v8  ;;  %vm296_vm12 = vcmp.ge.f32.partialorder %v264_v4, 0.0  ;;  %v328_v14 = vmul.f32 0.2, %v264_v4  ;;  %vm297_vm13 = vcmp.ge.f32.partialorder %v265_v5, 0.0 }
  0x21   : > { %391 = vst [vmem:[%s569_s25 + $0x58] sm:$0xff] %v359_v9  ;;  %v329_v15 = vmul.f32 0.2, %v265_v5  ;;  %v266_v16 = vadd.f32 %v541_v1, %v227_v10  ;;  %v267_v17 = vadd.f32 %v541_v1, %v228_v11  ;;  %v229_v18 = vmul.f32 %v531_v0, %v190_v6  ;;  %v201_v53 = vld [vmem:[%s536_s20 + $0xd8] sm:$0xff]  ;;  %v203_v3 = vld [vmem:[%s536_s20 + $0xe8] sm:$0xff] }
  0x22   : > { %v230_v19 = vmul.f32 %v531_v0, %v191_v7  ;;  %v360_v20 = vsel %vm296_vm12, %v264_v4, %v328_v14  ;;  %v231_v22 = vmul.f32 %v531_v0, %v192_v12  ;;  %v232_v23 = vmul.f32 %v531_v0, %v193_v13  ;;  %v204_v14 = vld [vmem:[%s536_s20 + $0xf0] sm:$0xff] }
  0x23   : > { %v361_v21 = vsel %vm297_vm13, %v265_v5, %v329_v15  ;;  %392 = vst [vmem:[%s569_s25 + $0x60] sm:$0xff] %v360_v20  ;;  %vm298_vm14 = vcmp.ge.f32.partialorder %v266_v16, 0.0  ;;  %v330_v26 = vmul.f32 0.2, %v266_v16  ;;  %vm299_vm15 = vcmp.ge.f32.partialorder %v267_v17, 0.0  ;;  %v205_v15 = vld [vmem:[%s536_s20 + $0xf8] sm:$0xff] }
  0x24   : > { %393 = vst [vmem:[%s569_s25 + $0x68] sm:$0xff] %v361_v21  ;;  %v331_v27 = vmul.f32 0.2, %v267_v17  ;;  %v268_v28 = vadd.f32 %v541_v1, %v229_v18  ;;  %v269_v29 = vadd.f32 %v541_v1, %v230_v19  ;;  %v270_v30 = vadd.f32 %v541_v1, %v231_v22 }
  0x25   : > { %v271_v31 = vadd.f32 %v541_v1, %v232_v23  ;;  %v362_v32 = vsel %vm298_vm14, %v266_v16, %v330_v26  ;;  %v233_v34 = vmul.f32 %v531_v0, %v194_v24  ;;  %v234_v35 = vmul.f32 %v531_v0, %v195_v25 }
  0x26   : > { %v363_v33 = vsel %vm299_vm15, %v267_v17, %v331_v27  ;;  %394 = vst [vmem:[%s569_s25 + $0x70] sm:$0xff] %v362_v32  ;;  %vm300_vm0 = vcmp.ge.f32.partialorder %v268_v28, 0.0  ;;  %v332_v38 = vmul.f32 0.2, %v268_v28  ;;  %vm301_vm1 = vcmp.ge.f32.partialorder %v269_v29, 0.0 }
  0x27   : > { %395 = vst [vmem:[%s569_s25 + $0x78] sm:$0xff] %v363_v33  ;;  %v333_v39 = vmul.f32 0.2, %v269_v29  ;;  %vm302_vm2 = vcmp.ge.f32.partialorder %v270_v30, 0.0  ;;  %v334_v40 = vmul.f32 0.2, %v270_v30  ;;  %v272_v44 = vadd.f32 %v541_v1, %v233_v34 }
  0x28   : > { %vm303_vm3 = vcmp.ge.f32.partialorder %v271_v31, 0.0  ;;  %v335_v41 = vmul.f32 0.2, %v271_v31  ;;  %v364_v42 = vsel %vm300_vm0, %v268_v28, %v332_v38  ;;  %v273_v45 = vadd.f32 %v541_v1, %v234_v35 }
  0x29   : > { %v365_v43 = vsel %vm301_vm1, %v269_v29, %v333_v39  ;;  %396 = vst [vmem:[%s569_s25 + $0x80] sm:$0xff] %v364_v42  ;;  %v366_v48 = vsel %vm302_vm2, %v270_v30, %v334_v40  ;;  %v235_v50 = vmul.f32 %v531_v0, %v196_v36  ;;  %v236_v51 = vmul.f32 %v531_v0, %v197_v37 }
  0x2a   : > { %397 = vst [vmem:[%s569_s25 + $0x88] sm:$0xff] %v365_v43  ;;  %v367_v49 = vsel %vm303_vm3, %v271_v31, %v335_v41  ;;  %398 = vst [vmem:[%s569_s25 + $0x90] sm:$0xff] %v366_v48  ;;  %vm304_vm4 = vcmp.ge.f32.partialorder %v272_v44, 0.0  ;;  %v336_v54 = vmul.f32 0.2, %v272_v44  ;;  %vm305_vm5 = vcmp.ge.f32.partialorder %v273_v45, 0.0 }
  0x2b   : > { %399 = vst [vmem:[%s569_s25 + $0x98] sm:$0xff] %v367_v49  ;;  %v337_v55 = vmul.f32 0.2, %v273_v45  ;;  %v274_v56 = vadd.f32 %v541_v1, %v235_v50  ;;  %v275_v57 = vadd.f32 %v541_v1, %v236_v51  ;;  %v237_v58 = vmul.f32 %v531_v0, %v198_v46 }
  0x2c   : > { %v238_v59 = vmul.f32 %v531_v0, %v199_v47  ;;  %v368_v60 = vsel %vm304_vm4, %v272_v44, %v336_v54  ;;  %v239_v62 = vmul.f32 %v531_v0, %v200_v52  ;;  %v240_v63 = vmul.f32 %v531_v0, %v201_v53 }
  0x2d   : > { %v369_v61 = vsel %vm305_vm5, %v273_v45, %v337_v55  ;;  %400 = vst [vmem:[%s569_s25 + $0xa0] sm:$0xff] %v368_v60  ;;  %vm306_vm6 = vcmp.ge.f32.partialorder %v274_v56, 0.0  ;;  %v338_v4 = vmul.f32 0.2, %v274_v56  ;;  %vm307_vm7 = vcmp.ge.f32.partialorder %v275_v57, 0.0 }
  0x2e   : > { %401 = vst [vmem:[%s569_s25 + $0xa8] sm:$0xff] %v369_v61  ;;  %v339_v5 = vmul.f32 0.2, %v275_v57  ;;  %v276_v6 = vadd.f32 %v541_v1, %v237_v58  ;;  %v277_v7 = vadd.f32 %v541_v1, %v238_v59  ;;  %v278_v8 = vadd.f32 %v541_v1, %v239_v62 }
  0x2f   : > { %v279_v9 = vadd.f32 %v541_v1, %v240_v63  ;;  %v370_v10 = vsel %vm306_vm6, %v274_v56, %v338_v4  ;;  %v241_v12 = vmul.f32 %v531_v0, %v202_v2  ;;  %v242_v13 = vmul.f32 %v531_v0, %v203_v3 }
  0x30   : > { %v371_v11 = vsel %vm307_vm7, %v275_v57, %v339_v5  ;;  %402 = vst [vmem:[%s569_s25 + $0xb0] sm:$0xff] %v370_v10  ;;  %vm308_vm8 = vcmp.ge.f32.partialorder %v276_v6, 0.0  ;;  %v340_v16 = vmul.f32 0.2, %v276_v6  ;;  %vm309_vm9 = vcmp.ge.f32.partialorder %v277_v7, 0.0 }
  0x31   : > { %403 = vst [vmem:[%s569_s25 + $0xb8] sm:$0xff] %v371_v11  ;;  %v341_v17 = vmul.f32 0.2, %v277_v7  ;;  %vm310_vm10 = vcmp.ge.f32.partialorder %v278_v8, 0.0  ;;  %v342_v18 = vmul.f32 0.2, %v278_v8  ;;  %v280_v22 = vadd.f32 %v541_v1, %v241_v12 }
  0x32   : > { %vm311_vm11 = vcmp.ge.f32.partialorder %v279_v9, 0.0  ;;  %v343_v19 = vmul.f32 0.2, %v279_v9  ;;  %v372_v20 = vsel %vm308_vm8, %v276_v6, %v340_v16  ;;  %v281_v23 = vadd.f32 %v541_v1, %v242_v13 }
  0x33   : > { %v373_v21 = vsel %vm309_vm9, %v277_v7, %v341_v17  ;;  %404 = vst [vmem:[%s569_s25 + $0xc0] sm:$0xff] %v372_v20  ;;  %v374_v24 = vsel %vm310_vm10, %v278_v8, %v342_v18  ;;  %v243_v26 = vmul.f32 %v531_v0, %v204_v14  ;;  %v244_v27 = vmul.f32 %v531_v0, %v205_v15 }
  0x34   : > { %405 = vst [vmem:[%s569_s25 + $0xc8] sm:$0xff] %v373_v21  ;;  %v375_v25 = vsel %vm311_vm11, %v279_v9, %v343_v19  ;;  %406 = vst [vmem:[%s569_s25 + $0xd0] sm:$0xff] %v374_v24  ;;  %vm312_vm12 = vcmp.ge.f32.partialorder %v280_v22, 0.0  ;;  %v344_v28 = vmul.f32 0.2, %v280_v22  ;;  %vm313_vm13 = vcmp.ge.f32.partialorder %v281_v23, 0.0 }
  0x35   : > { %407 = vst [vmem:[%s569_s25 + $0xd8] sm:$0xff] %v375_v25  ;;  %v345_v29 = vmul.f32 0.2, %v281_v23  ;;  %v282_v30 = vadd.f32 %v541_v1, %v243_v26  ;;  %v283_v31 = vadd.f32 %v541_v1, %v244_v27 }
  0x36   : > { %v376_v32 = vsel %vm312_vm12, %v280_v22, %v344_v28 }
  0x37   : > { %v377_v33 = vsel %vm313_vm13, %v281_v23, %v345_v29  ;;  %408 = vst [vmem:[%s569_s25 + $0xe0] sm:$0xff] %v376_v32  ;;  %vm314_vm14 = vcmp.ge.f32.partialorder %v282_v30, 0.0  ;;  %v346_v34 = vmul.f32 0.2, %v282_v30  ;;  %vm315_vm15 = vcmp.ge.f32.partialorder %v283_v31, 0.0 }
  0x38   : > { %409 = vst [vmem:[%s569_s25 + $0xe8] sm:$0xff] %v377_v33  ;;  %v347_v0 = vmul.f32 0.2, %v283_v31 }
  0x39   : > { %v378_v35 = vsel %vm314_vm14, %v282_v30, %v346_v34 }
  0x3a   : > { %v379_v36 = vsel %vm315_vm15, %v283_v31, %v347_v0  ;;  %410 = vst [vmem:[%s569_s25 + $0xf0] sm:$0xff] %v378_v35 }
  0x3b   : > { %411 = vst [vmem:[%s569_s25 + $0xf8] sm:$0xff] %v379_v36 }
  0x3c PF: > { %s13_s12 = sadd.s32 1, %s495_s12  }
  0x3d   : > { %p10_p4 = scmp.ge.s32.totalorder %s13_s12, 4  }
  0x3f   :  { %12 = sbr.rel (!%p10_p4) target bundleno = 1 (0x1), region = 62 }

// kernel: critic_forward.13
= control target key start
LH: loop header
LB: loop body
LE: loop exit
PB: predicated region body
PF: predicated region fallthrough
CT: control target
= control target key end

     0   :  { %s833_s18 = smov 0   ;;  %s939_s0 = inlined_call_operand.vmem [shape: bf16[128,256], index: 0, kind: input, shape index: {}]   ;;  %s940_s1 = inlined_call_operand.vmem [shape: bf16[256,128], index: 1, kind: input, shape index: {}]   ;;  %s941_s2 = inlined_call_operand.vmem [shape: f32[1,128], index: 2, kind: input, shape index: {}]   ;;  %s942_s3 = inlined_call_operand.vmem [shape: f32[128,128], index: 3, kind: output, shape index: {0}]   ;;  %s943_s4 = inlined_call_operand.vmem [shape: f32[16,128], index: 4, kind: output, shape index: {1}]   ;;  %s944_s5 = inlined_call_operand.vmem [shape: f32[16,128], index: 5, kind: output, shape index: {2}]  }
   0x1 LB: > { %s839_s19 = sadd.s32 4294967295, %s801_s18   ;;  %p667_p0 = scmp.ge.s32.totalorder %s801_s18, 1  ;;  %s801_s18 = sphi %s833_s18, %s16_s18  }
   0x2   : > { %p194_p1 = scmp.lt.s32.totalorder %s801_s18, 3 }
   0x4   : > { %p195_p2 = pnand %p667_p0, %p194_p1 }
   0x5   : > { %s668_s22 = sshll.u32 (!%p195_p2), %s839_s19, 3  ;;  %p244_p4 = scmp.lt.s32.totalorder (!%p195_p2), %s839_s19, 1 }
   0x6   : > { %198 = sbr.rel (%p195_p2) target bundleno = 280 (0x118), region = 32  ;;  %p232_p3 = scmp.lt.s32.totalorder (!%p195_p2), %s668_s22, 15 }
   0xb   : > { %v767_v0 = vld [vmem:[%s940_s1 + $0x78] sm:$0xff]   ;;  %v769_v2 = vld [vmem:[%s940_s1 + $0x70] sm:$0xff]   ;;  %v771_v4 = vld [vmem:[%s940_s1 + $0x68] sm:$0xff]   ;;  %s946_s22 = smov (!%p232_p3, %s668_s22), 15  ;;  %s948_s19 = smov (!%p244_p4, %s839_s19), 1 }
   0xc   : > { %v768_v1 = vld [vmem:[%s940_s1 + $0x38] sm:$0xff]   ;;  %703 = vmatprep.subr.bf16.mxu0 %v767_v0  ;;  %743 = vmatprep.subr.bf16.mxu1 %v767_v0  ;;  %v770_v3 = vld [vmem:[%s940_s1 + $0x30] sm:$0xff]   ;;  %v772_v5 = vld [vmem:[%s940_s1 + $0x28] sm:$0xff]   ;;  %s702_s12 = sshll.u32 %s946_s22, 3  ;;  %s673_s22 = sshll.u32 %s948_s19, 3 }
   0xd   : > { %704 = vmatpush3.bf16.msra.mxu0 %v768_v1  ;;  %751 = vmatpush3.bf16.msra.mxu1 %v768_v1  ;;  %v773_v6 = vld [vmem:[%s940_s1 + $0x60] sm:$0xff]   ;;  %v775_v8 = vld [vmem:[%s940_s1 + $0x58] sm:$0xff]   ;;  %s879_s17 = scalar_lea.vmem %s939_s0, %s702_s12  ;;  %v777_v10 = vld [vmem:[%s940_s1 + $0x50] sm:$0xff]   ;;  %s918_s15 = scalar_lea.vmem %s942_s3, %s702_s12 }
   0xe   : > { %705 = vmatprep.subr.bf16.mxu0 %v769_v2  ;;  %744 = vmatprep.subr.bf16.mxu1 %v769_v2  ;;  %v774_v7 = vld [vmem:[%s940_s1 + $0x20] sm:$0xff]   ;;  %v776_v9 = vld [vmem:[%s940_s1 + $0x18] sm:$0xff]   ;;  %v778_v13 = vld [vmem:[%s940_s1 + $0x10] sm:$0xff]   ;;  %s251_s23 = scalar_lea.vmem %s944_s5, %s673_s22 }
   0xf   : > { %v785_v11 = vld [vmem:[%s879_s17 + $0x4] ss:$8 sps:$4 sm:$0xff]   ;;  %v783_v18 = vld [vmem:[%s879_s17] ss:$8 sps:$4 sm:$0xff]   ;;  %v789_v20 = vld [vmem:[%s879_s17 + $0x14] ss:$8 sps:$4 sm:$0xff]  }
  0x10   : > { %v788_v12 = vld [vmem:[%s879_s17 + $0x24] ss:$8 sps:$4 sm:$0xff]   ;;  %468 = vmatprep.mubr.bf16.mxu0 %v785_v11  ;;  %v786_v19 = vld [vmem:[%s879_s17 + $0x20] ss:$8 sps:$4 sm:$0xff]   ;;  %v792_v21 = vld [vmem:[%s879_s17 + $0x34] ss:$8 sps:$4 sm:$0xff]  }
  0x11   : > { %706 = vmatpush3.bf16.msra.mxu0 %v770_v3  ;;  %752 = vmatpush3.bf16.msra.mxu1 %v770_v3  ;;  %v779_v14 = vld [vmem:[%s940_s1 + $0x48] sm:$0xff]   ;;  %v781_v16 = vld [vmem:[%s940_s1 + $0x40] sm:$0xff]   ;;  %v791_v22 = vld [vmem:[%s879_s17 + $0x10] ss:$8 sps:$4 sm:$0xff]  }
  0x12   : > { %707 = vmatprep.subr.bf16.mxu0 %v771_v4  ;;  %745 = vmatprep.subr.bf16.mxu1 %v771_v4  ;;  %v780_v15 = vld [vmem:[%s940_s1 + $0x8] sm:$0xff]   ;;  %v782_v17 = vld [vmem:[%s940_s1] sm:$0xff]   ;;  %v794_v23 = vld [vmem:[%s879_s17 + $0x30] ss:$8 sps:$4 sm:$0xff]   ;;  %s247_s17 = scalar_lea.vmem %s943_s4, %s673_s22 }
  0x13   : > { %484 = vmatprep.mubr.bf16.mxu1 %v788_v12  ;;  %v675_v26 = vld [vmem:[%s941_s2] ss:$0 sm:$0xff] }
  0x15   : > { %708 = vmatpush3.bf16.msra.mxu0 %v772_v5  ;;  %753 = vmatpush3.bf16.msra.mxu1 %v772_v5 }
  0x16   : > { %709 = vmatprep.subr.bf16.mxu0 %v773_v6  ;;  %746 = vmatprep.subr.bf16.mxu1 %v773_v6 }
  0x19   : > { %710 = vmatpush3.bf16.msra.mxu0 %v774_v7  ;;  %754 = vmatpush3.bf16.msra.mxu1 %v774_v7 }
  0x1a   : > { %711 = vmatprep.subr.bf16.mxu0 %v775_v8  ;;  %747 = vmatprep.subr.bf16.mxu1 %v775_v8 }
  0x1d   : > { %712 = vmatpush3.bf16.msra.mxu0 %v776_v9  ;;  %755 = vmatpush3.bf16.msra.mxu1 %v776_v9 }
  0x1e   : > { %713 = vmatprep.subr.bf16.mxu0 %v777_v10  ;;  %748 = vmatprep.subr.bf16.mxu1 %v777_v10 }
  0x21   : > { %714 = vmatpush3.bf16.msra.mxu0 %v778_v13  ;;  %756 = vmatpush3.bf16.msra.mxu1 %v778_v13 }
  0x22   : > { %715 = vmatprep.subr.bf16.mxu0 %v779_v14  ;;  %749 = vmatprep.subr.bf16.mxu1 %v779_v14 }
  0x25   : > { %716 = vmatpush3.bf16.msra.mxu0 %v780_v15  ;;  %757 = vmatpush3.bf16.msra.mxu1 %v780_v15 }
  0x26   : > { %717 = vmatprep.subr.bf16.mxu0 %v781_v16  ;;  %750 = vmatprep.subr.bf16.mxu1 %v781_v16 }
  0x29   : > { %718 = vmatpush3.bf16.msra.mxu0 %v782_v17  ;;  %758 = vmatpush3.bf16.msra.mxu1 %v782_v17 }
  0x2c   : > { %469 = vmatmul.mubr.bf16.vlgmr.msra.gmra.mxu0 %v783_v18  ;;  %485 = vmatmul.mubr.bf16.vlgmr.msra.gmra.mxu1 %v786_v19 }
  0x2d   : > { %476 = vmatprep.mubr.bf16.mxu0 %v789_v20  ;;  %492 = vmatprep.mubr.bf16.mxu1 %v792_v21 }
  0x34   : > { %477 = vmatmul.mubr.bf16.gmra.mxu0 %v791_v22  ;;  %493 = vmatmul.mubr.bf16.gmra.mxu1 %v794_v23 }
  0xec   : > { %v719_v24 = vpop.f32.mrf.mxu0  ;;  %v731_v25 = vpop.f32.mrf.mxu1 }
  0xee   : > { %v720_v27 = vpop.f32.mrf.mxu0  ;;  %v732_v28 = vpop.f32.mrf.mxu1 }
  0xef   : > { %v721_v29 = vadd.f32 %v720_v27, %v719_v24  ;;  %v733_v30 = vadd.f32 %v732_v28, %v731_v25 }
  0xf0   : > { %v722_v31 = vpop.f32.mrf.mxu0  ;;  %v734_v32 = vpop.f32.mrf.mxu1 }
  0xf1   : > { %v471_v33 = vadd.f32 %v721_v29, %v675_v26  ;;  %v487_v34 = vadd.f32 %v733_v30, %v675_v26 }
  0xf2   : > { %v723_v35 = vpop.f32.mrf.mxu0  ;;  %v735_v36 = vpop.f32.mrf.mxu1 }
  0xf3   : > { %501 = vst [vmem:[%s918_s15] sm:$0xff] %v471_v33  ;;  %505 = vst [vmem:[%s918_s15 + $0x20] sm:$0xff] %v487_v34  ;;  %v724_v37 = vadd.f32 %v723_v35, %v722_v31  ;;  %v736_v38 = vadd.f32 %v735_v36, %v734_v32  ;;  %v523_v51 = vmul.f32 %v471_v33, %v471_v33 }
  0xf4   : > { %v725_v39 = vpop.f32.mrf.mxu0  ;;  %v737_v40 = vpop.f32.mrf.mxu1  ;;  %v527_v2 = vmul.f32 %v487_v34, %v487_v34 }
  0xf5   : > { %v474_v41 = vadd.f32 %v724_v37, %v675_v26  ;;  %v490_v42 = vadd.f32 %v736_v38, %v675_v26 }
  0xf6   : > { %v726_v43 = vpop.f32.mrf.mxu0  ;;  %v738_v44 = vpop.f32.mrf.mxu1 }
  0xf7   : > { %502 = vst [vmem:[%s918_s15 + $0x8] sm:$0xff] %v474_v41  ;;  %506 = vst [vmem:[%s918_s15 + $0x28] sm:$0xff] %v490_v42  ;;  %v727_v45 = vadd.f32 %v726_v43, %v725_v39  ;;  %v739_v47 = vadd.f32 %v738_v44, %v737_v40  ;;  %v524_v49 = vmul.f32 %v474_v41, %v474_v41 }
  0xf8   : > { %v728_v46 = vpop.f32.mrf.mxu0  ;;  %v740_v48 = vpop.f32.mrf.mxu1  ;;  %v509_v55 = vadd.f32 %v474_v41, %v471_v33  ;;  %v528_v5 = vmul.f32 %v490_v42, %v490_v42 }
  0xf9   : > { %v479_v50 = vadd.f32 %v727_v45, %v675_v26  ;;  %v495_v52 = vadd.f32 %v739_v47, %v675_v26  ;;  %v531_v59 = vadd.f32 %v524_v49, %v523_v51 }
  0xfa   : > { %v729_v53 = vpop.f32.mrf.mxu0  ;;  %v741_v54 = vpop.f32.mrf.mxu1 }
  0xfb   : > { %503 = vst [vmem:[%s918_s15 + $0x10] sm:$0xff] %v479_v50  ;;  %v525_v56 = vmul.f32 %v479_v50, %v479_v50  ;;  %v730_v57 = vadd.f32 %v729_v53, %v728_v46  ;;  %v742_v58 = vadd.f32 %v741_v54, %v740_v48  ;;  %507 = vst [vmem:[%s918_s15 + $0x30] sm:$0xff] %v495_v52 }
  0xfc   : > { %v510_v60 = vadd.f32 %v509_v55, %v479_v50  ;;  %v529_v8 = vmul.f32 %v495_v52, %v495_v52 }
  0xfd   : > { %v482_v61 = vadd.f32 %v730_v57, %v675_v26  ;;  %v498_v62 = vadd.f32 %v742_v58, %v675_v26  ;;  %v532_v63 = vadd.f32 %v531_v59, %v525_v56 }
  0xff   : > { %504 = vst [vmem:[%s918_s15 + $0x18] sm:$0xff] %v482_v61  ;;  %v511_v0 = vadd.f32 %v510_v60, %v482_v61  ;;  %v526_v1 = vmul.f32 %v482_v61, %v482_v61  ;;  %508 = vst [vmem:[%s918_s15 + $0x38] sm:$0xff] %v498_v62  ;;  %v530_v12 = vmul.f32 %v498_v62, %v498_v62 }
 0x101   : > { %v512_v3 = vadd.f32 %v511_v0, %v487_v34  ;;  %v533_v4 = vadd.f32 %v532_v63, %v526_v1 }
 0x103   : > { %v534_v6 = vadd.f32 %v533_v4, %v527_v2  ;;  %v513_v7 = vadd.f32 %v512_v3, %v490_v42 }
 0x105   : > { %v514_v9 = vadd.f32 %v513_v7, %v495_v52  ;;  %v535_v10 = vadd.f32 %v534_v6, %v528_v5 }
 0x107   : > { %v515_v11 = vadd.f32 %v514_v9, %v498_v62  ;;  %v536_v13 = vadd.f32 %v535_v10, %v529_v8 }
 0x109   : > { %v516_v14 = vrot.slane %v515_v11, 4  ;;  %v537_v15 = vadd.f32 %v536_v13, %v530_v12 }
 0x10b   : > { %v517_v16 = vadd.f32 %v516_v14, %v515_v11  ;;  %v538_v17 = vrot.slane %v537_v15, 4 }
 0x10d   : > { %v518_v18 = vrot.slane %v517_v16, 2  ;;  %v539_v19 = vadd.f32 %v538_v17, %v537_v15 }
 0x10f   : > { %v519_v20 = vadd.f32 %v518_v18, %v517_v16  ;;  %v540_v21 = vrot.slane %v539_v19, 2 }
 0x111   : > { %v520_v22 = vrot.slane %v519_v20, 1  ;;  %v541_v23 = vadd.f32 %v540_v21, %v539_v19 }
 0x113   : > { %v521_v24 = vadd.f32 %v520_v22, %v519_v20  ;;  %v542_v25 = vrot.slane %v541_v23, 1 }
 0x115   : > { %522 = vst [vmem:[%s247_s17] sm:$0xff] %v521_v24  ;;  %v543_v26 = vadd.f32 %v542_v25, %v541_v23 }
 0x117   : > { %544 = vst [vmem:[%s251_s23] sm:$0xff] %v543_v26 }
 0x118 PF: > { %s16_s18 = sadd.s32 1, %s801_s18  }
 0x119   : > { %p13_p5 = scmp.ge.s32.totalorder %s16_s18, 4  }
 0x11b   :  { %15 = sbr.rel (!%p13_p5) target bundleno = 1 (0x1), region = 86 }

// kernel: critic_forward.14
= control target key start
LH: loop header
LB: loop body
LE: loop exit
PB: predicated region body
PF: predicated region fallthrough
CT: control target
= control target key end

     0   :  { %s349_s12 = smov 0   ;;  %s382_s0 = inlined_call_operand.vmem [shape: f32[128,128], index: 0, kind: input, shape index: {}]   ;;  %s383_s1 = inlined_call_operand.vmem [shape: f32[1,128], index: 1, kind: input, shape index: {}]   ;;  %s384_s2 = inlined_call_operand.vmem [shape: f32[1,128], index: 2, kind: input, shape index: {}]   ;;  %s385_s3 = inlined_call_operand.vmem [shape: f32[128,128], index: 3, kind: output, shape index: {}]  }
   0x1 LB: > { %s300_s13 = sadd.s32 4294967295, %s327_s12   ;;  %p304_p0 = scmp.ge.s32.totalorder %s327_s12, 1  ;;  %s327_s12 = sphi %s349_s12, %s13_s12  }
   0x2   : > { %p138_p1 = scmp.lt.s32.totalorder %s327_s12, 3 }
   0x4   : > { %p139_p2 = pnand %p304_p0, %p138_p1 }
   0x5   : > { %s305_s14 = sshll.u32 (!%p139_p2), %s300_s13, 3 }
   0x6   : > { %142 = sbr.rel (%p139_p2) target bundleno = 30 (0x1e), region = 32  ;;  %p163_p3 = scmp.lt.s32.totalorder (!%p139_p2), %s305_s14, 15 }
   0xb   : > { %s387_s14 = smov (!%p163_p3, %s305_s14), 15  ;;  %v309_v0 = vld [vmem:[%s383_s1] ss:$0 sm:$0xff] }
   0xc   : > { %s306_s15 = sshll.u32 %s387_s14, 3  ;;  %v310_v1 = vld [vmem:[%s384_s2] ss:$0 sm:$0xff] }
   0xd   : > { %s166_s20 = scalar_lea.vmem %s382_s0, %s306_s15  ;;  %s369_s25 = scalar_lea.vmem %s385_s3, %s306_s15 }
   0xe   : > { %v174_v2 = vld [vmem:[%s166_s20] sm:$0xff]  ;;  %v175_v3 = vld [vmem:[%s166_s20 + $0x8] sm:$0xff]  ;;  %v176_v4 = vld [vmem:[%s166_s20 + $0x10] sm:$0xff] }
   0xf   : > { %v189_v5 = vmul.f32 %v309_v0, %v174_v2  ;;  %v190_v6 = vmul.f32 %v309_v0, %v175_v3  ;;  %v191_v7 = vmul.f32 %v309_v0, %v176_v4  ;;  %v177_v8 = vld [vmem:[%s166_s20 + $0x18] sm:$0xff]  ;;  %v178_v9 = vld [vmem:[%s166_s20 + $0x20] sm:$0xff]  ;;  %v179_v10 = vld [vmem:[%s166_s20 + $0x28] sm:$0xff] }
  0x10   : > { %v192_v11 = vmul.f32 %v309_v0, %v177_v8  ;;  %v193_v12 = vmul.f32 %v309_v0, %v178_v9  ;;  %v194_v13 = vmul.f32 %v309_v0, %v179_v10  ;;  %v180_v14 = vld [vmem:[%s166_s20 + $0x30] sm:$0xff]  ;;  %v181_v15 = vld [vmem:[%s166_s20 + $0x38] sm:$0xff] }
  0x11   : > { %v204_v16 = vadd.f32 %v310_v1, %v189_v5  ;;  %v205_v17 = vadd.f32 %v310_v1, %v190_v6  ;;  %v206_v18 = vadd.f32 %v310_v1, %v191_v7  ;;  %v195_v19 = vmul.f32 %v309_v0, %v180_v14 }
  0x12   : > { %v207_v20 = vadd.f32 %v310_v1, %v192_v11  ;;  %v208_v21 = vadd.f32 %v310_v1, %v193_v12  ;;  %v209_v22 = vadd.f32 %v310_v1, %v194_v13  ;;  %v196_v23 = vmul.f32 %v309_v0, %v181_v15 }
  0x13   : > { %vm212_vm0 = vcmp.ge.f32.partialorder %v204_v16, 0.0  ;;  %v220_v24 = vmul.f32 0.2, %v204_v16  ;;  %vm213_vm1 = vcmp.ge.f32.partialorder %v205_v17, 0.0  ;;  %v221_v25 = vmul.f32 0.2, %v205_v17 }
  0x14   : > { %vm214_vm2 = vcmp.ge.f32.partialorder %v206_v18, 0.0  ;;  %v222_v26 = vmul.f32 0.2, %v206_v18  ;;  %vm215_vm3 = vcmp.ge.f32.partialorder %v207_v20, 0.0  ;;  %v223_v27 = vmul.f32 0.2, %v207_v20 }
  0x15   : > { %v228_v28 = vsel %vm212_vm0, %v204_v16, %v220_v24  ;;  %v229_v29 = vsel %vm213_vm1, %v205_v17, %v221_v25  ;;  %vm216_vm4 = vcmp.ge.f32.partialorder %v208_v21, 0.0  ;;  %v224_v30 = vmul.f32 0.2, %v208_v21 }
  0x16   : > { %236 = vst [vmem:[%s369_s25] sm:$0xff] %v228_v28  ;;  %237 = vst [vmem:[%s369_s25 + $0x8] sm:$0xff] %v229_v29  ;;  %v230_v31 = vsel %vm214_vm2, %v206_v18, %v222_v26  ;;  %v231_v32 = vsel %vm215_vm3, %v207_v20, %v223_v27  ;;  %vm217_vm5 = vcmp.ge.f32.partialorder %v209_v22, 0.0  ;;  %v225_v33 = vmul.f32 0.2, %v209_v22 }
  0x17   : > { %238 = vst [vmem:[%s369_s25 + $0x10] sm:$0xff] %v230_v31  ;;  %239 = vst [vmem:[%s369_s25 + $0x18] sm:$0xff] %v231_v32  ;;  %v232_v34 = vsel %vm216_vm4, %v208_v21, %v224_v30  ;;  %v210_v35 = vadd.f32 %v310_v1, %v195_v19  ;;  %v211_v36 = vadd.f32 %v310_v1, %v196_v23 }
  0x18   : > { %240 = vst [vmem:[%s369_s25 + $0x20] sm:$0xff] %v232_v34  ;;  %v233_v37 = vsel %vm217_vm5, %v209_v22, %v225_v33 }
  0x19   : > { %241 = vst [vmem:[%s369_s25 + $0x28] sm:$0xff] %v233_v37  ;;  %vm218_vm6 = vcmp.ge.f32.partialorder %v210_v35, 0.0  ;;  %v226_v38 = vmul.f32 0.2, %v210_v35  ;;  %vm219_vm7 = vcmp.ge.f32.partialorder %v211_v36, 0.0 }
  0x1a   : > { %v227_v39 = vmul.f32 0.2, %v211_v36 }
  0x1b   : > { %v234_v40 = vsel %vm218_vm6, %v210_v35, %v226_v38 }
  0x1c   : > { %v235_v41 = vsel %vm219_vm7, %v211_v36, %v227_v39  ;;  %242 = vst [vmem:[%s369_s25 + $0x30] sm:$0xff] %v234_v40 }
  0x1d   : > { %243 = vst [vmem:[%s369_s25 + $0x38] sm:$0xff] %v235_v41 }
  0x1e PF: > { %s13_s12 = sadd.s32 1, %s327_s12  }
  0x1f   : > { %p10_p4 = scmp.ge.s32.totalorder %s13_s12, 4  }
  0x21   :  { %12 = sbr.rel (!%p10_p4) target bundleno = 1 (0x1), region = 62 }

// kernel: critic_forward.16
= control target key start
LH: loop header
LB: loop body
LE: loop exit
PB: predicated region body
PF: predicated region fallthrough
CT: control target
= control target key end

     0   :  { %s307_s12 = smov 0   ;;  %s330_s0 = inlined_call_operand.vmem [shape: f32[32,128], index: 0, kind: input, shape index: {}]   ;;  %s331_s1 = inlined_call_operand.vmem [shape: f32[1,128], index: 1, kind: input, shape index: {}]   ;;  %s332_s2 = inlined_call_operand.vmem [shape: f32[1,128], index: 2, kind: input, shape index: {}]   ;;  %s333_s3 = inlined_call_operand.vmem [shape: f32[32,128], index: 3, kind: output, shape index: {}]  }
   0x1 LB: > { %s258_s13 = sadd.s32 4294967295, %s285_s12   ;;  %p262_p0 = scmp.ge.s32.totalorder %s285_s12, 1  ;;  %s285_s12 = sphi %s307_s12, %s13_s12  }
   0x2   : > { %p138_p1 = scmp.lt.s32.totalorder %s285_s12, 3 }
   0x4   : > { %p139_p2 = pnand %p262_p0, %p138_p1 }
   0x5   : > { %s263_s14 = sshll.u32 (!%p139_p2), %s258_s13, 1 }
   0x6   : > { %142 = sbr.rel (%p139_p2) target bundleno = 23 (0x17), region = 32  ;;  %p163_p3 = scmp.lt.s32.totalorder (!%p139_p2), %s263_s14, 3 }
   0xb   : > { %s335_s14 = smov (!%p163_p3, %s263_s14), 3  ;;  %v267_v0 = vld [vmem:[%s331_s1] ss:$0 sm:$0xff] }
   0xc   : > { %s264_s15 = sshll.u32 %s335_s14, 3  ;;  %v268_v3 = vld [vmem:[%s332_s2] ss:$0 sm:$0xff] }
   0xd   : > { %s166_s20 = scalar_lea.vmem %s330_s0, %s264_s15  ;;  %s172_s25 = scalar_lea.vmem %s333_s3, %s264_s15 }
   0xe   : > { %v174_v1 = vld [vmem:[%s166_s20] sm:$0xff]  ;;  %v175_v2 = vld [vmem:[%s166_s20 + $0x8] sm:$0xff] }
   0xf   : > { %v183_v4 = vmul.f32 %v267_v0, %v174_v1  ;;  %v184_v5 = vmul.f32 %v267_v0, %v175_v2 }
  0x11   : > { %v192_v6 = vadd.f32 %v268_v3, %v183_v4  ;;  %v193_v7 = vadd.f32 %v268_v3, %v184_v5 }
  0x13   : > { %vm194_vm0 = vcmp.ge.f32.partialorder %v192_v6, 0.0  ;;  %v196_v8 = vmul.f32 0.2, %v192_v6  ;;  %vm195_vm1 = vcmp.ge.f32.partialorder %v193_v7, 0.0  ;;  %v197_v9 = vmul.f32 0.2, %v193_v7 }
  0x15   : > { %v198_v10 = vsel %vm194_vm0, %v192_v6, %v196_v8  ;;  %v199_v11 = vsel %vm195_vm1, %v193_v7, %v197_v9 }
  0x16   : > { %200 = vst [vmem:[%s172_s25] sm:$0xff] %v198_v10  ;;  %201 = vst [vmem:[%s172_s25 + $0x8] sm:$0xff] %v199_v11 }
  0x17 PF: > { %s13_s12 = sadd.s32 1, %s285_s12  }
  0x18   : > { %p10_p4 = scmp.ge.s32.totalorder %s13_s12, 4  }
  0x1a   :  { %12 = sbr.rel (!%p10_p4) target bundleno = 1 (0x1), region = 62 }

// kernel: critic_forward.15
= control target key start
LH: loop header
LB: loop body
LE: loop exit
PB: predicated region body
PF: predicated region fallthrough
CT: control target
= control target key end

     0   :  { %s940_s18 = smov 0   ;;  %s1071_s0 = inlined_call_operand.vmem [shape: bf16[32,512], index: 0, kind: input, shape index: {}]   ;;  %s1072_s1 = inlined_call_operand.vmem [shape: bf16[512,128], index: 1, kind: input, shape index: {}]   ;;  %s1073_s2 = inlined_call_operand.vmem [shape: f32[1,128], index: 2, kind: input, shape index: {}]   ;;  %s1074_s3 = inlined_call_operand.vmem [shape: f32[32,128], index: 3, kind: output, shape index: {0}]   ;;  %s1075_s4 = inlined_call_operand.vmem [shape: f32[16,128], index: 4, kind: output, shape index: {1}]   ;;  %s1076_s5 = inlined_call_operand.vmem [shape: f32[16,128], index: 5, kind: output, shape index: {2}]  }
   0x1 LB: > { %s946_s19 = sadd.s32 4294967295, %s908_s18   ;;  %p764_p0 = scmp.ge.s32.totalorder %s908_s18, 1  ;;  %s908_s18 = sphi %s940_s18, %s16_s18  }
   0x2   : > { %p194_p1 = scmp.lt.s32.totalorder %s908_s18, 3 }
   0x4   : > { %p195_p2 = pnand %p764_p0, %p194_p1 }
   0x5   : > { %s765_s29 = sshll.u32 (!%p195_p2), %s946_s19, 1  ;;  %p244_p4 = scmp.lt.s32.totalorder (!%p195_p2), %s946_s19, 1 }
   0x6   : > { %198 = sbr.rel (%p195_p2) target bundleno = 267 (0x10b), region = 32  ;;  %p232_p3 = scmp.lt.s32.totalorder (!%p195_p2), %s765_s29, 3 }
   0xb   : > { %v864_v0 = vld [vmem:[%s1072_s1 + $0x78] sm:$0xff]   ;;  %v868_v4 = vld [vmem:[%s1072_s1 + $0x70] sm:$0xff]   ;;  %v872_v8 = vld [vmem:[%s1072_s1 + $0x68] sm:$0xff]   ;;  %s1078_s29 = smov (!%p232_p3, %s765_s29), 3  ;;  %s1080_s19 = smov (!%p244_p4, %s946_s19), 1 }
   0xc   : > { %v865_v1 = vld [vmem:[%s1072_s1 + $0xf8] sm:$0xff]   ;;  %812 = vmatprep.subr.bf16.mxu0 %v864_v0  ;;  %v869_v5 = vld [vmem:[%s1072_s1 + $0xf0] sm:$0xff]   ;;  %v873_v9 = vld [vmem:[%s1072_s1 + $0xe8] sm:$0xff]   ;;  %s811_s30 = sshll.u32 %s1078_s29, 4  ;;  %s769_s23 = sshll.u32 %s1078_s29, 3 }
   0xd   : > { %v866_v2 = vld [vmem:[%s1072_s1 + $0x38] sm:$0xff]   ;;  %834 = vmatprep.subr.bf16.mxu1 %v865_v1  ;;  %v870_v6 = vld [vmem:[%s1072_s1 + $0x30] sm:$0xff]   ;;  %v874_v10 = vld [vmem:[%s1072_s1 + $0x28] sm:$0xff]   ;;  %s236_s14 = scalar_lea.vmem %s1071_s0, %s811_s30  ;;  %s242_s26 = scalar_lea.vmem %s1074_s3, %s769_s23 }
   0xe   : > { %v867_v3 = vld [vmem:[%s1072_s1 + $0xb8] sm:$0xff]   ;;  %813 = vmatpush3.bf16.msra.mxu0 %v866_v2  ;;  %v871_v7 = vld [vmem:[%s1072_s1 + $0xb0] sm:$0xff]   ;;  %v875_v11 = vld [vmem:[%s1072_s1 + $0xa8] sm:$0xff]   ;;  %s770_s29 = sshll.u32 %s1080_s19, 3 }
   0xf   : > { %835 = vmatpush3.bf16.msra.mxu1 %v867_v3  ;;  %814 = vmatprep.subr.bf16.mxu0 %v868_v4  ;;  %v876_v12 = vld [vmem:[%s1072_s1 + $0x60] sm:$0xff]   ;;  %v880_v16 = vld [vmem:[%s1072_s1 + $0x58] sm:$0xff]   ;;  %v884_v20 = vld [vmem:[%s1072_s1 + $0x50] sm:$0xff]   ;;  %s247_s30 = scalar_lea.vmem %s1075_s4, %s770_s29  ;;  %s251_s8 = scalar_lea.vmem %s1076_s5, %s770_s29 }
  0x10   : > { %836 = vmatprep.subr.bf16.mxu1 %v869_v5  ;;  %v877_v13 = vld [vmem:[%s1072_s1 + $0xe0] sm:$0xff]   ;;  %v881_v17 = vld [vmem:[%s1072_s1 + $0xd8] sm:$0xff]   ;;  %v885_v21 = vld [vmem:[%s1072_s1 + $0xd0] sm:$0xff]  }
  0x11   : > { %v878_v14 = vld [vmem:[%s1072_s1 + $0x20] sm:$0xff]   ;;  %v882_v18 = vld [vmem:[%s1072_s1 + $0x18] sm:$0xff]   ;;  %v886_v22 = vld [vmem:[%s1072_s1 + $0x10] sm:$0xff]  }
  0x12   : > { %815 = vmatpush3.bf16.msra.mxu0 %v870_v6  ;;  %v879_v15 = vld [vmem:[%s1072_s1 + $0xa0] sm:$0xff]   ;;  %v883_v19 = vld [vmem:[%s1072_s1 + $0x98] sm:$0xff]   ;;  %v887_v23 = vld [vmem:[%s1072_s1 + $0x90] sm:$0xff]  }
  0x13   : > { %837 = vmatpush3.bf16.msra.mxu1 %v871_v7  ;;  %816 = vmatprep.subr.bf16.mxu0 %v872_v8  ;;  %v888_v24 = vld [vmem:[%s1072_s1 + $0x48] sm:$0xff]   ;;  %v892_v28 = vld [vmem:[%s1072_s1 + $0x40] sm:$0xff]  }
  0x14   : > { %838 = vmatprep.subr.bf16.mxu1 %v873_v9  ;;  %v889_v25 = vld [vmem:[%s1072_s1 + $0xc8] sm:$0xff]   ;;  %v893_v29 = vld [vmem:[%s1072_s1 + $0xc0] sm:$0xff]  }
  0x15   : > { %v890_v26 = vld [vmem:[%s1072_s1 + $0x8] sm:$0xff]   ;;  %v894_v30 = vld [vmem:[%s1072_s1] sm:$0xff]  }
  0x16   : > { %817 = vmatpush3.bf16.msra.mxu0 %v874_v10  ;;  %v891_v27 = vld [vmem:[%s1072_s1 + $0x88] sm:$0xff]   ;;  %v895_v31 = vld [vmem:[%s1072_s1 + $0x80] sm:$0xff]  }
  0x17   : > { %839 = vmatpush3.bf16.msra.mxu1 %v875_v11  ;;  %818 = vmatprep.subr.bf16.mxu0 %v876_v12  ;;  %v896_v32 = vld [vmem:[%s236_s14] ss:$16 sps:$4 sm:$0xff]   ;;  %v898_v33 = vld [vmem:[%s236_s14 + $0x4] ss:$16 sps:$4 sm:$0xff]   ;;  %v899_v34 = vld [vmem:[%s236_s14 + $0x8] ss:$16 sps:$4 sm:$0xff]  }
  0x18   : > { %840 = vmatprep.subr.bf16.mxu1 %v877_v13  ;;  %v901_v35 = vld [vmem:[%s236_s14 + $0xc] ss:$16 sps:$4 sm:$0xff]   ;;  %572 = vmatprep.mubr.bf16.mxu0 %v898_v33  ;;  %v772_v38 = vld [vmem:[%s1073_s2] ss:$0 sm:$0xff] }
  0x19   : > { %613 = vmatprep.mubr.bf16.mxu1 %v901_v35 }
  0x1a   : > { %819 = vmatpush3.bf16.msra.mxu0 %v878_v14 }
  0x1b   : > { %841 = vmatpush3.bf16.msra.mxu1 %v879_v15  ;;  %820 = vmatprep.subr.bf16.mxu0 %v880_v16 }
  0x1c   : > { %842 = vmatprep.subr.bf16.mxu1 %v881_v17 }
  0x1e   : > { %821 = vmatpush3.bf16.msra.mxu0 %v882_v18 }
  0x1f   : > { %843 = vmatpush3.bf16.msra.mxu1 %v883_v19  ;;  %822 = vmatprep.subr.bf16.mxu0 %v884_v20 }
  0x20   : > { %844 = vmatprep.subr.bf16.mxu1 %v885_v21 }
  0x22   : > { %823 = vmatpush3.bf16.msra.mxu0 %v886_v22 }
  0x23   : > { %845 = vmatpush3.bf16.msra.mxu1 %v887_v23  ;;  %824 = vmatprep.subr.bf16.mxu0 %v888_v24 }
  0x24   : > { %846 = vmatprep.subr.bf16.mxu1 %v889_v25 }
  0x26   : > { %825 = vmatpush3.bf16.msra.mxu0 %v890_v26 }
  0x27   : > { %847 = vmatpush3.bf16.msra.mxu1 %v891_v27  ;;  %826 = vmatprep.subr.bf16.mxu0 %v892_v28 }
  0x28   : > { %848 = vmatprep.subr.bf16.mxu1 %v893_v29 }
  0x2a   : > { %827 = vmatpush3.bf16.msra.mxu0 %v894_v30 }
  0x2b   : > { %849 = vmatpush3.bf16.msra.mxu1 %v895_v31 }
  0x2d   : > { %573 = vmatmul.mubr.bf16.vlgmr.msra.gmra.mxu0 %v896_v32 }
  0x2e   : > { %614 = vmatmul.mubr.bf16.vlgmr.msra.gmra.mxu1 %v899_v34 }
  0xed   : > { %v828_v36 = vpop.f32.mrf.mxu0 }
  0xee   : > { %v850_v37 = vpop.f32.mrf.mxu1 }
  0xef   : > { %v829_v39 = vpop.f32.mrf.mxu0 }
  0xf0   : > { %v830_v40 = vadd.f32 %v829_v39, %v828_v36  ;;  %v851_v41 = vpop.f32.mrf.mxu1 }
  0xf1   : > { %v831_v42 = vpop.f32.mrf.mxu0  ;;  %v852_v44 = vadd.f32 %v851_v41, %v850_v37 }
  0xf2   : > { %v575_v43 = vadd.f32 %v830_v40, %v772_v38  ;;  %v853_v45 = vpop.f32.mrf.mxu1 }
  0xf3   : > { %v832_v46 = vpop.f32.mrf.mxu0 }
  0xf4   : > { %v616_v47 = vadd.f32 %v852_v44, %v575_v43  ;;  %v833_v48 = vadd.f32 %v832_v46, %v831_v42  ;;  %v854_v49 = vpop.f32.mrf.mxu1 }
  0xf5   : > { %v855_v51 = vadd.f32 %v854_v49, %v853_v45 }
  0xf6   : > { %622 = vst [vmem:[%s242_s26] sm:$0xff] %v616_v47  ;;  %v578_v50 = vadd.f32 %v833_v48, %v772_v38  ;;  %v632_v53 = vmul.f32 %v616_v47, %v616_v47 }
  0xf8   : > { %v619_v52 = vadd.f32 %v855_v51, %v578_v50 }
  0xfa   : > { %623 = vst [vmem:[%s242_s26 + $0x8] sm:$0xff] %v619_v52  ;;  %v624_v54 = vadd.f32 %v619_v52, %v616_v47  ;;  %v633_v55 = vmul.f32 %v619_v52, %v619_v52 }
  0xfc   : > { %v625_v56 = vrot.slane %v624_v54, 4  ;;  %v634_v57 = vadd.f32 %v633_v55, %v632_v53 }
  0xfe   : > { %v626_v58 = vadd.f32 %v625_v56, %v624_v54  ;;  %v635_v59 = vrot.slane %v634_v57, 4 }
 0x100   : > { %v627_v60 = vrot.slane %v626_v58, 2  ;;  %v636_v61 = vadd.f32 %v635_v59, %v634_v57 }
 0x102   : > { %v628_v62 = vadd.f32 %v627_v60, %v626_v58  ;;  %v637_v63 = vrot.slane %v636_v61, 2 }
 0x104   : > { %v629_v0 = vrot.slane %v628_v62, 1  ;;  %v638_v1 = vadd.f32 %v637_v63, %v636_v61 }
 0x106   : > { %v630_v2 = vadd.f32 %v629_v0, %v628_v62  ;;  %v639_v3 = vrot.slane %v638_v1, 1 }
 0x108   : > { %631 = vst [vmem:[%s247_s30] sm:$0xff] %v630_v2  ;;  %v640_v4 = vadd.f32 %v639_v3, %v638_v1 }
 0x10a   : > { %641 = vst [vmem:[%s251_s8] sm:$0xff] %v640_v4 }
 0x10b PF: > { %s16_s18 = sadd.s32 1, %s908_s18  }
 0x10c   : > { %p13_p5 = scmp.ge.s32.totalorder %s16_s18, 4  }
 0x10e   :  { %15 = sbr.rel (!%p13_p5) target bundleno = 1 (0x1), region = 86 }

// kernel: critic_forward.17
= control target key start
LH: loop header
LB: loop body
LE: loop exit
PB: predicated region body
PF: predicated region fallthrough
CT: control target
= control target key end

     0   :  { %11 = vsyncpa [#allocation3], 0  ;;  %s1313_s0 = inlined_call_operand.vmem [shape: bf16[8,1024], index: 0, kind: input, shape index: {}]   ;;  %s1314_s1 = inlined_call_operand.vmem [shape: bf16[1024,128], index: 1, kind: input, shape index: {}]   ;;  %s1315_s2 = inlined_call_operand.vmem [shape: f32[1,128], index: 2, kind: input, shape index: {}]   ;;  %s1316_s3 = inlined_call_operand.vmem [shape: f32[8,128], index: 3, kind: output, shape index: {0}]   ;;  %s1317_s4 = inlined_call_operand.hbm [shape: f32[8,128], index: 4, kind: output, shape index: {1}]   ;;  %s1318_s5 = inlined_call_operand.hbm [shape: f32[8,128], index: 5, kind: output, shape index: {2}]  }
   0x1   :  { %v949_v0 = vld [vmem:[%s1314_s1 + $0x78] sm:$0xff]   ;;  %v953_v4 = vld [vmem:[%s1314_s1 + $0x70] sm:$0xff]   ;;  %v957_v8 = vld [vmem:[%s1314_s1 + $0x68] sm:$0xff]  }
   0x2   :  { %v950_v1 = vld [vmem:[%s1314_s1 + $0xf8] sm:$0xff]   ;;  %859 = vmatprep.subr.bf16.mxu0 %v949_v0  ;;  %v954_v5 = vld [vmem:[%s1314_s1 + $0xf0] sm:$0xff]   ;;  %v958_v9 = vld [vmem:[%s1314_s1 + $0xe8] sm:$0xff]  }
   0x3   :  { %v951_v2 = vld [vmem:[%s1314_s1 + $0x38] sm:$0xff]   ;;  %881 = vmatprep.subr.bf16.mxu1 %v950_v1  ;;  %v955_v6 = vld [vmem:[%s1314_s1 + $0x30] sm:$0xff]   ;;  %v959_v10 = vld [vmem:[%s1314_s1 + $0x28] sm:$0xff]  }
   0x4   :  { %v952_v3 = vld [vmem:[%s1314_s1 + $0xb8] sm:$0xff]   ;;  %860 = vmatpush3.bf16.msra.mxu0 %v951_v2  ;;  %v956_v7 = vld [vmem:[%s1314_s1 + $0xb0] sm:$0xff]   ;;  %v960_v11 = vld [vmem:[%s1314_s1 + $0xa8] sm:$0xff]  }
   0x5   :  { %882 = vmatpush3.bf16.msra.mxu1 %v952_v3  ;;  %861 = vmatprep.subr.bf16.mxu0 %v953_v4  ;;  %v961_v12 = vld [vmem:[%s1314_s1 + $0x60] sm:$0xff]   ;;  %v965_v16 = vld [vmem:[%s1314_s1 + $0x58] sm:$0xff]   ;;  %v969_v20 = vld [vmem:[%s1314_s1 + $0x50] sm:$0xff]  }
   0x6   :  { %883 = vmatprep.subr.bf16.mxu1 %v954_v5  ;;  %v962_v13 = vld [vmem:[%s1314_s1 + $0xe0] sm:$0xff]   ;;  %v966_v17 = vld [vmem:[%s1314_s1 + $0xd8] sm:$0xff]   ;;  %v970_v21 = vld [vmem:[%s1314_s1 + $0xd0] sm:$0xff]  }
   0x7   :  { %v963_v14 = vld [vmem:[%s1314_s1 + $0x20] sm:$0xff]   ;;  %v967_v18 = vld [vmem:[%s1314_s1 + $0x18] sm:$0xff]   ;;  %v971_v22 = vld [vmem:[%s1314_s1 + $0x10] sm:$0xff]  }
   0x8   :  { %862 = vmatpush3.bf16.msra.mxu0 %v955_v6  ;;  %v964_v15 = vld [vmem:[%s1314_s1 + $0xa0] sm:$0xff]   ;;  %v968_v19 = vld [vmem:[%s1314_s1 + $0x98] sm:$0xff]   ;;  %v972_v23 = vld [vmem:[%s1314_s1 + $0x90] sm:$0xff]  }
   0x9   :  { %884 = vmatpush3.bf16.msra.mxu1 %v956_v7  ;;  %863 = vmatprep.subr.bf16.mxu0 %v957_v8  ;;  %v973_v24 = vld [vmem:[%s1314_s1 + $0x48] sm:$0xff]   ;;  %v977_v28 = vld [vmem:[%s1314_s1 + $0x40] sm:$0xff]   ;;  %v985_v38 = vld [vmem:[%s1314_s1 + $0x178] sm:$0xff]  }
   0xa   :  { %885 = vmatprep.subr.bf16.mxu1 %v958_v9  ;;  %v974_v25 = vld [vmem:[%s1314_s1 + $0xc8] sm:$0xff]   ;;  %v978_v29 = vld [vmem:[%s1314_s1 + $0xc0] sm:$0xff]   ;;  %v986_v39 = vld [vmem:[%s1314_s1 + $0x1f8] sm:$0xff]  }
   0xb   :  { %v975_v26 = vld [vmem:[%s1314_s1 + $0x8] sm:$0xff]   ;;  %v979_v30 = vld [vmem:[%s1314_s1] sm:$0xff]   ;;  %v987_v40 = vld [vmem:[%s1314_s1 + $0x138] sm:$0xff]  }
   0xc   :  { %864 = vmatpush3.bf16.msra.mxu0 %v959_v10  ;;  %v976_v27 = vld [vmem:[%s1314_s1 + $0x88] sm:$0xff]   ;;  %v980_v31 = vld [vmem:[%s1314_s1 + $0x80] sm:$0xff]   ;;  %v988_v41 = vld [vmem:[%s1314_s1 + $0x1b8] sm:$0xff]  }
   0xd   :  { %886 = vmatpush3.bf16.msra.mxu1 %v960_v11  ;;  %865 = vmatprep.subr.bf16.mxu0 %v961_v12  ;;  %v20_v32 = vld [vmem:[%s1313_s0] sm:$0xff]  ;;  %v21_v33 = vld [vmem:[%s1313_s0 + $0x8] sm:$0xff]  ;;  %v989_v42 = vld [vmem:[%s1314_s1 + $0x170] sm:$0xff]  }
   0xe   :  { %887 = vmatprep.subr.bf16.mxu1 %v962_v13  ;;  %v787_v34 = vcombine.low %v20_v32, %v20_v32  ;;  %v788_v35 = vcombine.high %v20_v32, %v20_v32  ;;  %v789_v36 = vcombine.low %v21_v33, %v21_v33  ;;  %v790_v37 = vcombine.high %v21_v33, %v21_v33  ;;  %v990_v43 = vld [vmem:[%s1314_s1 + $0x1f0] sm:$0xff]   ;;  %v993_v46 = vld [vmem:[%s1314_s1 + $0x168] sm:$0xff]   ;;  %v997_v50 = vld [vmem:[%s1314_s1 + $0x160] sm:$0xff]  }
   0xf   :  { %v991_v44 = vld [vmem:[%s1314_s1 + $0x130] sm:$0xff]   ;;  %v994_v47 = vld [vmem:[%s1314_s1 + $0x1e8] sm:$0xff]   ;;  %v998_v51 = vld [vmem:[%s1314_s1 + $0x1e0] sm:$0xff]  }
  0x10   :  { %866 = vmatpush3.bf16.msra.mxu0 %v963_v14  ;;  %603 = vmatprep.mubr.bf16.mxu0 %v788_v35  ;;  %v992_v45 = vld [vmem:[%s1314_s1 + $0x1b0] sm:$0xff]   ;;  %v995_v48 = vld [vmem:[%s1314_s1 + $0x128] sm:$0xff]   ;;  %v999_v52 = vld [vmem:[%s1314_s1 + $0x120] sm:$0xff]  }
  0x11   :  { %888 = vmatpush3.bf16.msra.mxu1 %v964_v15  ;;  %867 = vmatprep.subr.bf16.mxu0 %v965_v16  ;;  %v996_v49 = vld [vmem:[%s1314_s1 + $0x1a8] sm:$0xff]   ;;  %v1000_v53 = vld [vmem:[%s1314_s1 + $0x1a0] sm:$0xff]   ;;  %v1001_v54 = vld [vmem:[%s1314_s1 + $0x158] sm:$0xff]  }
  0x12   :  { %889 = vmatprep.subr.bf16.mxu1 %v966_v17  ;;  %643 = vmatprep.mubr.bf16.mxu1 %v790_v37  ;;  %v1002_v55 = vld [vmem:[%s1314_s1 + $0x1d8] sm:$0xff]   ;;  %v1005_v58 = vld [vmem:[%s1314_s1 + $0x150] sm:$0xff]   ;;  %v1009_v62 = vld [vmem:[%s1314_s1 + $0x148] sm:$0xff]  }
  0x13   :  { %v1003_v56 = vld [vmem:[%s1314_s1 + $0x118] sm:$0xff]   ;;  %v1006_v59 = vld [vmem:[%s1314_s1 + $0x1d0] sm:$0xff]   ;;  %v1010_v63 = vld [vmem:[%s1314_s1 + $0x1c8] sm:$0xff]  }
  0x14   :  { %868 = vmatpush3.bf16.msra.mxu0 %v967_v18  ;;  %v1004_v57 = vld [vmem:[%s1314_s1 + $0x198] sm:$0xff]   ;;  %v1007_v60 = vld [vmem:[%s1314_s1 + $0x110] sm:$0xff]   ;;  %v1011_v0 = vld [vmem:[%s1314_s1 + $0x108] sm:$0xff]  }
  0x15   :  { %890 = vmatpush3.bf16.msra.mxu1 %v968_v19  ;;  %869 = vmatprep.subr.bf16.mxu0 %v969_v20  ;;  %v1008_v61 = vld [vmem:[%s1314_s1 + $0x190] sm:$0xff]   ;;  %v1012_v1 = vld [vmem:[%s1314_s1 + $0x188] sm:$0xff]   ;;  %v1013_v2 = vld [vmem:[%s1314_s1 + $0x140] sm:$0xff]  }
  0x16   :  { %891 = vmatprep.subr.bf16.mxu1 %v970_v21  ;;  %v1014_v3 = vld [vmem:[%s1314_s1 + $0x1c0] sm:$0xff]   ;;  %v22_v6 = vld [vmem:[%s1313_s0 + $0x10] sm:$0xff]  ;;  %v23_v9 = vld [vmem:[%s1313_s0 + $0x18] sm:$0xff] }
  0x17   :  { %v1015_v4 = vld [vmem:[%s1314_s1 + $0x100] sm:$0xff]   ;;  %v791_v7 = vcombine.low %v22_v6, %v22_v6  ;;  %v792_v8 = vcombine.high %v22_v6, %v22_v6 }
  0x18   :  { %870 = vmatpush3.bf16.msra.mxu0 %v971_v22  ;;  %v1016_v5 = vld [vmem:[%s1314_s1 + $0x180] sm:$0xff]  }
  0x19   :  { %892 = vmatpush3.bf16.msra.mxu1 %v972_v23  ;;  %871 = vmatprep.subr.bf16.mxu0 %v973_v24 }
  0x1a   :  { %893 = vmatprep.subr.bf16.mxu1 %v974_v25 }
  0x1c   :  { %872 = vmatpush3.bf16.msra.mxu0 %v975_v26 }
  0x1d   :  { %894 = vmatpush3.bf16.msra.mxu1 %v976_v27  ;;  %873 = vmatprep.subr.bf16.mxu0 %v977_v28 }
  0x1e   :  { %895 = vmatprep.subr.bf16.mxu1 %v978_v29 }
  0x20   :  { %874 = vmatpush3.bf16.msra.mxu0 %v979_v30 }
  0x21   :  { %896 = vmatpush3.bf16.msra.mxu1 %v980_v31  ;;  %903 = vmatprep.subr.bf16.mxu0 %v985_v38 }
  0x22   :  { %925 = vmatprep.subr.bf16.mxu1 %v986_v39 }
  0x23   :  { %604 = vmatmul.mubr.bf16.vlgmr.msra.gmra.mxu0 %v787_v34 }
  0x24   :  { %644 = vmatmul.mubr.bf16.vlgmr.msra.gmra.mxu1 %v789_v36  ;;  %904 = vmatpush3.bf16.msra.mxu0 %v987_v40 }
  0x25   :  { %926 = vmatpush3.bf16.msra.mxu1 %v988_v41  ;;  %905 = vmatprep.subr.bf16.mxu0 %v989_v42 }
  0x26   :  { %927 = vmatprep.subr.bf16.mxu1 %v990_v43 }
  0x28   :  { %906 = vmatpush3.bf16.msra.mxu0 %v991_v44 }
  0x29   :  { %928 = vmatpush3.bf16.msra.mxu1 %v992_v45  ;;  %907 = vmatprep.subr.bf16.mxu0 %v993_v46 }
  0x2a   :  { %929 = vmatprep.subr.bf16.mxu1 %v994_v47 }
  0x2c   :  { %908 = vmatpush3.bf16.msra.mxu0 %v995_v48 }
  0x2d   :  { %930 = vmatpush3.bf16.msra.mxu1 %v996_v49  ;;  %909 = vmatprep.subr.bf16.mxu0 %v997_v50 }
  0x2e   :  { %931 = vmatprep.subr.bf16.mxu1 %v998_v51 }
  0x30   :  { %910 = vmatpush3.bf16.msra.mxu0 %v999_v52 }
  0x31   :  { %932 = vmatpush3.bf16.msra.mxu1 %v1000_v53  ;;  %911 = vmatprep.subr.bf16.mxu0 %v1001_v54 }
  0x32   :  { %933 = vmatprep.subr.bf16.mxu1 %v1002_v55 }
  0x34   :  { %912 = vmatpush3.bf16.msra.mxu0 %v1003_v56 }
  0x35   :  { %934 = vmatpush3.bf16.msra.mxu1 %v1004_v57  ;;  %913 = vmatprep.subr.bf16.mxu0 %v1005_v58 }
  0x36   :  { %935 = vmatprep.subr.bf16.mxu1 %v1006_v59 }
  0x38   :  { %914 = vmatpush3.bf16.msra.mxu0 %v1007_v60 }
  0x39   :  { %936 = vmatpush3.bf16.msra.mxu1 %v1008_v61  ;;  %915 = vmatprep.subr.bf16.mxu0 %v1009_v62 }
  0x3a   :  { %937 = vmatprep.subr.bf16.mxu1 %v1010_v63 }
  0x3c   :  { %916 = vmatpush3.bf16.msra.mxu0 %v1011_v0 }
  0x3d   :  { %938 = vmatpush3.bf16.msra.mxu1 %v1012_v1  ;;  %917 = vmatprep.subr.bf16.mxu0 %v1013_v2 }
  0x3e   :  { %939 = vmatprep.subr.bf16.mxu1 %v1014_v3 }
  0x3f   :  { %12 = vsyncpa [#allocation5], 0  ;;  %v793_v10 = vcombine.low %v23_v9, %v23_v9  ;;  %v794_v11 = vcombine.high %v23_v9, %v23_v9  ;;  %683 = vmatprep.mubr.bf16.mxu0 %v792_v8  ;;  %v786_v21 = vld [vmem:[%s1315_s2] ss:$0 sm:$0xff]  ;;  %v733_v22 = vlaneseq  ;;  %s1065_s30 = smov [#allocation2]   ;;  %s1066_s7 = smov [#allocation4]  }
  0x40   :  { %918 = vmatpush3.bf16.msra.mxu0 %v1015_v4  ;;  %s762_s6 = sshll.u32 %s1065_s30, 4  ;;  %s772_s8 = sshll.u32 %s1066_s7, 4  ;;  %s763_s6 = int_to_ptr.vmem [resolvable:$true] %s762_s6  ;;  %s773_s8 = int_to_ptr.vmem [resolvable:$true] %s772_s8 }
  0x41   :  { %940 = vmatpush3.bf16.msra.mxu1 %v1016_v5  ;;  %723 = vmatprep.mubr.bf16.mxu1 %v794_v11  ;;  %v734_v29 = vshrl.u32 %v733_v22, 7  ;;  %p1026_p1 = scmp.lt.s32.totalorder %s763_s6, %s763_s6 }
  0x43   :  { %684 = vmatmul.mubr.bf16.vlgmr.msra.gmra.mxu0 %v791_v7  ;;  %vm737_vm0 = vcmp.lt.s32.totalorder %v734_v29, 2 }
  0x44   :  { %724 = vmatmul.mubr.bf16.vlgmr.msra.gmra.mxu1 %v793_v10 }
  0xe3   :  { %v875_v12 = vpop.f32.mrf.mxu0 }
  0xe4   :  { %v897_v13 = vpop.f32.mrf.mxu1 }
  0xe5   :  { %v876_v14 = vpop.f32.mrf.mxu0 }
  0xe6   :  { %v898_v15 = vpop.f32.mrf.mxu1  ;;  %v877_v20 = vadd.f32 %v876_v14, %v875_v12 }
  0xe7   :  { %v878_v16 = vpop.f32.mrf.mxu0  ;;  %v899_v24 = vadd.f32 %v898_v15, %v897_v13 }
  0xe8   :  { %v900_v17 = vpop.f32.mrf.mxu1  ;;  %v606_v23 = vadd.f32 %v877_v20, %v786_v21 }
  0xe9   :  { %v879_v18 = vpop.f32.mrf.mxu0 }
  0xea   :  { %v901_v19 = vpop.f32.mrf.mxu1  ;;  %v646_v30 = vadd.f32 %v899_v24, %v606_v23 }
 0x103   :  { %v919_v25 = vpop.f32.mrf.mxu0 }
 0x104   :  { %v941_v26 = vpop.f32.mrf.mxu1 }
 0x105   :  { %v920_v27 = vpop.f32.mrf.mxu0 }
 0x106   :  { %v942_v28 = vpop.f32.mrf.mxu1  ;;  %v921_v31 = vadd.f32 %v920_v27, %v919_v25 }
 0x107   :  { %v922_v32 = vpop.f32.mrf.mxu0  ;;  %v943_v35 = vadd.f32 %v942_v28, %v941_v26 }
 0x108   :  { %v944_v33 = vpop.f32.mrf.mxu1  ;;  %v686_v34 = vadd.f32 %v921_v31, %v646_v30 }
 0x109   :  { %v923_v36 = vpop.f32.mrf.mxu0 }
 0x10a   :  { %v945_v37 = vpop.f32.mrf.mxu1  ;;  %v726_v38 = vadd.f32 %v943_v35, %v686_v34 }
 0x10c   :  { %731 = vst [vmem:[%s1316_s3] sm:$0xff] %v726_v38  ;;  %v738_v39 = vsel %vm737_vm0, %v726_v38, 0.0  ;;  %s1021_s3 = scalar_lea.vmem %s763_s6, 128 }
 0x10d   :  { %v739_v40 = vrot.slane %v738_v39, 4  ;;  %v746_v41 = vmul.f32 %v738_v39, %v738_v39  ;;  %p1022_p0 = scmp.ne.s32.totalorder %s763_s6, %s1021_s3  ;;  %p1027_p2 = scmp.lt.s32.totalorder %s1021_s3, %s1021_s3 }
 0x10f   :  { %v740_v42 = vadd.f32 %v739_v40, %v738_v39  ;;  %v747_v43 = vrot.slane %v746_v41, 4  ;;  %p1028_p3 = por %p1027_p2, %p1026_p1 }
 0x111   :  { %v741_v44 = vrot.slane %v740_v42, 2  ;;  %v748_v45 = vadd.f32 %v747_v43, %v746_v41  ;;  %p1029_p4 = pnand %p1028_p3, %p1022_p0 }
 0x113   :  { %v742_v46 = vadd.f32 %v741_v44, %v740_v42  ;;  %v749_v47 = vrot.slane %v748_v45, 2 }
 0x115   :  { %v743_v48 = vrot.slane %v742_v46, 1  ;;  %v750_v49 = vadd.f32 %v749_v47, %v748_v45 }
 0x117   :  { %v744_v50 = vadd.f32 %v743_v48, %v742_v46  ;;  %v751_v51 = vrot.slane %v750_v49, 1 }
 0x119   :  { %745 = vst [vmem:[#allocation2] sm:$0xff] %v744_v50  ;;  %v752_v52 = vadd.f32 %v751_v51, %v750_v49 }
 0x11a   :  { %1032 = shalt.err (!%p1029_p4)
}
 0x11b   :  { %765 = dma.vmem_to_hbm [thread:$0]  %s763_s6, 128, %s1317_s4, [#allocation3]   ;;  %753 = vst [vmem:[#allocation4] sm:$0xff] %v752_v52 }
 0x11c   :  { %s1041_s11 = scalar_lea.vmem %s773_s8, 128  ;;  %p1046_p6 = scmp.lt.s32.totalorder %s773_s8, %s773_s8 }
 0x11d   :  { %p1042_p5 = scmp.ne.s32.totalorder %s773_s8, %s1041_s11  ;;  %p1047_p7 = scmp.lt.s32.totalorder %s1041_s11, %s1041_s11 }
 0x11f   :  { %p1048_p8 = por %p1047_p7, %p1046_p6 }
 0x121   :  { %p1049_p9 = pnand %p1048_p8, %p1042_p5 }
 0x123   :  { %1052 = shalt.err (!%p1049_p9)
}
 0x124   :  { %775 = dma.vmem_to_hbm [thread:$0]  %s773_s8, 128, %s1318_s5, [#allocation5]  }
 0x125   :  { %1061 = dma.done.wait [#allocation3], 128  }
 0x126   :  { %1062 = vsyncadd [#allocation3], 4294967168 }
 0x127   :  { %1063 = dma.done.wait [#allocation5], 128  }
 0x128   :  { %1064 = vsyncadd [#allocation5], 4294967168 }
 0x129   :  { %784 = vsyncpa [#allocation3], 1 }
 0x12a   :  { %785 = vsyncpa [#allocation5], 1 }

</bundles_post_ra>
